<compile_context>
chip_gen: v7x
topology: tpu7x:2x2x1
jax: 0.10.0
libtpu: 0.0.40
codegen_flags: <defaults>
</compile_context>

<pallas_src>
from functools import partial

import jax
import jax.numpy as jnp
import numpy as np
from jax import lax
from jax.experimental import pallas as pl
from jax.experimental.pallas import tpu as pltpu

LN_EPS = 1e-5

# vector-slab row/column layout (shared by prepare_params and the kernel)
_VROW_B_PREX = 0    # b_pre_x as a row  [1, N]
_VROW_B_WL = 1      # b_wl              [1, N+3]
_VROW_G_CONV = 2    # conv_att LN gamma [1, C]
_VROW_B_CONV = 3    # conv_att LN beta  [1, C]
_VROW_G_LN = 4      # final LN gamma    [1, C]
_VROW_B_LN = 5      # final LN beta     [1, C]
_VROW_W_PROJ = 6    # w_proj row [1, C]; b_proj scalar at column C
_VCOL_B_PRE = 20    # b_pre   as a column [N, 1]
_VCOL_B_PREX = 21   # b_pre_x as a column [N, 1]
_VECS_LANES = 32


# ----------------------------------------------------------------------------
# One-time parameter packing (hoisted out of the per-call path; review item 1/9)
# ----------------------------------------------------------------------------
def prepare_params(params):
    C, N = np.shape(params["W_pre"])
    assert N >= C >= 1, "packing assumes hidden_dim >= in_channels"
    rows = max(N, C)

    def npf(a):
        return np.asarray(jax.device_get(a), np.float32)

    def pad_rows(m):
        m = npf(m)
        return np.pad(m, ((0, rows - m.shape[0]), (0, 0)))

    # constant banded matrices for the 3-tap 'same' depthwise conv over C:
    #   (v @ s_prev)[n, c] = v[n, c-1]  (0 at c=0)
    #   (v @ s_next)[n, c] = v[n, c+1]  (0 at c=C-1)
    idx = np.arange(C)
    s_prev = (idx[:, None] + 1 == idx[None, :]).astype(np.float32)
    s_next = (idx[:, None] == idx[None, :] + 1).astype(np.float32)

    # weight slab [max(N,C), 4C + 2N + 3]:
    #   cols [0,C)            W_pre^T   [N, C]
    #   cols [C,2C)           W_pre_x^T [N, C]
    #   cols [2C,2C+N)        W_pre_x   [C, N]
    #   cols [2C+N,2C+2N+3)   W_wl      [C, N+3]
    #   cols [2C+2N+3, end)   [s_prev | s_next]  [C, 2C]
    wmat = np.concatenate([
        pad_rows(npf(params["W_pre"]).T),
        pad_rows(npf(params["W_pre_x"]).T),
        pad_rows(params["W_pre_x"]),
        pad_rows(params["W_wl"]),
        pad_rows(np.concatenate([s_prev, s_next], axis=1)),
    ], axis=1)

    # vector slab [max(N,8), 32]: 1-D biases/gammas as rows, plus the two biases
    # that are consumed as columns.
    vrows = max(N, 8)
    vecs = np.zeros((vrows, _VECS_LANES), np.float32)
    vecs[_VROW_B_PREX, :N] = npf(params["b_pre_x"]).ravel()
    vecs[_VROW_B_WL, :N + 3] = npf(params["b_wl"]).ravel()
    vecs[_VROW_G_CONV, :C] = npf(params["g_conv"]).ravel()
    vecs[_VROW_B_CONV, :C] = npf(params["b_conv"]).ravel()
    vecs[_VROW_G_LN, :C] = npf(params["g_ln"]).ravel()
    vecs[_VROW_B_LN, :C] = npf(params["b_ln"]).ravel()
    vecs[_VROW_W_PROJ, :C] = npf(params["w_proj"]).ravel()
    vecs[_VROW_W_PROJ, C] = npf(params["b_proj"]).ravel()[0]
    vecs[:N, _VCOL_B_PRE] = npf(params["b_pre"]).ravel()
    vecs[:N, _VCOL_B_PREX] = npf(params["b_pre_x"]).ravel()

    return {"wmat": jnp.asarray(wmat), "vecs": jnp.asarray(vecs)}


# ----------------------------------------------------------------------------
# Fused ETM kernel — single invocation, batch unrolled in the body
# ----------------------------------------------------------------------------
def _etm_kernel(x_ref, z_ref, w_ref, v_ref, out_ref, *, n_hidden):
    B, HW, C = x_ref.shape
    N = n_hidden

    # ---- unpack the packed parameter slabs once (batch-invariant) ----
    o = 0
    w_pre_t = w_ref[0:N, o:o + C]; o += C            # [N, C]
    w_prex_t = w_ref[0:N, o:o + C]; o += C            # [N, C]
    w_prex = w_ref[0:C, o:o + N]; o += N              # [C, N]
    w_wl = w_ref[0:C, o:o + N + 3]; o += N + 3        # [C, N+3]
    shifts = w_ref[0:C, o:o + 2 * C]                  # [C, 2C]  (s_prev | s_next)

    b_prex_row = v_ref[_VROW_B_PREX:_VROW_B_PREX + 1, 0:N]        # [1, N]
    b_wl_row = v_ref[_VROW_B_WL:_VROW_B_WL + 1, 0:N + 3]          # [1, N+3]
    g_conv = v_ref[_VROW_G_CONV:_VROW_G_CONV + 1, 0:C]            # [1, C]
    b_conv = v_ref[_VROW_B_CONV:_VROW_B_CONV + 1, 0:C]
    g_ln = v_ref[_VROW_G_LN:_VROW_G_LN + 1, 0:C]
    b_ln = v_ref[_VROW_B_LN:_VROW_B_LN + 1, 0:C]
    w_proj_row = v_ref[_VROW_W_PROJ:_VROW_W_PROJ + 1, 0:C]        # [1, C]
    b_proj = v_ref[_VROW_W_PROJ:_VROW_W_PROJ + 1, C:C + 1]        # [1, 1]
    b_pre_col = v_ref[0:N, _VCOL_B_PRE:_VCOL_B_PRE + 1]           # [N, 1]
    b_prex_col = v_ref[0:N, _VCOL_B_PREX:_VCOL_B_PREX + 1]        # [N, 1]

    nt = (((1,), (1,)), ((), ()))   # contract last dims of both operands (q @ k^T)

    for b in range(B):   # B is tiny & static: unrolled, independent per-batch chains
        x = x_ref[b]     # [HW, C]
        z = z_ref[b]     # [HWz, C]

        # pre_kernels(z) + gram: kernels[n,c] = sum_hw z_core[hw,n] * z[hw,c]
        z_core_t = lax.dot_general(w_pre_t, z, nt,
                                   preferred_element_type=jnp.float32) + b_pre_col   # [N,HWz]
        kernels = jnp.dot(z_core_t, z, preferred_element_type=jnp.float32)           # [N, C]

        # pre_kernels_x(x): transposed copy feeds the gram, natural copy feeds the
        # correlation (one extra tiny matmul instead of any in-kernel transpose).
        x_n_t = lax.dot_general(w_prex_t, x, nt,
                                preferred_element_type=jnp.float32) + b_prex_col     # [N, HW]
        kernels_x = jnp.dot(x_n_t, x, preferred_element_type=jnp.float32)            # [N, C]
        x_n = jnp.dot(x, w_prex, preferred_element_type=jnp.float32) + b_prex_row    # [HW, N]

        # ---- DySepConvAtten(query=kernels, value=kernels_x) ----
        dy = jnp.dot(kernels, w_wl, preferred_element_type=jnp.float32) + b_wl_row   # [N, N+3]
        dw = dy[:, 0:3]          # dynamic depthwise taps
        pw = dy[:, 3:3 + N]      # dynamic pointwise weights

        # depthwise k=3, 'same' zero padding over C, via ONE fused constant matmul
        shifted = jnp.dot(kernels_x, shifts, preferred_element_type=jnp.float32)     # [N, 2C]
        depth = (dw[:, 0:1] * shifted[:, 0:C]
                 + dw[:, 1:2] * kernels_x
                 + dw[:, 2:3] * shifted[:, C:2 * C])
        depth = jnp.maximum(depth, 0.0)                                              # ReLU

        point = jnp.dot(pw, depth, preferred_element_type=jnp.float32)               # [N, C]

        # LayerNorm over C (lane axis)
        mu = jnp.mean(point, axis=-1, keepdims=True)
        var = jnp.mean((point - mu) ** 2, axis=-1, keepdims=True)
        kxa = (point - mu) * lax.rsqrt(var + LN_EPS) * g_conv + b_conv               # [N, C]

        # ---- prototype gate (MXU-free: VPU + cross-lane / cross-sublane reduces)
        proj = jnp.sum(kxa * w_proj_row, axis=-1, keepdims=True) + b_proj            # [N, 1]
        tem = jax.nn.sigmoid(jnp.sum(proj * kxa, axis=0, keepdims=True))             # [1, C]

        # ---- correlation, gate, LayerNorm(C), ReLU, residual (natural layout)
        x_corr = jnp.dot(x_n, kxa, preferred_element_type=jnp.float32) * tem         # [HW, C]
        mu2 = jnp.mean(x_corr, axis=-1, keepdims=True)
        var2 = jnp.mean((x_corr - mu2) ** 2, axis=-1, keepdims=True)
        ln = (x_corr - mu2) * lax.rsqrt(var2 + LN_EPS) * g_ln + b_ln
        out_ref[b] = x + jnp.maximum(ln, 0.0)


# ----------------------------------------------------------------------------
# ETM forward (version='v5', Train=True)
# ----------------------------------------------------------------------------
@jax.jit
def etm_forward(x_feat, z_feat, wmat, vecs):
    B, H, W, C = x_feat.shape
    _, Hz, Wz, _ = z_feat.shape
    HW, HWz = H * W, Hz * Wz
    N = wmat.shape[0]   # static under jit

    # dim-collapsing reshapes only (no transposes -> no extra HBM copy kernels)
    x2 = x_feat.reshape(B, HW, C)
    z2 = z_feat.reshape(B, HWz, C)

    vmem = lambda: pl.BlockSpec(memory_space=pltpu.MemorySpace.VMEM)
    out = pl.pallas_call(
        partial(_etm_kernel, n_hidden=N),
        out_shape=jax.ShapeDtypeStruct((B, HW, C), jnp.float32),
        in_specs=[vmem(), vmem(), vmem(), vmem()],
        out_specs=vmem(),
        # Single grid step: whole batch in one body (best on single-TC v5e/v6e).
        # On v7x, grid=(B,) + dimension_semantics=(pltpu.CORE_PARALLEL,) would
        # instead split the batch across the two TensorCores.
    )(x2, z2, wmat, vecs)
    return out.reshape(B, H, W, C)


# ----------------------------------------------------------------------------
# Pure-JAX reference (mirrors the PyTorch module) for a sanity check
# ----------------------------------------------------------------------------
def _layernorm(x, g, b):
    mu = jnp.mean(x, -1, keepdims=True)
    var = jnp.mean((x - mu) ** 2, -1, keepdims=True)
    return (x - mu) * lax.rsqrt(var + LN_EPS) * g + b


def etm_reference(x_feat, z_feat, p):
    zc = z_feat @ p["W_pre"] + p["b_pre"]
    kernels = jnp.einsum("bhwn,bhwc->bnc", zc, z_feat)
    xn = x_feat @ p["W_pre_x"] + p["b_pre_x"]
    kx = jnp.einsum("bhwn,bhwc->bnc", xn, x_feat)

    # DySepConvAtten
    dy = kernels @ p["W_wl"] + p["b_wl"]
    dw, pw = dy[:, :, :3], dy[:, :, 3:]
    vp = jnp.pad(kx, ((0, 0), (0, 0), (1, 1)))
    depth = (dw[:, :, 0:1] * vp[:, :, :-2]
             + dw[:, :, 1:2] * vp[:, :, 1:-1]
             + dw[:, :, 2:3] * vp[:, :, 2:])
    depth = jnp.maximum(depth, 0.0)
    point = jnp.einsum("bnm,bmc->bnc", pw, depth)
    kxa = _layernorm(point, p["g_conv"], p["b_conv"])

    x_corr = jnp.einsum("bnc,bhwn->bhwc", kxa, xn)
    proj = kxa @ p["w_proj"] + p["b_proj"]                        # [B, N, 1]
    tem = jax.nn.sigmoid(jnp.einsum("bnd,bnc->bdc", proj, kxa))[:, :, None, :]
    x_corr = x_corr * tem
    return x_feat + jnp.maximum(_layernorm(x_corr, p["g_ln"], p["b_ln"]), 0.0)


# ----------------------------------------------------------------------------
if __name__ == "__main__":
    B = 2
    C = 8          # in_channels
    N = 16         # hidden_dim (number of "proposal" kernels)
    H = W = 16     # search-region feature map
    Hz = Wz = 8    # template feature map

    key = jax.random.PRNGKey(0)
    ks = jax.random.split(key, 12)

    # Linear weights stored as [in, out] (PyTorch Linear applies x @ W.T + b).
    params = {
        "W_pre":   jax.random.normal(ks[0], (C, N), jnp.float32) / np.sqrt(C),
        "b_pre":   jax.random.normal(ks[1], (N,), jnp.float32) * 0.01,
        "W_pre_x": jax.random.normal(ks[2], (C, N), jnp.float32) / np.sqrt(C),
        "b_pre_x": jax.random.normal(ks[3], (N,), jnp.float32) * 0.01,
        "W_wl":    jax.random.normal(ks[4], (C, N + 3), jnp.float32) / np.sqrt(C),
        "b_wl":    jax.random.normal(ks[5], (N + 3,), jnp.float32) * 0.01,
        "g_conv":  jnp.ones((C,), jnp.float32),
        "b_conv":  jnp.zeros((C,), jnp.float32),
        "w_proj":  jax.random.normal(ks[6], (C, 1), jnp.float32) / np.sqrt(C),
        "b_proj":  jax.random.normal(ks[7], (1,), jnp.float32) * 0.01,
        "g_ln":    jnp.ones((C,), jnp.float32),
        "b_ln":    jnp.zeros((C,), jnp.float32),
    }

    x_feat = jax.random.normal(ks[8], (B, H, W, C), jnp.float32) * 0.5
    z_feat = jax.random.normal(ks[9], (B, Hz, Wz, C), jnp.float32) * 0.5

    prepared = prepare_params(params)   # one-time packing, outside the hot path
    out = etm_forward(x_feat, z_feat, prepared["wmat"], prepared["vecs"])
    out = jax.block_until_ready(out)

    ref = jax.block_until_ready(etm_reference(x_feat, z_feat, params))
    np.testing.assert_allclose(np.asarray(out), np.asarray(ref),
                               rtol=1e-3, atol=1e-3)

    print("KERNEL_OK")
</pallas_src>

<mosaic_0001>
module attributes {stable_mosaic.version = 11 : i64} {
  func.func @_etm_kernel(%arg0: memref<2x256x8xf32, #tpu.memory_space<vmem>>, %arg1: memref<2x64x8xf32, #tpu.memory_space<vmem>>, %arg2: memref<16x67xf32, #tpu.memory_space<vmem>>, %arg3: memref<16x32xf32, #tpu.memory_space<vmem>>, %arg4: memref<2x256x8xf32, #tpu.memory_space<vmem>>) attributes {dimension_semantics = [], scalar_prefetch = 0 : i64, scratch_operands = 0 : i64, tpu.core_type = #tpu.core_type<tc>} {
    %c0 = arith.constant 0 : index
    %c0_0 = arith.constant 0 : index
    %0 = vector.load %arg2[%c0, %c0_0] : memref<16x67xf32, #tpu.memory_space<vmem>>, vector<16x8xf32>
    %c0_1 = arith.constant 0 : index
    %c8 = arith.constant 8 : index
    %1 = vector.load %arg2[%c0_1, %c8] : memref<16x67xf32, #tpu.memory_space<vmem>>, vector<16x8xf32>
    %c0_2 = arith.constant 0 : index
    %c16 = arith.constant 16 : index
    %2 = vector.load %arg2[%c0_2, %c16] : memref<16x67xf32, #tpu.memory_space<vmem>>, vector<8x16xf32>
    %c0_3 = arith.constant 0 : index
    %c32 = arith.constant 32 : index
    %3 = vector.load %arg2[%c0_3, %c32] : memref<16x67xf32, #tpu.memory_space<vmem>>, vector<8x19xf32>
    %c0_4 = arith.constant 0 : index
    %c51 = arith.constant 51 : index
    %4 = vector.load %arg2[%c0_4, %c51] : memref<16x67xf32, #tpu.memory_space<vmem>>, vector<8x16xf32>
    %c0_5 = arith.constant 0 : index
    %c0_6 = arith.constant 0 : index
    %5 = vector.load %arg3[%c0_5, %c0_6] : memref<16x32xf32, #tpu.memory_space<vmem>>, vector<1x16xf32>
    %c1 = arith.constant 1 : index
    %c0_7 = arith.constant 0 : index
    %6 = vector.load %arg3[%c1, %c0_7] : memref<16x32xf32, #tpu.memory_space<vmem>>, vector<1x19xf32>
    %c2 = arith.constant 2 : index
    %c0_8 = arith.constant 0 : index
    %7 = vector.load %arg3[%c2, %c0_8] : memref<16x32xf32, #tpu.memory_space<vmem>>, vector<1x8xf32>
    %c3 = arith.constant 3 : index
    %c0_9 = arith.constant 0 : index
    %8 = vector.load %arg3[%c3, %c0_9] : memref<16x32xf32, #tpu.memory_space<vmem>>, vector<1x8xf32>
    %c4 = arith.constant 4 : index
    %c0_10 = arith.constant 0 : index
    %9 = vector.load %arg3[%c4, %c0_10] : memref<16x32xf32, #tpu.memory_space<vmem>>, vector<1x8xf32>
    %c5 = arith.constant 5 : index
    %c0_11 = arith.constant 0 : index
    %10 = vector.load %arg3[%c5, %c0_11] : memref<16x32xf32, #tpu.memory_space<vmem>>, vector<1x8xf32>
    %c6 = arith.constant 6 : index
    %c0_12 = arith.constant 0 : index
    %11 = vector.load %arg3[%c6, %c0_12] : memref<16x32xf32, #tpu.memory_space<vmem>>, vector<1x8xf32>
    %c6_13 = arith.constant 6 : index
    %c8_14 = arith.constant 8 : index
    %12 = vector.load %arg3[%c6_13, %c8_14] : memref<16x32xf32, #tpu.memory_space<vmem>>, vector<1x1xf32>
    %c0_15 = arith.constant 0 : index
    %c20 = arith.constant 20 : index
    %13 = vector.load %arg3[%c0_15, %c20] : memref<16x32xf32, #tpu.memory_space<vmem>>, vector<16x1xf32>
    %c0_16 = arith.constant 0 : index
    %c21 = arith.constant 21 : index
    %14 = vector.load %arg3[%c0_16, %c21] : memref<16x32xf32, #tpu.memory_space<vmem>>, vector<16x1xf32>
    %c0_17 = arith.constant 0 : index
    %c0_18 = arith.constant 0 : index
    %c0_19 = arith.constant 0 : index
    %15 = vector.load %arg0[%c0_17, %c0_18, %c0_19] : memref<2x256x8xf32, #tpu.memory_space<vmem>>, vector<1x256x8xf32>
    %16 = vector.shape_cast %15 : vector<1x256x8xf32> to vector<256x8xf32>
    %c0_20 = arith.constant 0 : index
    %c0_21 = arith.constant 0 : index
    %c0_22 = arith.constant 0 : index
    %17 = vector.load %arg1[%c0_20, %c0_21, %c0_22] : memref<2x64x8xf32, #tpu.memory_space<vmem>>, vector<1x64x8xf32>
    %18 = vector.shape_cast %17 : vector<1x64x8xf32> to vector<64x8xf32>
    %cst = arith.constant dense<0.000000e+00> : vector<16x64xf32>
    %19 = tpu.matmul %0, %18, %cst {dimension_numbers = #tpu.dot_dimension_numbers<[1], [1], [0], [0], [0, 0, 1, 0], [], []>} : vector<16x8xf32>, vector<64x8xf32>, vector<16x64xf32> -> vector<16x64xf32>
    %20 = vector.broadcast %13 : vector<16x1xf32> to vector<16x64xf32>
    %21 = arith.addf %19, %20 : vector<16x64xf32>
    %cst_23 = arith.constant dense<0.000000e+00> : vector<16x8xf32>
    %22 = tpu.matmul %21, %18, %cst_23 {dimension_numbers = #tpu.dot_dimension_numbers<[1], [0], [0], [1], [0, 0, 1, 1], [], []>} : vector<16x64xf32>, vector<64x8xf32>, vector<16x8xf32> -> vector<16x8xf32>
    %cst_24 = arith.constant dense<0.000000e+00> : vector<16x256xf32>
    %23 = tpu.matmul %1, %16, %cst_24 {dimension_numbers = #tpu.dot_dimension_numbers<[1], [1], [0], [0], [0, 0, 1, 0], [], []>} : vector<16x8xf32>, vector<256x8xf32>, vector<16x256xf32> -> vector<16x256xf32>
    %24 = vector.broadcast %14 : vector<16x1xf32> to vector<16x256xf32>
    %25 = arith.addf %23, %24 : vector<16x256xf32>
    %cst_25 = arith.constant dense<0.000000e+00> : vector<16x8xf32>
    %26 = tpu.matmul %25, %16, %cst_25 {dimension_numbers = #tpu.dot_dimension_numbers<[1], [0], [0], [1], [0, 0, 1, 1], [], []>} : vector<16x256xf32>, vector<256x8xf32>, vector<16x8xf32> -> vector<16x8xf32>
    %cst_26 = arith.constant dense<0.000000e+00> : vector<256x16xf32>
    %27 = tpu.matmul %16, %2, %cst_26 {dimension_numbers = #tpu.dot_dimension_numbers<[1], [0], [0], [1], [0, 0, 1, 1], [], []>} : vector<256x8xf32>, vector<8x16xf32>, vector<256x16xf32> -> vector<256x16xf32>
    %28 = vector.broadcast %5 : vector<1x16xf32> to vector<256x16xf32>
    %29 = arith.addf %27, %28 : vector<256x16xf32>
    %cst_27 = arith.constant dense<0.000000e+00> : vector<16x19xf32>
    %30 = tpu.matmul %22, %3, %cst_27 {dimension_numbers = #tpu.dot_dimension_numbers<[1], [0], [0], [1], [0, 0, 1, 1], [], []>} : vector<16x8xf32>, vector<8x19xf32>, vector<16x19xf32> -> vector<16x19xf32>
    %31 = vector.broadcast %6 : vector<1x19xf32> to vector<16x19xf32>
    %32 = arith.addf %30, %31 : vector<16x19xf32>
    %33 = vector.extract_strided_slice %32 {offsets = [0, 0], sizes = [16, 3], strides = [1, 1]} : vector<16x19xf32> to vector<16x3xf32>
    %34 = vector.extract_strided_slice %32 {offsets = [0, 3], sizes = [16, 16], strides = [1, 1]} : vector<16x19xf32> to vector<16x16xf32>
    %cst_28 = arith.constant dense<0.000000e+00> : vector<16x16xf32>
    %35 = tpu.matmul %26, %4, %cst_28 {dimension_numbers = #tpu.dot_dimension_numbers<[1], [0], [0], [1], [0, 0, 1, 1], [], []>} : vector<16x8xf32>, vector<8x16xf32>, vector<16x16xf32> -> vector<16x16xf32>
    %36 = vector.extract_strided_slice %33 {offsets = [0, 0], sizes = [16, 1], strides = [1, 1]} : vector<16x3xf32> to vector<16x1xf32>
    %37 = vector.extract_strided_slice %35 {offsets = [0, 0], sizes = [16, 8], strides = [1, 1]} : vector<16x16xf32> to vector<16x8xf32>
    %38 = vector.broadcast %36 : vector<16x1xf32> to vector<16x8xf32>
    %39 = arith.mulf %38, %37 : vector<16x8xf32>
    %40 = vector.extract_strided_slice %33 {offsets = [0, 1], sizes = [16, 1], strides = [1, 1]} : vector<16x3xf32> to vector<16x1xf32>
    %41 = vector.broadcast %40 : vector<16x1xf32> to vector<16x8xf32>
    %42 = arith.mulf %41, %26 : vector<16x8xf32>
    %43 = arith.addf %39, %42 : vector<16x8xf32>
    %44 = vector.extract_strided_slice %33 {offsets = [0, 2], sizes = [16, 1], strides = [1, 1]} : vector<16x3xf32> to vector<16x1xf32>
    %45 = vector.extract_strided_slice %35 {offsets = [0, 8], sizes = [16, 8], strides = [1, 1]} : vector<16x16xf32> to vector<16x8xf32>
    %46 = vector.broadcast %44 : vector<16x1xf32> to vector<16x8xf32>
    %47 = arith.mulf %46, %45 : vector<16x8xf32>
    %48 = arith.addf %43, %47 : vector<16x8xf32>
    %cst_29 = arith.constant 0.000000e+00 : f32
    %49 = vector.broadcast %cst_29 : f32 to vector<16x8xf32>
    %50 = arith.maximumf %48, %49 : vector<16x8xf32>
    %cst_30 = arith.constant dense<0.000000e+00> : vector<16x8xf32>
    %51 = tpu.matmul %34, %50, %cst_30 {dimension_numbers = #tpu.dot_dimension_numbers<[1], [0], [0], [1], [0, 0, 1, 1], [], []>} : vector<16x16xf32>, vector<16x8xf32>, vector<16x8xf32> -> vector<16x8xf32>
    %cst_31 = arith.constant dense<0.000000e+00> : vector<16xf32>
    %52 = vector.multi_reduction <add>, %51, %cst_31 [1] : vector<16x8xf32> to vector<16xf32>
    %53 = vector.shape_cast %52 : vector<16xf32> to vector<16x1xf32>
    %cst_32 = arith.constant 8.000000e+00 : f32
    %54 = vector.broadcast %cst_32 : f32 to vector<16x1xf32>
    %55 = arith.divf %53, %54 : vector<16x1xf32>
    %56 = vector.broadcast %55 : vector<16x1xf32> to vector<16x8xf32>
    %57 = arith.subf %51, %56 : vector<16x8xf32>
    %58 = arith.mulf %57, %57 : vector<16x8xf32>
    %cst_33 = arith.constant dense<0.000000e+00> : vector<16xf32>
    %59 = vector.multi_reduction <add>, %58, %cst_33 [1] : vector<16x8xf32> to vector<16xf32>
    %60 = vector.shape_cast %59 : vector<16xf32> to vector<16x1xf32>
    %cst_34 = arith.constant 8.000000e+00 : f32
    %61 = vector.broadcast %cst_34 : f32 to vector<16x1xf32>
    %62 = arith.divf %60, %61 : vector<16x1xf32>
    %63 = vector.broadcast %55 : vector<16x1xf32> to vector<16x8xf32>
    %64 = arith.subf %51, %63 : vector<16x8xf32>
    %cst_35 = arith.constant 9.99999974E-6 : f32
    %65 = vector.broadcast %cst_35 : f32 to vector<16x1xf32>
    %66 = arith.addf %62, %65 : vector<16x1xf32>
    %67 = math.rsqrt %66 : vector<16x1xf32>
    %68 = vector.broadcast %67 : vector<16x1xf32> to vector<16x8xf32>
    %69 = arith.mulf %64, %68 : vector<16x8xf32>
    %70 = vector.broadcast %7 : vector<1x8xf32> to vector<16x8xf32>
    %71 = arith.mulf %69, %70 : vector<16x8xf32>
    %72 = vector.broadcast %8 : vector<1x8xf32> to vector<16x8xf32>
    %73 = arith.addf %71, %72 : vector<16x8xf32>
    %74 = vector.broadcast %11 : vector<1x8xf32> to vector<16x8xf32>
    %75 = arith.mulf %73, %74 : vector<16x8xf32>
    %cst_36 = arith.constant dense<0.000000e+00> : vector<16xf32>
    %76 = vector.multi_reduction <add>, %75, %cst_36 [1] : vector<16x8xf32> to vector<16xf32>
    %77 = vector.shape_cast %76 : vector<16xf32> to vector<16x1xf32>
    %78 = vector.broadcast %12 : vector<1x1xf32> to vector<16x1xf32>
    %79 = arith.addf %77, %78 : vector<16x1xf32>
    %80 = vector.broadcast %79 : vector<16x1xf32> to vector<16x8xf32>
    %81 = arith.mulf %80, %73 : vector<16x8xf32>
    %cst_37 = arith.constant dense<0.000000e+00> : vector<8xf32>
    %82 = vector.multi_reduction <add>, %81, %cst_37 [0] : vector<16x8xf32> to vector<8xf32>
    %83 = vector.shape_cast %82 : vector<8xf32> to vector<1x8xf32>
    %84 = arith.negf %83 : vector<1x8xf32>
    %85 = math.exp %84 : vector<1x8xf32>
    %cst_38 = arith.constant 1.000000e+00 : f32
    %86 = vector.broadcast %cst_38 : f32 to vector<1x8xf32>
    %87 = arith.addf %86, %85 : vector<1x8xf32>
    %88 = arith.divf %86, %87 : vector<1x8xf32>
    %cst_39 = arith.constant dense<0.000000e+00> : vector<256x8xf32>
    %89 = tpu.matmul %29, %73, %cst_39 {dimension_numbers = #tpu.dot_dimension_numbers<[1], [0], [0], [1], [0, 0, 1, 1], [], []>} : vector<256x16xf32>, vector<16x8xf32>, vector<256x8xf32> -> vector<256x8xf32>
    %90 = vector.broadcast %88 : vector<1x8xf32> to vector<256x8xf32>
    %91 = arith.mulf %89, %90 : vector<256x8xf32>
    %cst_40 = arith.constant dense<0.000000e+00> : vector<256xf32>
    %92 = vector.multi_reduction <add>, %91, %cst_40 [1] : vector<256x8xf32> to vector<256xf32>
    %93 = vector.shape_cast %92 : vector<256xf32> to vector<256x1xf32>
    %cst_41 = arith.constant 8.000000e+00 : f32
    %94 = vector.broadcast %cst_41 : f32 to vector<256x1xf32>
    %95 = arith.divf %93, %94 : vector<256x1xf32>
    %96 = vector.broadcast %95 : vector<256x1xf32> to vector<256x8xf32>
    %97 = arith.subf %91, %96 : vector<256x8xf32>
    %98 = arith.mulf %97, %97 : vector<256x8xf32>
    %cst_42 = arith.constant dense<0.000000e+00> : vector<256xf32>
    %99 = vector.multi_reduction <add>, %98, %cst_42 [1] : vector<256x8xf32> to vector<256xf32>
    %100 = vector.shape_cast %99 : vector<256xf32> to vector<256x1xf32>
    %cst_43 = arith.constant 8.000000e+00 : f32
    %101 = vector.broadcast %cst_43 : f32 to vector<256x1xf32>
    %102 = arith.divf %100, %101 : vector<256x1xf32>
    %103 = vector.broadcast %95 : vector<256x1xf32> to vector<256x8xf32>
    %104 = arith.subf %91, %103 : vector<256x8xf32>
    %cst_44 = arith.constant 9.99999974E-6 : f32
    %105 = vector.broadcast %cst_44 : f32 to vector<256x1xf32>
    %106 = arith.addf %102, %105 : vector<256x1xf32>
    %107 = math.rsqrt %106 : vector<256x1xf32>
    %108 = vector.broadcast %107 : vector<256x1xf32> to vector<256x8xf32>
    %109 = arith.mulf %104, %108 : vector<256x8xf32>
    %110 = vector.broadcast %9 : vector<1x8xf32> to vector<256x8xf32>
    %111 = arith.mulf %109, %110 : vector<256x8xf32>
    %112 = vector.broadcast %10 : vector<1x8xf32> to vector<256x8xf32>
    %113 = arith.addf %111, %112 : vector<256x8xf32>
    %cst_45 = arith.constant 0.000000e+00 : f32
    %114 = vector.broadcast %cst_45 : f32 to vector<256x8xf32>
    %115 = arith.maximumf %113, %114 : vector<256x8xf32>
    %116 = arith.addf %16, %115 : vector<256x8xf32>
    %c0_46 = arith.constant 0 : index
    %c0_47 = arith.constant 0 : index
    %c0_48 = arith.constant 0 : index
    %117 = vector.load %arg4[%c0_46, %c0_47, %c0_48] : memref<2x256x8xf32, #tpu.memory_space<vmem>>, vector<1x256x8xf32>
    %118 = vector.shape_cast %117 : vector<1x256x8xf32> to vector<256x8xf32>
    %119 = vector.shape_cast %116 : vector<256x8xf32> to vector<1x256x8xf32>
    tpu.vector_store %arg4[%c0_46, %c0_47, %c0_48], %119 {strides = array<i32>} : memref<2x256x8xf32, #tpu.memory_space<vmem>>, vector<1x256x8xf32>,
    %c1_49 = arith.constant 1 : index
    %c0_50 = arith.constant 0 : index
    %c0_51 = arith.constant 0 : index
    %120 = vector.load %arg0[%c1_49, %c0_50, %c0_51] : memref<2x256x8xf32, #tpu.memory_space<vmem>>, vector<1x256x8xf32>
    %121 = vector.shape_cast %120 : vector<1x256x8xf32> to vector<256x8xf32>
    %c1_52 = arith.constant 1 : index
    %c0_53 = arith.constant 0 : index
    %c0_54 = arith.constant 0 : index
    %122 = vector.load %arg1[%c1_52, %c0_53, %c0_54] : memref<2x64x8xf32, #tpu.memory_space<vmem>>, vector<1x64x8xf32>
    %123 = vector.shape_cast %122 : vector<1x64x8xf32> to vector<64x8xf32>
    %cst_55 = arith.constant dense<0.000000e+00> : vector<16x64xf32>
    %124 = tpu.matmul %0, %123, %cst_55 {dimension_numbers = #tpu.dot_dimension_numbers<[1], [1], [0], [0], [0, 0, 1, 0], [], []>} : vector<16x8xf32>, vector<64x8xf32>, vector<16x64xf32> -> vector<16x64xf32>
    %125 = vector.broadcast %13 : vector<16x1xf32> to vector<16x64xf32>
    %126 = arith.addf %124, %125 : vector<16x64xf32>
    %cst_56 = arith.constant dense<0.000000e+00> : vector<16x8xf32>
    %127 = tpu.matmul %126, %123, %cst_56 {dimension_numbers = #tpu.dot_dimension_numbers<[1], [0], [0], [1], [0, 0, 1, 1], [], []>} : vector<16x64xf32>, vector<64x8xf32>, vector<16x8xf32> -> vector<16x8xf32>
    %cst_57 = arith.constant dense<0.000000e+00> : vector<16x256xf32>
    %128 = tpu.matmul %1, %121, %cst_57 {dimension_numbers = #tpu.dot_dimension_numbers<[1], [1], [0], [0], [0, 0, 1, 0], [], []>} : vector<16x8xf32>, vector<256x8xf32>, vector<16x256xf32> -> vector<16x256xf32>
    %129 = vector.broadcast %14 : vector<16x1xf32> to vector<16x256xf32>
    %130 = arith.addf %128, %129 : vector<16x256xf32>
    %cst_58 = arith.constant dense<0.000000e+00> : vector<16x8xf32>
    %131 = tpu.matmul %130, %121, %cst_58 {dimension_numbers = #tpu.dot_dimension_numbers<[1], [0], [0], [1], [0, 0, 1, 1], [], []>} : vector<16x256xf32>, vector<256x8xf32>, vector<16x8xf32> -> vector<16x8xf32>
    %cst_59 = arith.constant dense<0.000000e+00> : vector<256x16xf32>
    %132 = tpu.matmul %121, %2, %cst_59 {dimension_numbers = #tpu.dot_dimension_numbers<[1], [0], [0], [1], [0, 0, 1, 1], [], []>} : vector<256x8xf32>, vector<8x16xf32>, vector<256x16xf32> -> vector<256x16xf32>
    %133 = vector.broadcast %5 : vector<1x16xf32> to vector<256x16xf32>
    %134 = arith.addf %132, %133 : vector<256x16xf32>
    %cst_60 = arith.constant dense<0.000000e+00> : vector<16x19xf32>
    %135 = tpu.matmul %127, %3, %cst_60 {dimension_numbers = #tpu.dot_dimension_numbers<[1], [0], [0], [1], [0, 0, 1, 1], [], []>} : vector<16x8xf32>, vector<8x19xf32>, vector<16x19xf32> -> vector<16x19xf32>
    %136 = vector.broadcast %6 : vector<1x19xf32> to vector<16x19xf32>
    %137 = arith.addf %135, %136 : vector<16x19xf32>
    %138 = vector.extract_strided_slice %137 {offsets = [0, 0], sizes = [16, 3], strides = [1, 1]} : vector<16x19xf32> to vector<16x3xf32>
    %139 = vector.extract_strided_slice %137 {offsets = [0, 3], sizes = [16, 16], strides = [1, 1]} : vector<16x19xf32> to vector<16x16xf32>
    %cst_61 = arith.constant dense<0.000000e+00> : vector<16x16xf32>
    %140 = tpu.matmul %131, %4, %cst_61 {dimension_numbers = #tpu.dot_dimension_numbers<[1], [0], [0], [1], [0, 0, 1, 1], [], []>} : vector<16x8xf32>, vector<8x16xf32>, vector<16x16xf32> -> vector<16x16xf32>
    %141 = vector.extract_strided_slice %138 {offsets = [0, 0], sizes = [16, 1], strides = [1, 1]} : vector<16x3xf32> to vector<16x1xf32>
    %142 = vector.extract_strided_slice %140 {offsets = [0, 0], sizes = [16, 8], strides = [1, 1]} : vector<16x16xf32> to vector<16x8xf32>
    %143 = vector.broadcast %141 : vector<16x1xf32> to vector<16x8xf32>
    %144 = arith.mulf %143, %142 : vector<16x8xf32>
    %145 = vector.extract_strided_slice %138 {offsets = [0, 1], sizes = [16, 1], strides = [1, 1]} : vector<16x3xf32> to vector<16x1xf32>
    %146 = vector.broadcast %145 : vector<16x1xf32> to vector<16x8xf32>
    %147 = arith.mulf %146, %131 : vector<16x8xf32>
    %148 = arith.addf %144, %147 : vector<16x8xf32>
    %149 = vector.extract_strided_slice %138 {offsets = [0, 2], sizes = [16, 1], strides = [1, 1]} : vector<16x3xf32> to vector<16x1xf32>
    %150 = vector.extract_strided_slice %140 {offsets = [0, 8], sizes = [16, 8], strides = [1, 1]} : vector<16x16xf32> to vector<16x8xf32>
    %151 = vector.broadcast %149 : vector<16x1xf32> to vector<16x8xf32>
    %152 = arith.mulf %151, %150 : vector<16x8xf32>
    %153 = arith.addf %148, %152 : vector<16x8xf32>
    %cst_62 = arith.constant 0.000000e+00 : f32
    %154 = vector.broadcast %cst_62 : f32 to vector<16x8xf32>
    %155 = arith.maximumf %153, %154 : vector<16x8xf32>
    %cst_63 = arith.constant dense<0.000000e+00> : vector<16x8xf32>
    %156 = tpu.matmul %139, %155, %cst_63 {dimension_numbers = #tpu.dot_dimension_numbers<[1], [0], [0], [1], [0, 0, 1, 1], [], []>} : vector<16x16xf32>, vector<16x8xf32>, vector<16x8xf32> -> vector<16x8xf32>
    %cst_64 = arith.constant dense<0.000000e+00> : vector<16xf32>
    %157 = vector.multi_reduction <add>, %156, %cst_64 [1] : vector<16x8xf32> to vector<16xf32>
    %158 = vector.shape_cast %157 : vector<16xf32> to vector<16x1xf32>
    %cst_65 = arith.constant 8.000000e+00 : f32
    %159 = vector.broadcast %cst_65 : f32 to vector<16x1xf32>
    %160 = arith.divf %158, %159 : vector<16x1xf32>
    %161 = vector.broadcast %160 : vector<16x1xf32> to vector<16x8xf32>
    %162 = arith.subf %156, %161 : vector<16x8xf32>
    %163 = arith.mulf %162, %162 : vector<16x8xf32>
    %cst_66 = arith.constant dense<0.000000e+00> : vector<16xf32>
    %164 = vector.multi_reduction <add>, %163, %cst_66 [1] : vector<16x8xf32> to vector<16xf32>
    %165 = vector.shape_cast %164 : vector<16xf32> to vector<16x1xf32>
    %cst_67 = arith.constant 8.000000e+00 : f32
    %166 = vector.broadcast %cst_67 : f32 to vector<16x1xf32>
    %167 = arith.divf %165, %166 : vector<16x1xf32>
    %168 = vector.broadcast %160 : vector<16x1xf32> to vector<16x8xf32>
    %169 = arith.subf %156, %168 : vector<16x8xf32>
    %cst_68 = arith.constant 9.99999974E-6 : f32
    %170 = vector.broadcast %cst_68 : f32 to vector<16x1xf32>
    %171 = arith.addf %167, %170 : vector<16x1xf32>
    %172 = math.rsqrt %171 : vector<16x1xf32>
    %173 = vector.broadcast %172 : vector<16x1xf32> to vector<16x8xf32>
    %174 = arith.mulf %169, %173 : vector<16x8xf32>
    %175 = vector.broadcast %7 : vector<1x8xf32> to vector<16x8xf32>
    %176 = arith.mulf %174, %175 : vector<16x8xf32>
    %177 = vector.broadcast %8 : vector<1x8xf32> to vector<16x8xf32>
    %178 = arith.addf %176, %177 : vector<16x8xf32>
    %179 = vector.broadcast %11 : vector<1x8xf32> to vector<16x8xf32>
    %180 = arith.mulf %178, %179 : vector<16x8xf32>
    %cst_69 = arith.constant dense<0.000000e+00> : vector<16xf32>
    %181 = vector.multi_reduction <add>, %180, %cst_69 [1] : vector<16x8xf32> to vector<16xf32>
    %182 = vector.shape_cast %181 : vector<16xf32> to vector<16x1xf32>
    %183 = vector.broadcast %12 : vector<1x1xf32> to vector<16x1xf32>
    %184 = arith.addf %182, %183 : vector<16x1xf32>
    %185 = vector.broadcast %184 : vector<16x1xf32> to vector<16x8xf32>
    %186 = arith.mulf %185, %178 : vector<16x8xf32>
    %cst_70 = arith.constant dense<0.000000e+00> : vector<8xf32>
    %187 = vector.multi_reduction <add>, %186, %cst_70 [0] : vector<16x8xf32> to vector<8xf32>
    %188 = vector.shape_cast %187 : vector<8xf32> to vector<1x8xf32>
    %189 = arith.negf %188 : vector<1x8xf32>
    %190 = math.exp %189 : vector<1x8xf32>
    %cst_71 = arith.constant 1.000000e+00 : f32
    %191 = vector.broadcast %cst_71 : f32 to vector<1x8xf32>
    %192 = arith.addf %191, %190 : vector<1x8xf32>
    %193 = arith.divf %191, %192 : vector<1x8xf32>
    %cst_72 = arith.constant dense<0.000000e+00> : vector<256x8xf32>
    %194 = tpu.matmul %134, %178, %cst_72 {dimension_numbers = #tpu.dot_dimension_numbers<[1], [0], [0], [1], [0, 0, 1, 1], [], []>} : vector<256x16xf32>, vector<16x8xf32>, vector<256x8xf32> -> vector<256x8xf32>
    %195 = vector.broadcast %193 : vector<1x8xf32> to vector<256x8xf32>
    %196 = arith.mulf %194, %195 : vector<256x8xf32>
    %cst_73 = arith.constant dense<0.000000e+00> : vector<256xf32>
    %197 = vector.multi_reduction <add>, %196, %cst_73 [1] : vector<256x8xf32> to vector<256xf32>
    %198 = vector.shape_cast %197 : vector<256xf32> to vector<256x1xf32>
    %cst_74 = arith.constant 8.000000e+00 : f32
    %199 = vector.broadcast %cst_74 : f32 to vector<256x1xf32>
    %200 = arith.divf %198, %199 : vector<256x1xf32>
    %201 = vector.broadcast %200 : vector<256x1xf32> to vector<256x8xf32>
    %202 = arith.subf %196, %201 : vector<256x8xf32>
    %203 = arith.mulf %202, %202 : vector<256x8xf32>
    %cst_75 = arith.constant dense<0.000000e+00> : vector<256xf32>
    %204 = vector.multi_reduction <add>, %203, %cst_75 [1] : vector<256x8xf32> to vector<256xf32>
    %205 = vector.shape_cast %204 : vector<256xf32> to vector<256x1xf32>
    %cst_76 = arith.constant 8.000000e+00 : f32
    %206 = vector.broadcast %cst_76 : f32 to vector<256x1xf32>
    %207 = arith.divf %205, %206 : vector<256x1xf32>
    %208 = vector.broadcast %200 : vector<256x1xf32> to vector<256x8xf32>
    %209 = arith.subf %196, %208 : vector<256x8xf32>
    %cst_77 = arith.constant 9.99999974E-6 : f32
    %210 = vector.broadcast %cst_77 : f32 to vector<256x1xf32>
    %211 = arith.addf %207, %210 : vector<256x1xf32>
    %212 = math.rsqrt %211 : vector<256x1xf32>
    %213 = vector.broadcast %212 : vector<256x1xf32> to vector<256x8xf32>
    %214 = arith.mulf %209, %213 : vector<256x8xf32>
    %215 = vector.broadcast %9 : vector<1x8xf32> to vector<256x8xf32>
    %216 = arith.mulf %214, %215 : vector<256x8xf32>
    %217 = vector.broadcast %10 : vector<1x8xf32> to vector<256x8xf32>
    %218 = arith.addf %216, %217 : vector<256x8xf32>
    %cst_78 = arith.constant 0.000000e+00 : f32
    %219 = vector.broadcast %cst_78 : f32 to vector<256x8xf32>
    %220 = arith.maximumf %218, %219 : vector<256x8xf32>
    %221 = arith.addf %121, %220 : vector<256x8xf32>
    %c1_79 = arith.constant 1 : index
    %c0_80 = arith.constant 0 : index
    %c0_81 = arith.constant 0 : index
    %222 = vector.load %arg4[%c1_79, %c0_80, %c0_81] : memref<2x256x8xf32, #tpu.memory_space<vmem>>, vector<1x256x8xf32>
    %223 = vector.shape_cast %222 : vector<1x256x8xf32> to vector<256x8xf32>
    %224 = vector.shape_cast %221 : vector<256x8xf32> to vector<1x256x8xf32>
    tpu.vector_store %arg4[%c1_79, %c0_80, %c0_81], %224 {strides = array<i32>} : memref<2x256x8xf32, #tpu.memory_space<vmem>>, vector<1x256x8xf32>,
    return
  }
}

</mosaic_0001>

<bundles_post_ra>
// kernel: etm_forward.1
= control target key start
LH: loop header
LB: loop body
LE: loop exit
PB: predicated region body
PF: predicated region fallthrough
CT: control target
= control target key end

     0   :  { %vm78_vm0 = vcmask 64512   ;;  %v5530_v3 = vmov 20   ;;  %s5531_s7 = smov 120   ;;  %s5533_s25 = smov 112   ;;  %vm184_vm2 = vcmask 523264   ;;  %vm984_vm3 = vcmask 130048   ;;  %s8369_s1 = inlined_call_operand.vmem [shape: f32[2,64,8], index: 1, kind: input, shape index: {}]   ;;  %s8370_s2 = inlined_call_operand.vmem [shape: f32[16,67], index: 2, kind: input, shape index: {}]   ;;  %s8371_s3 = inlined_call_operand.vmem [shape: f32[16,32], index: 3, kind: input, shape index: {}]   ;;  %s8372_s0 = inlined_call_operand.vmem [shape: f32[2,256,8], index: 0, kind: input, shape index: {}]   ;;  %s8373_s4 = inlined_call_operand.vmem [shape: f32[2,256,8], index: 4, kind: output, shape index: {}]  }
   0x1   :  { %v60_v0 = vld [vmem:[%s8369_s1] sm:$0xff]  ;;  %v61_v1 = vld [vmem:[%s8369_s1 + $0x8] sm:$0xff]  ;;  %vm5574_vm1 = vmpackc.low %vm78_vm0, %vm78_vm0  ;;  %5306 = vset.pattern.permute.xlu0 %v5530_v3  ;;  %v5532_v3 = vmov 21   ;;  %s5534_s26 = smov 96   ;;  %s5535_s27 = smov 77  }
   0x2   :  { %v5037_v4 = vpack.c.bf16 %v61_v1, %v60_v0  ;;  %v62_v5 = vld [vmem:[%s8369_s1 + $0x10] sm:$0xff]  ;;  %v63_v6 = vld [vmem:[%s8369_s1 + $0x18] sm:$0xff]  ;;  %v5589_v8 = vld [vmem:[%s8370_s2] sm:$0xff]  ;;  %5308 = vset.pattern.permute.xlu1 %v5532_v3  ;;  %s5539_s29 = smov 125  }
   0x3   :  { %v5043_v7 = vpack.c.bf16 %v63_v6, %v62_v5  ;;  %v5594_v9 = vld [vmem:[%s8371_s3] sm:$0xff]  ;;  %4739 = vmatprep.mubr.msk.f32.mxu0 %vm78_vm0, %v5589_v8  ;;  %v65_v11 = vld [vmem:[%s8369_s1 + $0x28] sm:$0xff]  ;;  %274 = vrot.lane.b32.xlu1 %v5589_v8, %s5531_s7  ;;  %v66_v15 = vld [vmem:[%s8369_s1 + $0x30] sm:$0xff] }
   0x4   :  { %5039 = vmatprep.subr.msk.bf16.mxu0 %vm5574_vm1, %v5037_v4  ;;  %5062 = vmatprep.subr.bf16.mxu1 %v5037_v4  ;;  %v64_v10 = vld [vmem:[%s8369_s1 + $0x20] sm:$0xff]  ;;  %v5612_v12 = vld [vmem:[%s8371_s3 + $0x8] sm:$0xff]  ;;  %v67_v16 = vld [vmem:[%s8369_s1 + $0x38] sm:$0xff] }
   0x5   :  { %5042 = vmatpush3.bf16.xpose.msk.msra.mxu0 %vm5574_vm1, %v5037_v4  ;;  %70 = vperm.xlu0 %5306, %v5594_v9   ;;  %v5049_v13 = vpack.c.bf16 %v65_v11, %v64_v10  ;;  %v5619_v14 = vld [vmem:[%s8370_s2 + $0x8] sm:$0xff]  ;;  %v5055_v17 = vpack.c.bf16 %v67_v16, %v66_v15  ;;  %v5645_v18 = vld [vmem:[%s8372_s0 + $0x80] sm:$0xff]  ;;  %v5674_v24 = vld [vmem:[%s8372_s0 + $0x90] sm:$0xff] }
   0x6   :  { %5045 = vmatprep.subr.msk.bf16.mxu0 %vm5574_vm1, %v5043_v7  ;;  %5064 = vmatpush3.bf16.msra.mxu1 %v5037_v4  ;;  %v5650_v19 = vld [vmem:[%s8372_s0 + $0x88] sm:$0xff]  ;;  %v5657_v21 = vld [vmem:[%s8372_s0] sm:$0xff]  ;;  %v5679_v25 = vld [vmem:[%s8372_s0 + $0x98] sm:$0xff] }
   0x7   :  { %5066 = vmatprep.subr.bf16.mxu1 %v5043_v7  ;;  %276 = vrot.lane.b32.xlu1 %v5619_v14, %s5531_s7  ;;  %v5077_v20 = vpack.c.bf16 %v5650_v19, %v5645_v18  ;;  %v5662_v22 = vld [vmem:[%s8372_s0 + $0x8] sm:$0xff]  ;;  %v5683_v26 = vpack.c.bf16 %v5679_v25, %v5674_v24  ;;  %v5688_v27 = vld [vmem:[%s8372_s0 + $0x10] sm:$0xff]  ;;  %v5693_v28 = vld [vmem:[%s8372_s0 + $0x18] sm:$0xff] }
   0x8   :  { %v5666_v23 = vpack.c.bf16 %v5662_v22, %v5657_v21  ;;  %v5697_v29 = vpack.c.bf16 %v5693_v28, %v5688_v27  ;;  %v5704_v30 = vld [vmem:[%s8372_s0 + $0xa0] sm:$0xff]  ;;  %v5709_v31 = vld [vmem:[%s8372_s0 + $0xa8] sm:$0xff]  ;;  %v5734_v36 = vld [vmem:[%s8372_s0 + $0xb0] sm:$0xff] }
   0x9   :  { %75 = vperm.xlu0 %5306, %v5612_v12   ;;  %v5713_v32 = vpack.c.bf16 %v5709_v31, %v5704_v30  ;;  %v5718_v33 = vld [vmem:[%s8372_s0 + $0x20] sm:$0xff]  ;;  %v5723_v34 = vld [vmem:[%s8372_s0 + $0x28] sm:$0xff]  ;;  %v5739_v37 = vld [vmem:[%s8372_s0 + $0xb8] sm:$0xff] }
   0xa   :  { %5068 = vmatpush3.bf16.msra.mxu1 %v5043_v7  ;;  %v5727_v35 = vpack.c.bf16 %v5723_v34, %v5718_v33  ;;  %v5743_v38 = vpack.c.bf16 %v5739_v37, %v5734_v36  ;;  %v5748_v39 = vld [vmem:[%s8372_s0 + $0x30] sm:$0xff]  ;;  %v5753_v40 = vld [vmem:[%s8372_s0 + $0x38] sm:$0xff]  ;;  %v5761_v42 = vld [vmem:[%s8372_s0 + $0xc0] sm:$0xff] }
   0xb   :  { %5070 = vmatprep.subr.bf16.mxu1 %v5049_v13  ;;  %v5098_v41 = vpack.c.bf16 %v5753_v40, %v5748_v39  ;;  %v5766_v43 = vld [vmem:[%s8372_s0 + $0xc8] sm:$0xff]  ;;  %v5773_v45 = vld [vmem:[%s8372_s0 + $0x40] sm:$0xff]  ;;  %v5785_v48 = vld [vmem:[%s8372_s0 + $0xd0] sm:$0xff]  ;;  %271 = vperm.xlu1 %5308, %v5612_v12  }
   0xc   :  { %v5101_v44 = vpack.c.bf16 %v5766_v43, %v5761_v42  ;;  %v5778_v46 = vld [vmem:[%s8372_s0 + $0x48] sm:$0xff]  ;;  %v5790_v49 = vld [vmem:[%s8372_s0 + $0xd8] sm:$0xff]  ;;  %v5797_v51 = vld [vmem:[%s8372_s0 + $0x50] sm:$0xff] }
   0xd   :  { %5048 = vmatpush3.bf16.xpose.msk.msra.mxu0 %vm5574_vm1, %v5043_v7  ;;  %v5104_v47 = vpack.c.bf16 %v5778_v46, %v5773_v45  ;;  %v5107_v50 = vpack.c.bf16 %v5790_v49, %v5785_v48  ;;  %v5802_v52 = vld [vmem:[%s8372_s0 + $0x58] sm:$0xff]  ;;  %v5809_v54 = vld [vmem:[%s8372_s0 + $0xe0] sm:$0xff]  ;;  %v5814_v55 = vld [vmem:[%s8372_s0 + $0xe8] sm:$0xff]  ;;  %5307 = vset.pattern.permute.xlu0 %v5532_v3 }
   0xe   :  { %5051 = vmatprep.subr.msk.bf16.mxu0 %vm5574_vm1, %v5049_v13  ;;  %5072 = vmatpush3.bf16.msra.mxu1 %v5049_v13  ;;  %v5110_v53 = vpack.c.bf16 %v5802_v52, %v5797_v51  ;;  %v5113_v56 = vpack.c.bf16 %v5814_v55, %v5809_v54  ;;  %v5821_v57 = vld [vmem:[%s8372_s0 + $0x60] sm:$0xff]  ;;  %v5826_v58 = vld [vmem:[%s8372_s0 + $0x68] sm:$0xff]  ;;  %v58_v60 = vld [vmem:[%s8372_s0 + $0xf0] sm:$0xff] }
   0xf   :  { %5074 = vmatprep.subr.bf16.mxu1 %v5055_v17  ;;  %v5116_v59 = vpack.c.bf16 %v5826_v58, %v5821_v57  ;;  %v59_v61 = vld [vmem:[%s8372_s0 + $0xf8] sm:$0xff]  ;;  %v5839_v63 = vld [vmem:[%s8372_s0 + $0x70] sm:$0xff]  ;;  %267 = vperm.xlu0 %5307, %v5594_v9  }
  0x10   :  { %v5119_v62 = vpack.c.bf16 %v59_v61, %v58_v60  ;;  %v5844_v0 = vld [vmem:[%s8372_s0 + $0x78] sm:$0xff]  ;;  %534 = vrot.lane.b32.xlu1 %v5589_v8, %s5533_s25 }
  0x11   :  { %v5122_v1 = vpack.c.bf16 %v5844_v0, %v5839_v63 }
  0x12   :  { %5076 = vmatpush3.bf16.msra.mxu1 %v5055_v17 }
  0x13   :  { %5079 = vmatprep.subr.msk.bf16.mxu1 %vm5574_vm1, %v5077_v20  ;;  %766 = vrot.lane.b32.xlu0 %v5589_v8, %s5534_s26 }
  0x14   :  { %850 = vrot.lane.b32.xlu1 %v5589_v8, %s5535_s27 }
  0x15   :  { %5054 = vmatpush3.bf16.xpose.msk.msra.mxu0 %vm5574_vm1, %v5049_v13 }
  0x16   :  { %5057 = vmatprep.subr.msk.bf16.mxu0 %vm5574_vm1, %v5055_v17 }
  0x1d   :  { %5060 = vmatpush3.bf16.xpose.msk.msra.mxu0 %vm5574_vm1, %v5055_v17 }
  0x1e   :  { %5126 = vmatprep.subr.bf16.mxu0 %v5077_v20 }
  0x24   :  { %4740 = vmatmul.mubr.msk.f32.vlgmr.msra.gmra.mrb[0].mxu0 %vm78_vm0, %v5619_v14 }
  0x25   :  { %5128 = vmatpush3.bf16.msra.mxu0 %v5666_v23 }
  0x26   :  { %5130 = vmatprep.subr.bf16.mxu0 %v5683_v26 }
  0x29   :  { %5132 = vmatpush3.bf16.msra.mxu0 %v5697_v29 }
  0x2a   :  { %5134 = vmatprep.subr.bf16.mxu0 %v5713_v32 }
  0x2d   :  { %5136 = vmatpush3.bf16.msra.mxu0 %v5727_v35 }
  0x2e   :  { %5138 = vmatprep.subr.bf16.mxu0 %v5743_v38 }
  0x31   :  { %5140 = vmatpush3.bf16.msra.mxu0 %v5098_v41 }
  0x32   :  { %5142 = vmatprep.subr.bf16.mxu0 %v5101_v44 }
  0x35   :  { %5144 = vmatpush3.bf16.msra.mxu0 %v5104_v47 }
  0x36   :  { %5146 = vmatprep.subr.bf16.mxu0 %v5107_v50 }
  0x39   :  { %5148 = vmatpush3.bf16.msra.mxu0 %v5110_v53 }
  0x3a   :  { %5150 = vmatprep.subr.bf16.mxu0 %v5113_v56 }
  0x3d   :  { %5152 = vmatpush3.bf16.msra.mxu0 %v5116_v59 }
  0x3e   :  { %5154 = vmatprep.subr.bf16.mxu0 %v5119_v62 }
  0x41   :  { %5156 = vmatpush3.bf16.msra.mxu0 %v5122_v1 }
  0x75   :  { %v5858_v12 = vpop.permute.xlu1 %274 }
  0x76   :  { %8440 = vst [vmem:[#allocation2_spill] sm:$0xff] %v5858_v12 }
  0x79   :  { %v5898_v9 = vpop.permute.xlu1 %276 }
  0x7a   :  { %8441 = vst [vmem:[#allocation3_spill] sm:$0xff] %v5898_v9 }
  0x84   :  { %v5852_v4 = vpop.permute.xlu0 %70 }
  0x88   :  { %v5854_v7 = vpop.permute.xlu0 %75 }
  0x8a   :  { %v5902_v13 = vpop.permute.xlu1 %271 }
  0x8b   :  { %8442 = vst [vmem:[#allocation4_spill] sm:$0xff] %v5902_v13 }
  0x8e   :  { %v5904_v15 = vpop.permute.xlu0 %267  ;;  %v5906_v16 = vpop.permute.xlu1 %534 }
  0x8f   :  { %8443 = vst [vmem:[#allocation5_spill] sm:$0xff] %v5904_v15  ;;  %8444 = vst [vmem:[#allocation6_spill] sm:$0xff] %v5906_v16  ;;  %4761 = vmatprep.subr.mxu0 %v5906_v16 }
  0x92   :  { %v5909_v17 = vpop.permute.xlu0 %766 }
  0x93   :  { %8445 = vst [vmem:[#allocation7_spill] sm:$0xff] %v5909_v17 }
  0xf7   :  { %v4741_v5 = vpop.f32.mrb[0].mxu0 }
  0xf8   :  { %v175_v6 = vpop.f32.mrb[1].mxu0  ;;  %v181_v11 = vadd.f32 %v4741_v5, %v5854_v7 }
  0xf9   :  { %v176_v10 = vadd.f32 %v175_v6, %v5852_v4 }
  0xfb   :  { %4758 = vmatprep.mubr.msk.f32.mxu1 %vm184_vm2, %v176_v10 }
  0xfc   :  { %4759 = vmatmul.mubr.msk.f32.vlgmr.msra.gmra.mrb[0].mxu1 %vm184_vm2, %v181_v11 }
  0xfd   :  { %5082 = vmatpush3.bf16.xpose.msk.msra.mxu1 %vm5574_vm1, %v5666_v23  ;;  %4433 = vmatprep.mubr.msk.f32.mxu1 %vm78_vm0, %v5858_v12 }
  0xfe   :  { %5085 = vmatprep.subr.msk.bf16.mxu1 %vm5574_vm1, %v5683_v26 }
 0x105   :  { %5088 = vmatpush3.bf16.xpose.msk.msra.mxu1 %vm5574_vm1, %v5697_v29  ;;  %v4224_v29 = vld [vmem:[%s8369_s1 + $0x40] sm:$0xff] }
 0x106   :  { %5091 = vmatprep.subr.msk.bf16.mxu1 %vm5574_vm1, %v5713_v32  ;;  %v4225_v32 = vld [vmem:[%s8369_s1 + $0x48] sm:$0xff] }
 0x10d   :  { %5094 = vmatpush3.bf16.xpose.msk.msra.mxu1 %vm5574_vm1, %v5727_v35 }
 0x10e   :  { %5097 = vmatprep.subr.msk.bf16.mxu1 %vm5574_vm1, %v5743_v38 }
 0x115   :  { %5100 = vmatpush3.bf16.xpose.msk.msra.mxu1 %vm5574_vm1, %v5098_v41 }
 0x116   :  { %5103 = vmatprep.subr.msk.bf16.mxu1 %vm5574_vm1, %v5101_v44 }
 0x11d   :  { %5106 = vmatpush3.bf16.xpose.msk.msra.mxu1 %vm5574_vm1, %v5104_v47 }
 0x11e   :  { %5109 = vmatprep.subr.msk.bf16.mxu1 %vm5574_vm1, %v5107_v50  ;;  %v4227_v50 = vld [vmem:[%s8369_s1 + $0x58] sm:$0xff] }
 0x125   :  { %5112 = vmatpush3.bf16.xpose.msk.msra.mxu1 %vm5574_vm1, %v5110_v53 }
 0x126   :  { %5115 = vmatprep.subr.msk.bf16.mxu1 %vm5574_vm1, %v5113_v56 }
 0x12d   :  { %5118 = vmatpush3.bf16.xpose.msk.msra.mxu1 %vm5574_vm1, %v5116_v59 }
 0x12e   :  { %5121 = vmatprep.subr.msk.bf16.mxu1 %vm5574_vm1, %v5119_v62 }
 0x135   :  { %5124 = vmatpush3.bf16.xpose.msk.msra.mxu1 %vm5574_vm1, %v5122_v1 }
 0x136   :  { %5293 = vmatprep.subr.mxu1 %v5906_v16 }
 0x13c   :  { %4434 = vmatmul.mubr.msk.f32.vlgmr.msra.gmra.mrb[2].mxu1 %vm78_vm0, %v5858_v12 }
 0x13d   :  { %4435 = vmatprep.mubr.msk.f32.mxu1 %vm78_vm0, %v5898_v9  ;;  %5294 = vmatpush3.msra.mxu1 %v5906_v16 }
 0x13e   :  { %4811 = vmatprep.subr.mxu1 %v5909_v17 }
 0x140   :  { %4436 = vmatmul.mubr.msk.f32.gmra.mrb[4].mxu1 %vm78_vm0, %v5898_v9 }
 0x141   :  { %4799 = vmatprep.mubr.msk.f32.mxu1 %vm78_vm0, %v5761_v42  ;;  %v5946_v42 = vpack.c.bf16 %v4225_v32, %v4224_v29 }
 0x144   :  { %4800 = vmatmul.mubr.msk.f32.vlgmr.msra.gmra.mrb[6].mxu1 %vm78_vm0, %v5766_v43 }
 0x145   :  { %4802 = vmatprep.mubr.msk.f32.mxu1 %vm78_vm0, %v5785_v48  ;;  %4812 = vmatpush3.msra.mxu1 %v5909_v17 }
 0x148   :  { %4803 = vmatmul.mubr.msk.f32.gmra.mrb[8].mxu1 %vm78_vm0, %v5790_v49  ;;  %v4226_v49 = vld [vmem:[%s8369_s1 + $0x50] sm:$0xff] }
 0x149   :  { %4805 = vmatprep.mubr.msk.f32.mxu1 %vm78_vm0, %v5809_v54 }
 0x14c   :  { %4806 = vmatmul.mubr.msk.f32.gmra.mrb[10].mxu1 %vm78_vm0, %v5814_v55  ;;  %v5171_v55 = vpack.c.bf16 %v4227_v50, %v4226_v49 }
 0x14d   :  { %4808 = vmatprep.mubr.msk.f32.mxu1 %vm78_vm0, %v58_v60 }
 0x150   :  { %4809 = vmatmul.mubr.msk.f32.gmra.mrb[12].mxu1 %vm78_vm0, %v59_v61 }
 0x1cf   :  { %v4760_v20 = vpop.f32.mrb[0].mxu1 }
 0x1d0   :  { %v257_v23 = vpop.f32.mrb[1].mxu1 }
 0x1d1   :  { %4813 = vmatprep.mubr.msk.f32.mxu1 %vm78_vm0, %v257_v23 }
 0x1d2   :  { %4814 = vmatmul.mubr.msk.f32.vlgmr.msra.gmra.mrb[14].mxu1 %vm78_vm0, %v4760_v20 }
 0x20f   :  { %v444_v26 = vpop.f32.mrb[2].mxu1 }
 0x210   :  { %v446_v35 = vpop.f32.mrb[3].mxu1  ;;  %v445_v41 = vadd.f32 %v444_v26, %v5904_v15 }
 0x211   :  { %v447_v38 = vadd.f32 %v446_v35, %v5904_v15  ;;  %v6252_v15 = vld [vmem:[%s8372_s0 + $0x138] sm:$0xff] }
 0x212   :  { %8467 = vst [vmem:[#allocation29_spill] sm:$0xff] %v6252_v15 }
 0x213   :  { %v450_v43 = vpop.f32.mrb[4].mxu1  ;;  %519 = vmatprep.mubr.f32.mxu0 %v447_v38 }
 0x214   :  { %v452_v44 = vpop.f32.mrb[5].mxu1  ;;  %520 = vmatmul.mubr.f32.vlgmr.msra.gmra.mrb[2].mxu0 %v445_v41  ;;  %v451_v48 = vadd.f32 %v450_v43, %v5902_v13 }
 0x215   :  { %v453_v47 = vadd.f32 %v452_v44, %v5902_v13  ;;  %4762 = vmatpush3.msra.mxu0 %v5906_v16  ;;  %v6247_v13 = vld [vmem:[%s8372_s0 + $0x130] sm:$0xff] }
 0x216   :  { %5167 = vmatprep.subr.msk.bf16.mxu0 %vm5574_vm1, %v5946_v42  ;;  %8466 = vst [vmem:[#allocation28_spill] sm:$0xff] %v6247_v13 }
 0x217   :  { %524 = vmatprep.mubr.f32.mxu0 %v453_v47  ;;  %v5960_v53 = vpop.f32.mrb[6].mxu1 }
 0x218   :  { %525 = vmatmul.mubr.f32.gmra.mrb[4].mxu0 %v451_v48  ;;  %v5962_v54 = vpop.f32.mrb[7].mxu1 }
 0x219   :  { %4763 = vmatprep.mubr.msk.f32.mxu0 %vm78_vm0, %v5657_v21  ;;  %v4228_v21 = vld [vmem:[%s8369_s1 + $0x60] sm:$0xff] }
 0x21b   :  { %v5966_v56 = vpop.f32.mrb[8].mxu1 }
 0x21c   :  { %4764 = vmatmul.mubr.msk.f32.vlgmr.msra.gmra.mrb[6].mxu0 %vm78_vm0, %v5662_v22  ;;  %v5970_v59 = vpop.f32.mrb[9].mxu1  ;;  %v4229_v22 = vld [vmem:[%s8369_s1 + $0x68] sm:$0xff] }
 0x21d   :  { %4766 = vmatprep.mubr.msk.f32.mxu0 %vm78_vm0, %v5688_v27  ;;  %5170 = vmatpush3.bf16.xpose.msk.msra.mxu0 %vm5574_vm1, %v5946_v42  ;;  %v5177_v61 = vpack.c.bf16 %v4229_v22, %v4228_v21  ;;  %v6155_v22 = vld [vmem:[%s8372_s0 + $0x100] sm:$0xff] }
 0x21e   :  { %5173 = vmatprep.subr.msk.bf16.mxu0 %vm5574_vm1, %v5171_v55  ;;  %8454 = vst [vmem:[#allocation16_spill] sm:$0xff] %v6155_v22 }
 0x21f   :  { %v5985_v60 = vpop.f32.mrb[10].mxu1 }
 0x220   :  { %8446 = vst [vmem:[#allocation8_spill] sm:$0xff] %v5985_v60  ;;  %4767 = vmatmul.mubr.msk.f32.gmra.mrb[8].mxu0 %vm78_vm0, %v5693_v28  ;;  %v5989_v27 = vpop.f32.mrb[11].mxu1  ;;  %v4230_v28 = vld [vmem:[%s8369_s1 + $0x70] sm:$0xff] }
 0x221   :  { %8447 = vst [vmem:[#allocation9_spill] sm:$0xff] %v5989_v27  ;;  %4769 = vmatprep.mubr.msk.f32.mxu0 %vm78_vm0, %v5718_v33  ;;  %v4231_v33 = vld [vmem:[%s8369_s1 + $0x78] sm:$0xff] }
 0x223   :  { %v5993_v62 = vpop.f32.mrb[12].mxu1 }
 0x224   :  { %8448 = vst [vmem:[#allocation10_spill] sm:$0xff] %v5993_v62  ;;  %4770 = vmatmul.mubr.msk.f32.gmra.mrb[10].mxu0 %vm78_vm0, %v5723_v34  ;;  %v5997_v1 = vpop.f32.mrb[13].mxu1  ;;  %v5536_v34 = vmov 2  }
 0x225   :  { %8449 = vst [vmem:[#allocation11_spill] sm:$0xff] %v5997_v1  ;;  %4772 = vmatprep.mubr.msk.f32.mxu0 %vm78_vm0, %v5748_v39  ;;  %5176 = vmatpush3.bf16.xpose.msk.msra.mxu0 %vm5574_vm1, %v5171_v55  ;;  %v5183_v39 = vpack.c.bf16 %v4231_v33, %v4230_v28  ;;  %v6165_v33 = vld [vmem:[%s8372_s0 + $0x190] sm:$0xff] }
 0x226   :  { %5179 = vmatprep.subr.msk.bf16.mxu0 %vm5574_vm1, %v5177_v61  ;;  %5310 = vset.pattern.permute.xlu1 %v5536_v34  ;;  %8456 = vst [vmem:[#allocation18_spill] sm:$0xff] %v6165_v33 }
 0x227   :  { %5309 = vset.pattern.permute.xlu0 %v5536_v34 }
 0x228   :  { %4773 = vmatmul.mubr.msk.f32.gmra.mrb[12].mxu0 %vm78_vm0, %v5753_v40  ;;  %v8374_v40 = vmov 1  }
 0x229   :  { %4775 = vmatprep.mubr.msk.f32.mxu0 %vm78_vm0, %v5773_v45 }
 0x22c   :  { %4776 = vmatmul.mubr.msk.f32.gmra.mrb[14].mxu0 %vm78_vm0, %v5778_v46 }
 0x22d   :  { %4778 = vmatprep.mubr.msk.f32.mxu0 %vm78_vm0, %v5797_v51  ;;  %5182 = vmatpush3.bf16.xpose.msk.msra.mxu0 %vm5574_vm1, %v5177_v61 }
 0x22e   :  { %5185 = vmatprep.subr.msk.bf16.mxu0 %vm5574_vm1, %v5183_v39 }
 0x230   :  { %4779 = vmatmul.mubr.msk.f32.gmra.mrb[16].mxu0 %vm78_vm0, %v5802_v52 }
 0x231   :  { %4781 = vmatprep.mubr.msk.f32.mxu0 %vm78_vm0, %v5821_v57 }
 0x234   :  { %4782 = vmatmul.mubr.msk.f32.gmra.mrb[18].mxu0 %vm78_vm0, %v5826_v58 }
 0x235   :  { %4784 = vmatprep.mubr.msk.f32.mxu0 %vm78_vm0, %v5839_v63  ;;  %5188 = vmatpush3.bf16.xpose.msk.msra.mxu0 %vm5574_vm1, %v5183_v39 }
 0x236   :  { %5190 = vmatprep.subr.bf16.mxu0 %v5946_v42 }
 0x238   :  { %4785 = vmatmul.mubr.msk.f32.gmra.mrb[20].mxu0 %vm78_vm0, %v5844_v0 }
 0x239   :  { %4787 = vmatprep.mubr.msk.f32.mxu0 %vm78_vm0, %v5645_v18  ;;  %v6057_v18 = vpop.permute.xlu1 %850 }
 0x23a   :  { %8450 = vst [vmem:[#allocation12_spill] sm:$0xff] %v6057_v18  ;;  %4816 = vmatprep.subr.mxu1 %v6057_v18 }
 0x23b   :  { %4817 = vmatpush3.msra.mxu1 %v6057_v18 }
 0x23c   :  { %4788 = vmatmul.mubr.msk.f32.gmra.mrb[22].mxu0 %vm78_vm0, %v5650_v19 }
 0x23d   :  { %4790 = vmatprep.mubr.msk.f32.mxu0 %vm78_vm0, %v5674_v24  ;;  %v6078_v24 = vld [vmem:[%s8371_s3 + $0x1] ss:$0 sm:$0xff] }
 0x23e   :  { %8453 = vst [vmem:[#allocation15_spill] sm:$0xff] %v6078_v24 }
 0x240   :  { %4791 = vmatmul.mubr.msk.f32.gmra.mrb[24].mxu0 %vm78_vm0, %v5679_v25 }
 0x241   :  { %4793 = vmatprep.mubr.msk.f32.mxu0 %vm78_vm0, %v5704_v30 }
 0x244   :  { %4794 = vmatmul.mubr.msk.f32.gmra.mrb[26].mxu0 %vm78_vm0, %v5709_v31 }
 0x245   :  { %4796 = vmatprep.mubr.msk.f32.mxu0 %vm78_vm0, %v5734_v36 }
 0x248   :  { %4797 = vmatmul.mubr.msk.f32.gmra.mrb[28].mxu0 %vm78_vm0, %v5739_v37  ;;  %v8375_v37 = vmov 0  }
 0x249   :  { %4896 = vmatprep.mubr.msk.f32.mxu0 %vm78_vm0, %v5589_v8  ;;  %v6064_v8 = vld [vmem:[%s8372_s0 + $0x180] sm:$0xff] }
 0x24a   :  { %8451 = vst [vmem:[#allocation13_spill] sm:$0xff] %v6064_v8 }
 0x24c   :  { %4897 = vmatmul.mubr.msk.f32.vlgmr.msra.gmra.mrb[30].mxu0 %vm78_vm0, %v5619_v14  ;;  %v6069_v14 = vld [vmem:[%s8372_s0 + $0x188] sm:$0xff] }
 0x24d   :  { %5192 = vmatpush3.bf16.msra.mxu0 %v5946_v42  ;;  %8452 = vst [vmem:[#allocation14_spill] sm:$0xff] %v6069_v14  ;;  %v6073_v19 = vpack.c.bf16 %v6069_v14, %v6064_v8  ;;  %v6287_v14 = vld [vmem:[%s8372_s0 + $0x1d0] sm:$0xff] }
 0x24e   :  { %5194 = vmatprep.subr.bf16.mxu0 %v5171_v55  ;;  %8472 = vst [vmem:[#allocation34_spill] sm:$0xff] %v6287_v14 }
 0x251   :  { %5196 = vmatpush3.bf16.msra.mxu0 %v5171_v55 }
 0x252   :  { %5198 = vmatprep.subr.bf16.mxu0 %v5177_v61 }
 0x255   :  { %5200 = vmatpush3.bf16.msra.mxu0 %v5177_v61  ;;  %v6160_v61 = vld [vmem:[%s8372_s0 + $0x108] sm:$0xff] }
 0x256   :  { %5202 = vmatprep.subr.bf16.mxu0 %v5183_v39  ;;  %8455 = vst [vmem:[#allocation17_spill] sm:$0xff] %v6160_v61 }
 0x259   :  { %5204 = vmatpush3.bf16.msra.mxu0 %v5183_v39 }
 0x25a   :  { %5254 = vmatprep.subr.bf16.mxu0 %v6073_v19 }
 0x2a5   :  { %v4815_v25 = vpop.f32.mrb[14].mxu1 }
 0x2a6   :  { %v6082_v30 = vadd.f32 %v4815_v25, %v6078_v24  ;;  %v841_v31 = vpop.f32.mrb[15].mxu1 }
 0x2a7   :  { %v6085_v36 = vadd.f32 %v6078_v24, %v841_v31  ;;  %v6175_v31 = vpack.c.bf16 %v6160_v61, %v6155_v22 }
 0x2a8   :  { %963 = vperm.xlu1 %5310, %v6082_v30  }
 0x2a9   :  { %959 = vperm.xlu0 %5309, %v6085_v36  }
 0x2ac   :  { %5312 = vset.pattern.permute.xlu1 %v8375_v37 }
 0x2ad   :  { %936 = vperm.xlu1 %5312, %v6085_v36   ;;  %5311 = vset.pattern.permute.xlu0 %v8375_v37  ;;  %v6232_v37 = vld [vmem:[%s8372_s0 + $0x1b8] sm:$0xff] }
 0x2ae   :  { %941 = vperm.xlu0 %5311, %v6082_v30   ;;  %8465 = vst [vmem:[#allocation27_spill] sm:$0xff] %v6232_v37 }
 0x2b1   :  { %5313 = vset.pattern.permute.xlu1 %v8374_v40  ;;  %v6227_v40 = vld [vmem:[%s8372_s0 + $0x1b0] sm:$0xff] }
 0x2b2   :  { %947 = vperm.xlu1 %5313, %v6085_v36   ;;  %5315 = vset.pattern.permute.xlu0 %v5536_v34  ;;  %8464 = vst [vmem:[#allocation26_spill] sm:$0xff] %v6227_v40  ;;  %v6242_v18 = vpack.c.bf16 %v6232_v37, %v6227_v40  ;;  %v6262_v37 = vld [vmem:[%s8372_s0 + $0x1c8] sm:$0xff]  ;;  %v6267_v40 = vpack.c.bf16 %v6252_v15, %v6247_v13  ;;  %v6307_v15 = vld [vmem:[%s8372_s0 + $0x150] sm:$0xff]  ;;  %v6312_v13 = vld [vmem:[%s8372_s0 + $0x158] sm:$0xff] }
 0x2b3   :  { %8469 = vst [vmem:[#allocation31_spill] sm:$0xff] %v6262_v37  ;;  %8474 = vst [vmem:[#allocation36_spill] sm:$0xff] %v6307_v15 }
 0x2b4   :  { %8475 = vst [vmem:[#allocation37_spill] sm:$0xff] %v6312_v13 }
 0x2b6   :  { %951 = vperm.xlu1 %5313, %v6082_v30  }
 0x2ba   :  { %5314 = vset.pattern.permute.xlu1 %v5536_v34  ;;  %v6170_v34 = vld [vmem:[%s8372_s0 + $0x198] sm:$0xff] }
 0x2bb   :  { %8457 = vst [vmem:[#allocation19_spill] sm:$0xff] %v6170_v34 }
 0x2e7   :  { %v4469_v45 = vpop.f32.mrb[2].mxu0 }
 0x2e8   :  { %v4470_v46 = vpop.f32.mrb[3].mxu0 }
 0x2e9   :  { %v6096_v51 = vadd.f32 %v4470_v46, %v4469_v45  ;;  %v6180_v46 = vpack.c.bf16 %v6170_v34, %v6165_v33  ;;  %v6277_v34 = vld [vmem:[%s8372_s0 + $0x140] sm:$0xff]  ;;  %v6282_v33 = vld [vmem:[%s8372_s0 + $0x148] sm:$0xff] }
 0x2ea   :  { %8470 = vst [vmem:[#allocation32_spill] sm:$0xff] %v6277_v34  ;;  %8471 = vst [vmem:[#allocation33_spill] sm:$0xff] %v6282_v33 }
 0x2eb   :  { %v4472_v52 = vpop.f32.mrb[4].mxu0  ;;  %4818 = vmatprep.mubr.msk.f32.mxu1 %vm78_vm0, %v6096_v51 }
 0x2ec   :  { %v4473_v57 = vpop.f32.mrb[5].mxu0 }
 0x2ed   :  { %v6100_v58 = vadd.f32 %v4473_v57, %v4472_v52  ;;  %v6185_v52 = vld [vmem:[%s8372_s0 + $0x110] sm:$0xff]  ;;  %v6190_v57 = vld [vmem:[%s8372_s0 + $0x118] sm:$0xff] }
 0x2ee   :  { %8458 = vst [vmem:[#allocation20_spill] sm:$0xff] %v6185_v52  ;;  %8459 = vst [vmem:[#allocation21_spill] sm:$0xff] %v6190_v57 }
 0x2ef   :  { %4819 = vmatmul.mubr.msk.f32.vlgmr.msra.gmra.mrb[16].mxu1 %vm78_vm0, %v6100_v58  ;;  %v6104_v63 = vpop.f32.mrb[6].mxu0 }
 0x2f0   :  { %v6106_v0 = vpop.f32.mrb[7].mxu0 }
 0x2f3   :  { %v6108_v3 = vpop.f32.mrb[8].mxu0 }
 0x2f4   :  { %v6110_v5 = vpop.f32.mrb[9].mxu0 }
 0x2f5   :  { %v8501_v2 = vld [vmem:[#allocation20_spill] sm:$0xff] }
 0x2f7   :  { %v6112_v6 = vpop.f32.mrb[10].mxu0 }
 0x2f8   :  { %v6114_v10 = vpop.f32.mrb[11].mxu0 }
 0x2fb   :  { %v6116_v11 = vpop.f32.mrb[12].mxu0 }
 0x2fc   :  { %v6118_v20 = vpop.f32.mrb[13].mxu0 }
 0x2ff   :  { %v6120_v23 = vpop.f32.mrb[14].mxu0 }
 0x300   :  { %v6122_v26 = vpop.f32.mrb[15].mxu0 }
 0x303   :  { %v6124_v29 = vpop.f32.mrb[16].mxu0 }
 0x304   :  { %v6126_v32 = vpop.f32.mrb[17].mxu0 }
 0x307   :  { %v6128_v35 = vpop.f32.mrb[18].mxu0 }
 0x308   :  { %v6130_v38 = vpop.f32.mrb[19].mxu0 }
 0x30b   :  { %v6132_v41 = vpop.f32.mrb[20].mxu0 }
 0x30c   :  { %v6134_v42 = vpop.f32.mrb[21].mxu0 }
 0x30f   :  { %v6136_v43 = vpop.f32.mrb[22].mxu0 }
 0x310   :  { %v6138_v44 = vpop.f32.mrb[23].mxu0 }
 0x313   :  { %v6140_v47 = vpop.f32.mrb[24].mxu0 }
 0x314   :  { %v6142_v48 = vpop.f32.mrb[25].mxu0 }
 0x317   :  { %v6144_v49 = vpop.f32.mrb[26].mxu0 }
 0x318   :  { %v6146_v50 = vpop.f32.mrb[27].mxu0 }
 0x31b   :  { %v6148_v55 = vpop.f32.mrb[28].mxu0 }
 0x31c   :  { %v6150_v21 = vpop.f32.mrb[29].mxu0 }
 0x31f   :  { %v4898_v28 = vpop.f32.mrb[30].mxu0 }
 0x320   :  { %v2213_v39 = vpop.f32.mrb[31].mxu0  ;;  %v2219_v45 = vadd.f32 %v4898_v28, %v5854_v7  ;;  %v6201_v7 = vld [vmem:[%s8372_s0 + $0x1a8] sm:$0xff]  ;;  %v6207_v28 = vpack.c.bf16 %v6190_v57, %v6185_v52  ;;  %v6367_v57 = vld [vmem:[%s8372_s0 + $0x170] sm:$0xff]  ;;  %v6372_v52 = vld [vmem:[%s8372_s0 + $0x178] sm:$0xff] }
 0x321   :  { %v2214_v25 = vadd.f32 %v2213_v39, %v5852_v4  ;;  %v6196_v4 = vld [vmem:[%s8372_s0 + $0x1a0] sm:$0xff]  ;;  %8461 = vst [vmem:[#allocation23_spill] sm:$0xff] %v6201_v7  ;;  %8484 = vst [vmem:[#allocation46_spill] sm:$0xff] %v6367_v57 }
 0x322   :  { %8460 = vst [vmem:[#allocation22_spill] sm:$0xff] %v6196_v4  ;;  %v6212_v39 = vpack.c.bf16 %v6201_v7, %v6196_v4  ;;  %v6257_v7 = vld [vmem:[%s8372_s0 + $0x1c0] sm:$0xff]  ;;  %8485 = vst [vmem:[#allocation47_spill] sm:$0xff] %v6372_v52 }
 0x323   :  { %4915 = vmatprep.mubr.msk.f32.mxu0 %vm184_vm2, %v2214_v25  ;;  %v6217_v25 = vld [vmem:[%s8372_s0 + $0x120] sm:$0xff]  ;;  %8468 = vst [vmem:[#allocation30_spill] sm:$0xff] %v6257_v7  ;;  %v6272_v4 = vpack.c.bf16 %v6262_v37, %v6257_v7  ;;  %v6292_v37 = vld [vmem:[%s8372_s0 + $0x1d8] sm:$0xff]  ;;  %v6297_v7 = vpack.c.bf16 %v6282_v33, %v6277_v34 }
 0x324   :  { %4916 = vmatmul.mubr.msk.f32.vlgmr.msra.gmra.mrb[32].mxu0 %vm184_vm2, %v2219_v45  ;;  %8462 = vst [vmem:[#allocation24_spill] sm:$0xff] %v6217_v25  ;;  %v6222_v45 = vld [vmem:[%s8372_s0 + $0x128] sm:$0xff]  ;;  %8473 = vst [vmem:[#allocation35_spill] sm:$0xff] %v6292_v37  ;;  %v6302_v8 = vpack.c.bf16 %v6292_v37, %v6287_v14  ;;  %v6317_v33 = vld [vmem:[%s8372_s0 + $0x1e0] sm:$0xff]  ;;  %v6327_v14 = vpack.c.bf16 %v6312_v13, %v6307_v15 }
 0x325   :  { %5256 = vmatpush3.bf16.msra.mxu0 %v6175_v31  ;;  %8463 = vst [vmem:[#allocation25_spill] sm:$0xff] %v6222_v45  ;;  %v6237_v24 = vpack.c.bf16 %v6222_v45, %v6217_v25  ;;  %8476 = vst [vmem:[#allocation38_spill] sm:$0xff] %v6317_v33  ;;  %v6322_v37 = vld [vmem:[%s8372_s0 + $0x1e8] sm:$0xff]  ;;  %v6337_v45 = vld [vmem:[%s8372_s0 + $0x160] sm:$0xff] }
 0x326   :  { %5258 = vmatprep.subr.bf16.mxu0 %v6180_v46  ;;  %8477 = vst [vmem:[#allocation39_spill] sm:$0xff] %v6322_v37  ;;  %v6332_v34 = vpack.c.bf16 %v6322_v37, %v6317_v33  ;;  %8478 = vst [vmem:[#allocation40_spill] sm:$0xff] %v6337_v45  ;;  %v6342_v25 = vld [vmem:[%s8372_s0 + $0x168] sm:$0xff]  ;;  %v6347_v13 = vld [vmem:[%s8372_s0 + $0x1f0] sm:$0xff] }
 0x327   :  { %8479 = vst [vmem:[#allocation41_spill] sm:$0xff] %v6342_v25  ;;  %8480 = vst [vmem:[#allocation42_spill] sm:$0xff] %v6347_v13  ;;  %v6352_v37 = vld [vmem:[%s8372_s0 + $0x1f8] sm:$0xff]  ;;  %v6357_v33 = vpack.c.bf16 %v6342_v25, %v6337_v45  ;;  %v6377_v25 = vpack.c.bf16 %v6372_v52, %v6367_v57 }
 0x328   :  { %8481 = vst [vmem:[#allocation43_spill] sm:$0xff] %v6352_v37  ;;  %v6362_v15 = vpack.c.bf16 %v6352_v37, %v6347_v13  ;;  %v964_v37 = vpop.permute.xlu1 %963  ;;  %v960_v45 = vpop.permute.xlu0 %959 }
 0x329   :  { %5260 = vmatpush3.bf16.msra.mxu0 %v6207_v28  ;;  %8482 = vst [vmem:[#allocation44_spill] sm:$0xff] %v6357_v33  ;;  %8486 = vst [vmem:[#allocation48_spill] sm:$0xff] %v6377_v25 }
 0x32a   :  { %5262 = vmatprep.subr.bf16.mxu0 %v6212_v39  ;;  %8483 = vst [vmem:[#allocation45_spill] sm:$0xff] %v6362_v15 }
 0x32c   :  { %v937_v57 = vpop.permute.xlu1 %936 }
 0x32d   :  { %5264 = vmatpush3.bf16.msra.mxu0 %v6237_v24 }
 0x32e   :  { %5266 = vmatprep.subr.bf16.mxu0 %v6242_v18 }
 0x331   :  { %5268 = vmatpush3.bf16.msra.mxu0 %v6267_v40  ;;  %v948_v16 = vpop.permute.xlu1 %947 }
 0x332   :  { %5270 = vmatprep.subr.bf16.mxu0 %v6272_v4 }
 0x335   :  { %5272 = vmatpush3.bf16.msra.mxu0 %v6297_v7 }
 0x336   :  { %5274 = vmatprep.subr.bf16.mxu0 %v6302_v8 }
 0x339   :  { %5276 = vmatpush3.bf16.msra.mxu0 %v6327_v14 }
 0x33a   :  { %5278 = vmatprep.subr.bf16.mxu0 %v6332_v34 }
 0x33d   :  { %5280 = vmatpush3.bf16.msra.mxu0 %v6357_v33 }
 0x33e   :  { %5282 = vmatprep.subr.bf16.mxu0 %v6362_v15 }
 0x341   :  { %5284 = vmatpush3.bf16.msra.mxu0 %v6377_v25  ;;  %v952_v25 = vpop.permute.xlu1 %951 }
 0x342   :  { %4968 = vmatprep.subr.mxu0 %v5909_v17 }
 0x3c2   :  { %v4820_v13 = vpop.f32.mrb[16].mxu1 }
 0x3c3   :  { %v967_v61 = vmul.f32 %v4820_v13, %v964_v37  ;;  %v925_v22 = vpop.f32.mrb[17].mxu1  ;;  %v942_v37 = vpop.permute.xlu0 %941 }
 0x3c4   :  { %v966_v9 = vmul.f32 %v960_v45, %v925_v22  ;;  %v945_v45 = vmul.f32 %v4820_v13, %v942_v37  ;;  %v944_v12 = vmul.f32 %v937_v57, %v925_v22  ;;  %v6398_v13 = vld [vmem:[%s8371_s3] ss:$0 sm:$0xff] }
 0x3c5   :  { %972 = vrot.lane.b32.xlu1 %v967_v61, %s5531_s7  ;;  %v955_v61 = vmul.f32 %v6100_v58, %v952_v25 }
 0x3c6   :  { %970 = vrot.lane.b32.xlu0 %v966_v9, %s5531_s7  ;;  %v954_v9 = vmul.f32 %v6096_v51, %v948_v16  ;;  %v604_v16 = vadd.f32 %v6398_v13, %v6106_v0 }
 0x3c7   :  { %v957_v62 = vadd.f32 %v955_v61, %v945_v45 }
 0x3c9   :  { %982 = vrot.lane.b32.xlu1 %v6082_v30, %s5539_s29  ;;  %v956_v30 = vadd.f32 %v954_v9, %v944_v12 }
 0x3ca   :  { %980 = vrot.lane.b32.xlu0 %v6085_v36, %s5539_s29 }
 0x3f7   :  { %v6388_v52 = vpop.f32.mrb[32].mxu0 }
 0x3f8   :  { %8487 = vst [vmem:[#allocation49_spill] sm:$0xff] %v6388_v52  ;;  %v6390_v17 = vpop.f32.mrb[33].mxu0 }
 0x3f9   :  { %8488 = vst [vmem:[#allocation50_spill] sm:$0xff] %v6390_v17 }
 0x437   :  { %v973_v15 = vpop.permute.xlu1 %972 }
 0x438   :  { %v977_v1 = vadd.f32 %v973_v15, %v957_v62  ;;  %v971_v33 = vpop.permute.xlu0 %970 }
 0x439   :  { %v976_v36 = vadd.f32 %v971_v33, %v956_v30 }
 0x43a   :  { %v979_v60 = vmax.f32 %v977_v1, 0.0 }
 0x43b   :  { %v978_v52 = vmax.f32 %v976_v36, 0.0  ;;  %v983_v12 = vpop.permute.xlu1 %982 }
 0x43c   :  { %v981_v17 = vpop.permute.xlu0 %980 }
 0x43d   :  { %4825 = vmatprep.mubr.msk.f32.mxu1 %vm984_vm3, %v981_v17  ;;  %v5157_v27 = vpack.c.bf16 %v979_v60, %v978_v52 }
 0x43f   :  { %5158 = vmatprep.subr.bf16.mxu1 %v5157_v27 }
 0x440   :  { %5160 = vmatpush3.bf16.msra.mxu1 %v5157_v27 }
 0x443   :  { %4826 = vmatmul.mubr.msk.f32.vlgmr.msra.gmra.mrb[18].mxu1 %vm984_vm3, %v983_v12 }
 0x444   :  { %4832 = vmatprep.mubr.msk.f32.mxu1 %vm984_vm3, %v604_v16 }
 0x516   :  { %v4827_v15 = vpop.f32.mrb[18].mxu1 }
 0x517   :  { %v1055_v62 = vpop.f32.mrb[19].mxu1  ;;  %v1067_v17 = vsel %vm78_vm0, %v4827_v15, 0.0 }
 0x518   :  { %1068 = vadd.xlane.f32.xlu1 %v1067_v17  ;;  %v1064_v60 = vsel %vm78_vm0, %v1055_v62, 0.0 }
 0x519   :  { %1065 = vadd.xlane.f32.xlu0 %v1064_v60 }
 0x5a5   :  { %v1069_v1 = vpop.xlane.xlu1 %1068 }
 0x5a6   :  { %v1072_v51 = vmul.f32 0.125, %v1069_v1  ;;  %v1066_v58 = vpop.xlane.xlu0 %1065  ;;  %v6417_v1 = vld [vmem:[%s8371_s3 + $0x3] ss:$0 sm:$0xff] }
 0x5a7   :  { %v1071_v22 = vmul.f32 0.125, %v1066_v58 }
 0x5a8   :  { %v1074_v33 = vsub.f32 %v4827_v15, %v1072_v51  ;;  %v6411_v15 = vld [vmem:[%s8371_s3 + $0x2] ss:$0 sm:$0xff] }
 0x5a9   :  { %v1073_v0 = vsub.f32 %v1055_v62, %v1071_v22 }
 0x5aa   :  { %v1076_v57 = vmul.f32 %v1074_v33, %v1074_v33 }
 0x5ab   :  { %v1075_v27 = vmul.f32 %v1073_v0, %v1073_v0 }
 0x5ac   :  { %v1080_v25 = vsel %vm78_vm0, %v1076_v57, 0.0  ;;  %v624_v57 = vadd.f32 %v6398_v13, %v6114_v10  ;;  %v654_v10 = vadd.f32 %v6398_v13, %v6126_v32  ;;  %v684_v32 = vadd.f32 %v6398_v13, %v6138_v44 }
 0x5ad   :  { %v1077_v52 = vsel %vm78_vm0, %v1075_v27, 0.0  ;;  %v614_v27 = vadd.f32 %v6398_v13, %v6110_v5  ;;  %v634_v5 = vadd.f32 %v6398_v13, %v6118_v20  ;;  %v664_v20 = vadd.f32 %v6398_v13, %v6130_v38 }
 0x5ae   :  { %1078 = vadd.xlane.f32.xlu0 %v1077_v52  ;;  %v619_v52 = vadd.f32 %v6108_v3, %v6398_v13  ;;  %v644_v3 = vadd.f32 %v6398_v13, %v6122_v26  ;;  %v674_v26 = vadd.f32 %v6398_v13, %v6134_v42  ;;  %v704_v38 = vadd.f32 %v6398_v13, %v6146_v50 }
 0x5af   :  { %v719_v42 = vadd.f32 %v6148_v55, %v6398_v13  ;;  %v729_v44 = vadd.f32 %v5960_v53, %v6398_v13  ;;  %v8493_v55 = vld [vmem:[#allocation45_spill] sm:$0xff] }
 0x5b2   :  { %1081 = vadd.xlane.f32.xlu0 %v1080_v25  ;;  %v8503_v25 = vld [vmem:[#allocation24_spill] sm:$0xff] }
 0x63b   :  { %v1079_v37 = vpop.xlane.xlu0 %1078 }
 0x63c   :  { %v1083_v45 = vmul.f32 0.125, %v1079_v37  ;;  %v8504_v37 = vld [vmem:[#allocation25_spill] sm:$0xff] }
 0x63e   :  { %v1085_v61 = vadd.f32 1e-05, %v1083_v45  ;;  %v8505_v45 = vld [vmem:[#allocation28_spill] sm:$0xff] }
 0x63f   :  { %v1082_v9 = vpop.xlane.xlu0 %1081 }
 0x640   :  { %5320 = vrsqrt.f32 %v1085_v61  ;;  %v1084_v30 = vmul.f32 0.125, %v1082_v9  ;;  %v8506_v61 = vld [vmem:[#allocation29_spill] sm:$0xff]  ;;  %v8507_v9 = vld [vmem:[#allocation32_spill] sm:$0xff] }
 0x642   :  { %v1086_v36 = vadd.f32 1e-05, %v1084_v30  ;;  %v8508_v30 = vld [vmem:[#allocation33_spill] sm:$0xff] }
 0x644   :  { %5322 = vrsqrt.f32 %v1086_v36  ;;  %v8509_v36 = vld [vmem:[#allocation36_spill] sm:$0xff] }
 0x64a   :  { %v5321_v16 = vpop.eup %5320 }
 0x64b   :  { %v1089_v12 = vmul.f32 %v5321_v16, %v1073_v0  ;;  %v8510_v16 = vld [vmem:[#allocation37_spill] sm:$0xff] }
 0x64d   :  { %v1095_v60 = vmul.f32 %v6411_v15, %v1089_v12  ;;  %v8511_v12 = vld [vmem:[#allocation40_spill] sm:$0xff] }
 0x64e   :  { %v5323_v62 = vpop.eup %5322 }
 0x64f   :  { %v1090_v17 = vmul.f32 %v5323_v62, %v1074_v33  ;;  %v6421_v58 = vadd.f32 %v6417_v1, %v1095_v60  ;;  %v609_v33 = vadd.f32 %v6104_v63, %v6398_v13  ;;  %v629_v63 = vadd.f32 %v6112_v6, %v6398_v13  ;;  %v8512_v62 = vld [vmem:[#allocation41_spill] sm:$0xff]  ;;  %v8514_v60 = vld [vmem:[#allocation47_spill] sm:$0xff] }
 0x650   :  { %v649_v6 = vadd.f32 %v6120_v23, %v6398_v13  ;;  %v669_v23 = vadd.f32 %v6128_v35, %v6398_v13  ;;  %v689_v35 = vadd.f32 %v6136_v43, %v6398_v13  ;;  %v724_v43 = vadd.f32 %v6398_v13, %v5962_v54 }
 0x651   :  { %v1096_v51 = vmul.f32 %v6411_v15, %v1090_v17  ;;  %v739_v54 = vadd.f32 %v5966_v56, %v6398_v13  ;;  %v8494_v56 = vld [vmem:[#allocation10_spill] sm:$0xff] }
 0x652   :  { %v8513_v17 = vld [vmem:[#allocation46_spill] sm:$0xff] }
 0x653   :  { %v6424_v22 = vadd.f32 %v6417_v1, %v1096_v51  ;;  %v8515_v51 = vld [vmem:[#allocation13_spill] sm:$0xff] }
 0x655   :  { %v5161_v0 = vpack.c.bf16 %v6424_v22, %v6421_v58 }
 0x657   :  { %5162 = vmatprep.subr.bf16.mxu1 %v5161_v0 }
 0x658   :  { %5164 = vmatpush3.bf16.msra.mxu1 %v5161_v0  ;;  %v8516_v0 = vld [vmem:[#allocation14_spill] sm:$0xff] }
 0x659   :  { %5207 = vmatprep.subr.msk.bf16.mxu1 %vm5574_vm1, %v6073_v19  ;;  %v639_v19 = vadd.f32 %v6116_v11, %v6398_v13  ;;  %v659_v11 = vadd.f32 %v6124_v29, %v6398_v13  ;;  %v679_v29 = vadd.f32 %v6132_v41, %v6398_v13  ;;  %v709_v41 = vadd.f32 %v6144_v49, %v6398_v13  ;;  %v8492_v49 = vld [vmem:[#allocation11_spill] sm:$0xff] }
 0x65a   :  { %v754_v50 = vadd.f32 %v6398_v13, %v8492_v49 }
 0x65b   :  { %4833 = vmatmul.mubr.msk.f32.vlgmr.msra.gmra.mrb[20].mxu1 %vm984_vm3, %v609_v33  ;;  %v8517_v33 = vld [vmem:[#allocation18_spill] sm:$0xff] }
 0x65c   :  { %4835 = vmatprep.mubr.msk.f32.mxu1 %vm984_vm3, %v614_v27  ;;  %v8518_v27 = vld [vmem:[#allocation19_spill] sm:$0xff] }
 0x65f   :  { %4836 = vmatmul.mubr.msk.f32.gmra.mrb[22].mxu1 %vm984_vm3, %v619_v52  ;;  %v8519_v52 = vld [vmem:[#allocation22_spill] sm:$0xff] }
 0x660   :  { %4838 = vmatprep.mubr.msk.f32.mxu1 %vm984_vm3, %v624_v57  ;;  %v8520_v57 = vld [vmem:[#allocation23_spill] sm:$0xff] }
 0x661   :  { %5210 = vmatpush3.bf16.xpose.msk.msra.mxu1 %vm5574_vm1, %v6175_v31  ;;  %v8496_v31 = vld [vmem:[#allocation48_spill] sm:$0xff] }
 0x662   :  { %5213 = vmatprep.subr.msk.bf16.mxu1 %vm5574_vm1, %v6180_v46  ;;  %v8497_v46 = vld [vmem:[#allocation6_spill] sm:$0xff] }
 0x663   :  { %4839 = vmatmul.mubr.msk.f32.gmra.mrb[24].mxu1 %vm984_vm3, %v629_v63  ;;  %v8521_v63 = vld [vmem:[#allocation26_spill] sm:$0xff] }
 0x664   :  { %4841 = vmatprep.mubr.msk.f32.mxu1 %vm984_vm3, %v634_v5  ;;  %v8522_v5 = vld [vmem:[#allocation27_spill] sm:$0xff] }
 0x667   :  { %4842 = vmatmul.mubr.msk.f32.gmra.mrb[26].mxu1 %vm984_vm3, %v639_v19  ;;  %v8523_v19 = vld [vmem:[#allocation30_spill] sm:$0xff] }
 0x668   :  { %4844 = vmatprep.mubr.msk.f32.mxu1 %vm984_vm3, %v644_v3  ;;  %v8524_v3 = vld [vmem:[#allocation31_spill] sm:$0xff] }
 0x669   :  { %5216 = vmatpush3.bf16.xpose.msk.msra.mxu1 %vm5574_vm1, %v6207_v28  ;;  %v8500_v28 = vld [vmem:[#allocation17_spill] sm:$0xff] }
 0x66a   :  { %5219 = vmatprep.subr.msk.bf16.mxu1 %vm5574_vm1, %v6212_v39  ;;  %v8502_v39 = vld [vmem:[#allocation21_spill] sm:$0xff] }
 0x66b   :  { %4845 = vmatmul.mubr.msk.f32.gmra.mrb[28].mxu1 %vm984_vm3, %v649_v6  ;;  %v8525_v6 = vld [vmem:[#allocation34_spill] sm:$0xff] }
 0x66c   :  { %4847 = vmatprep.mubr.msk.f32.mxu1 %vm984_vm3, %v654_v10  ;;  %v8526_v10 = vld [vmem:[#allocation35_spill] sm:$0xff] }
 0x66f   :  { %4848 = vmatmul.mubr.msk.f32.gmra.mrb[30].mxu1 %vm984_vm3, %v659_v11  ;;  %v8527_v11 = vld [vmem:[#allocation38_spill] sm:$0xff] }
 0x670   :  { %4850 = vmatprep.mubr.msk.f32.mxu1 %vm984_vm3, %v664_v20  ;;  %v8528_v20 = vld [vmem:[#allocation39_spill] sm:$0xff] }
 0x671   :  { %5222 = vmatpush3.bf16.xpose.msk.msra.mxu1 %vm5574_vm1, %v6237_v24  ;;  %v694_v24 = vadd.f32 %v6398_v13, %v6142_v48  ;;  %v8491_v48 = vld [vmem:[#allocation44_spill] sm:$0xff] }
 0x672   :  { %5225 = vmatprep.subr.msk.bf16.mxu1 %vm5574_vm1, %v6242_v18  ;;  %v699_v18 = vadd.f32 %v6140_v47, %v6398_v13  ;;  %v8489_v47 = vld [vmem:[#allocation9_spill] sm:$0xff] }
 0x673   :  { %4851 = vmatmul.mubr.msk.f32.gmra.mrb[32].mxu1 %vm984_vm3, %v669_v23  ;;  %v744_v53 = vadd.f32 %v6398_v13, %v8489_v47  ;;  %v8529_v23 = vld [vmem:[#allocation42_spill] sm:$0xff] }
 0x674   :  { %4853 = vmatprep.mubr.msk.f32.mxu1 %vm984_vm3, %v674_v26  ;;  %v8530_v26 = vld [vmem:[#allocation43_spill] sm:$0xff] }
 0x677   :  { %4854 = vmatmul.mubr.msk.f32.gmra.mrb[34].mxu1 %vm984_vm3, %v679_v29 }
 0x678   :  { %4856 = vmatprep.mubr.msk.f32.mxu1 %vm984_vm3, %v684_v32 }
 0x679   :  { %5228 = vmatpush3.bf16.xpose.msk.msra.mxu1 %vm5574_vm1, %v6267_v40  ;;  %v714_v40 = vadd.f32 %v6398_v13, %v6150_v21  ;;  %v759_v21 = vadd.f32 %v8494_v56, %v6398_v13 }
 0x67a   :  { %5231 = vmatprep.subr.msk.bf16.mxu1 %vm5574_vm1, %v6272_v4  ;;  %v8498_v4 = vld [vmem:[#allocation3_spill] sm:$0xff] }
 0x67b   :  { %4857 = vmatmul.mubr.msk.f32.gmra.mrb[36].mxu1 %vm984_vm3, %v689_v35 }
 0x67c   :  { %4859 = vmatprep.mubr.msk.f32.mxu1 %vm984_vm3, %v694_v24 }
 0x67f   :  { %4860 = vmatmul.mubr.msk.f32.gmra.mrb[38].mxu1 %vm984_vm3, %v699_v18 }
 0x680   :  { %4862 = vmatprep.mubr.msk.f32.mxu1 %vm984_vm3, %v704_v38 }
 0x681   :  { %5234 = vmatpush3.bf16.xpose.msk.msra.mxu1 %vm5574_vm1, %v6297_v7  ;;  %v8499_v7 = vld [vmem:[#allocation16_spill] sm:$0xff] }
 0x682   :  { %5237 = vmatprep.subr.msk.bf16.mxu1 %vm5574_vm1, %v6302_v8  ;;  %v734_v8 = vadd.f32 %v6398_v13, %v5970_v59  ;;  %v8490_v59 = vld [vmem:[#allocation8_spill] sm:$0xff] }
 0x683   :  { %4863 = vmatmul.mubr.msk.f32.gmra.mrb[40].mxu1 %vm984_vm3, %v709_v41 }
 0x684   :  { %4865 = vmatprep.mubr.msk.f32.mxu1 %vm984_vm3, %v714_v40 }
 0x687   :  { %4866 = vmatmul.mubr.msk.f32.gmra.mrb[42].mxu1 %vm984_vm3, %v719_v42 }
 0x688   :  { %4868 = vmatprep.mubr.msk.f32.mxu1 %vm984_vm3, %v724_v43 }
 0x689   :  { %5240 = vmatpush3.bf16.xpose.msk.msra.mxu1 %vm5574_vm1, %v6327_v14  ;;  %v749_v14 = vadd.f32 %v8490_v59, %v6398_v13 }
 0x68a   :  { %5243 = vmatprep.subr.msk.bf16.mxu1 %vm5574_vm1, %v6332_v34  ;;  %v8495_v34 = vld [vmem:[#allocation2_spill] sm:$0xff] }
 0x68b   :  { %4869 = vmatmul.mubr.msk.f32.gmra.mrb[44].mxu1 %vm984_vm3, %v729_v44 }
 0x68c   :  { %4871 = vmatprep.mubr.msk.f32.mxu1 %vm984_vm3, %v734_v8 }
 0x68f   :  { %4872 = vmatmul.mubr.msk.f32.gmra.mrb[46].mxu1 %vm984_vm3, %v739_v54 }
 0x690   :  { %4874 = vmatprep.mubr.msk.f32.mxu1 %vm984_vm3, %v744_v53 }
 0x691   :  { %5246 = vmatpush3.bf16.xpose.msk.msra.mxu1 %vm5574_vm1, %v8491_v48 }
 0x692   :  { %5249 = vmatprep.subr.msk.bf16.mxu1 %vm5574_vm1, %v8493_v55 }
 0x693   :  { %4875 = vmatmul.mubr.msk.f32.gmra.mrb[48].mxu1 %vm984_vm3, %v749_v14 }
 0x694   :  { %4877 = vmatprep.mubr.msk.f32.mxu1 %vm984_vm3, %v754_v50 }
 0x697   :  { %4878 = vmatmul.mubr.msk.f32.gmra.mrb[50].mxu1 %vm984_vm3, %v759_v21 }
 0x698   :  { %4604 = vmatprep.mubr.msk.f32.mxu1 %vm78_vm0, %v8495_v34 }
 0x699   :  { %5252 = vmatpush3.bf16.xpose.msk.msra.mxu1 %vm5574_vm1, %v8496_v31 }
 0x69a   :  { %4918 = vmatprep.subr.mxu1 %v8497_v46 }
 0x6a0   :  { %4605 = vmatmul.mubr.msk.f32.vlgmr.msra.gmra.mrb[52].mxu1 %vm78_vm0, %v8495_v34 }
 0x6a1   :  { %4606 = vmatprep.mubr.msk.f32.mxu1 %vm78_vm0, %v8498_v4  ;;  %4919 = vmatpush3.msra.mxu1 %v8497_v46 }
 0x6a4   :  { %4607 = vmatmul.mubr.msk.f32.gmra.mrb[54].mxu1 %vm78_vm0, %v8498_v4 }
 0x6a5   :  { %4920 = vmatprep.mubr.msk.f32.mxu1 %vm78_vm0, %v8499_v7 }
 0x6a8   :  { %4921 = vmatmul.mubr.msk.f32.vlgmr.msra.gmra.mrb[56].mxu1 %vm78_vm0, %v8500_v28 }
 0x6a9   :  { %4923 = vmatprep.mubr.msk.f32.mxu1 %vm78_vm0, %v8501_v2 }
 0x6ac   :  { %4924 = vmatmul.mubr.msk.f32.gmra.mrb[58].mxu1 %vm78_vm0, %v8502_v39 }
 0x6ad   :  { %4926 = vmatprep.mubr.msk.f32.mxu1 %vm78_vm0, %v8503_v25 }
 0x6b0   :  { %4927 = vmatmul.mubr.msk.f32.gmra.mrb[60].mxu1 %vm78_vm0, %v8504_v37 }
 0x6b1   :  { %4929 = vmatprep.mubr.msk.f32.mxu1 %vm78_vm0, %v8505_v45 }
 0x6b4   :  { %4930 = vmatmul.mubr.msk.f32.gmra.mrb[62].mxu1 %vm78_vm0, %v8506_v61  ;;  %v8531_v61 = vld [vmem:[#allocation5_spill] sm:$0xff] }
 0x6b5   :  { %4932 = vmatprep.mubr.msk.f32.mxu1 %vm78_vm0, %v8507_v9 }
 0x6b8   :  { %4933 = vmatmul.mubr.msk.f32.gmra.mrb[64].mxu1 %vm78_vm0, %v8508_v30 }
 0x6b9   :  { %4935 = vmatprep.mubr.msk.f32.mxu1 %vm78_vm0, %v8509_v36 }
 0x6bc   :  { %4936 = vmatmul.mubr.msk.f32.gmra.mrb[66].mxu1 %vm78_vm0, %v8510_v16 }
 0x6bd   :  { %4938 = vmatprep.mubr.msk.f32.mxu1 %vm78_vm0, %v8511_v12  ;;  %v8532_v12 = vld [vmem:[#allocation4_spill] sm:$0xff] }
 0x6c0   :  { %4939 = vmatmul.mubr.msk.f32.gmra.mrb[68].mxu1 %vm78_vm0, %v8512_v62 }
 0x6c1   :  { %4941 = vmatprep.mubr.msk.f32.mxu1 %vm78_vm0, %v8513_v17  ;;  %v8533_v17 = vld [vmem:[#allocation7_spill] sm:$0xff] }
 0x6c4   :  { %4942 = vmatmul.mubr.msk.f32.gmra.mrb[70].mxu1 %vm78_vm0, %v8514_v60 }
 0x6c5   :  { %4944 = vmatprep.mubr.msk.f32.mxu1 %vm78_vm0, %v8515_v51  ;;  %v8534_v51 = vld [vmem:[#allocation12_spill] sm:$0xff] }
 0x6c8   :  { %4945 = vmatmul.mubr.msk.f32.gmra.mrb[72].mxu1 %vm78_vm0, %v8516_v0  ;;  %v8535_v0 = vld [vmem:[#allocation50_spill] sm:$0xff] }
 0x6c9   :  { %4947 = vmatprep.mubr.msk.f32.mxu1 %vm78_vm0, %v8517_v33  ;;  %v8536_v33 = vld [vmem:[#allocation49_spill] sm:$0xff] }
 0x6cc   :  { %4948 = vmatmul.mubr.msk.f32.gmra.mrb[74].mxu1 %vm78_vm0, %v8518_v27 }
 0x6cd   :  { %4950 = vmatprep.mubr.msk.f32.mxu1 %vm78_vm0, %v8519_v52 }
 0x6d0   :  { %4951 = vmatmul.mubr.msk.f32.gmra.mrb[76].mxu1 %vm78_vm0, %v8520_v57 }
 0x6d1   :  { %4953 = vmatprep.mubr.msk.f32.mxu1 %vm78_vm0, %v8521_v63 }
 0x6d4   :  { %4954 = vmatmul.mubr.msk.f32.gmra.mrb[78].mxu1 %vm78_vm0, %v8522_v5 }
 0x6d5   :  { %4956 = vmatprep.mubr.msk.f32.mxu1 %vm78_vm0, %v8523_v19 }
 0x6d8   :  { %4957 = vmatmul.mubr.msk.f32.gmra.mrb[80].mxu1 %vm78_vm0, %v8524_v3 }
 0x6d9   :  { %4959 = vmatprep.mubr.msk.f32.mxu1 %vm78_vm0, %v8525_v6  ;;  %v8537_v6 = vld [vmem:[#allocation15_spill] sm:$0xff] }
 0x6dc   :  { %4960 = vmatmul.mubr.msk.f32.gmra.mrb[82].mxu1 %vm78_vm0, %v8526_v10 }
 0x6dd   :  { %4962 = vmatprep.mubr.msk.f32.mxu1 %vm78_vm0, %v8527_v11 }
 0x6e0   :  { %4963 = vmatmul.mubr.msk.f32.gmra.mrb[84].mxu1 %vm78_vm0, %v8528_v20 }
 0x6e1   :  { %4965 = vmatprep.mubr.msk.f32.mxu1 %vm78_vm0, %v8529_v23  ;;  %v8538_v23 = vmov 0  }
 0x6e4   :  { %4966 = vmatmul.mubr.msk.f32.gmra.mrb[86].mxu1 %vm78_vm0, %v8530_v26  ;;  %v8539_v26 = vmov 1  }
 0x72e   :  { %v6643_v29 = vpop.f32.mrb[20].mxu1 }
 0x72f   :  { %v6645_v32 = vpop.f32.mrb[21].mxu1 }
 0x732   :  { %v6647_v35 = vpop.f32.mrb[22].mxu1 }
 0x733   :  { %v6649_v24 = vpop.f32.mrb[23].mxu1 }
 0x736   :  { %v6651_v18 = vpop.f32.mrb[24].mxu1 }
 0x737   :  { %v6653_v38 = vpop.f32.mrb[25].mxu1 }
 0x73a   :  { %v6655_v41 = vpop.f32.mrb[26].mxu1 }
 0x73b   :  { %v6657_v40 = vpop.f32.mrb[27].mxu1 }
 0x73e   :  { %v6659_v42 = vpop.f32.mrb[28].mxu1 }
 0x73f   :  { %v6661_v43 = vpop.f32.mrb[29].mxu1 }
 0x742   :  { %v6663_v44 = vpop.f32.mrb[30].mxu1 }
 0x743   :  { %v6665_v8 = vpop.f32.mrb[31].mxu1 }
 0x746   :  { %v6667_v54 = vpop.f32.mrb[32].mxu1 }
 0x747   :  { %v6669_v47 = vpop.f32.mrb[33].mxu1 }
 0x74a   :  { %v6671_v53 = vpop.f32.mrb[34].mxu1 }
 0x74b   :  { %v6673_v59 = vpop.f32.mrb[35].mxu1 }
 0x74e   :  { %v6675_v14 = vpop.f32.mrb[36].mxu1 }
 0x74f   :  { %v6677_v48 = vpop.f32.mrb[37].mxu1 }
 0x752   :  { %v6679_v49 = vpop.f32.mrb[38].mxu1 }
 0x753   :  { %v6681_v50 = vpop.f32.mrb[39].mxu1 }
 0x756   :  { %v6683_v55 = vpop.f32.mrb[40].mxu1 }
 0x757   :  { %v6685_v56 = vpop.f32.mrb[41].mxu1 }
 0x75a   :  { %v6687_v21 = vpop.f32.mrb[42].mxu1 }
 0x75b   :  { %v6689_v34 = vpop.f32.mrb[43].mxu1 }
 0x75e   :  { %v6691_v31 = vpop.f32.mrb[44].mxu1 }
 0x75f   :  { %v6693_v46 = vpop.f32.mrb[45].mxu1 }
 0x762   :  { %v6695_v4 = vpop.f32.mrb[46].mxu1 }
 0x763   :  { %v6697_v7 = vpop.f32.mrb[47].mxu1 }
 0x766   :  { %v6699_v28 = vpop.f32.mrb[48].mxu1 }
 0x767   :  { %v6701_v2 = vpop.f32.mrb[49].mxu1 }
 0x76a   :  { %v6703_v39 = vpop.f32.mrb[50].mxu1 }
 0x76b   :  { %v6705_v25 = vpop.f32.mrb[51].mxu1 }
 0x773   :  { %v2465_v37 = vpop.f32.mrb[52].mxu1 }
 0x774   :  { %v2467_v45 = vpop.f32.mrb[53].mxu1  ;;  %v2466_v30 = vadd.f32 %v2465_v37, %v8531_v61 }
 0x775   :  { %v2468_v9 = vadd.f32 %v2467_v45, %v8531_v61 }
 0x777   :  { %v2471_v36 = vpop.f32.mrb[54].mxu1  ;;  %2540 = vmatprep.mubr.f32.mxu0 %v2468_v9 }
 0x778   :  { %v2473_v16 = vpop.f32.mrb[55].mxu1  ;;  %2541 = vmatmul.mubr.f32.vlgmr.msra.gmra.mrb[34].mxu0 %v2466_v30  ;;  %v2472_v60 = vadd.f32 %v2471_v36, %v8532_v12 }
 0x779   :  { %v2474_v62 = vadd.f32 %v2473_v16, %v8532_v12  ;;  %4969 = vmatpush3.msra.mxu0 %v8533_v17 }
 0x77a   :  { %4973 = vmatprep.subr.mxu0 %v8534_v51 }
 0x77b   :  { %2545 = vmatprep.mubr.f32.mxu0 %v2474_v62 }
 0x77c   :  { %2546 = vmatmul.mubr.f32.gmra.mrb[36].mxu0 %v2472_v60 }
 0x77d   :  { %4970 = vmatprep.mubr.msk.f32.mxu0 %vm78_vm0, %v8535_v0 }
 0x780   :  { %4971 = vmatmul.mubr.msk.f32.vlgmr.msra.gmra.mrb[38].mxu0 %vm78_vm0, %v8536_v33 }
 0x781   :  { %4974 = vmatpush3.msra.mxu0 %v8534_v51 }
 0x84b   :  { %v4640_v27 = vpop.f32.mrb[34].mxu0 }
 0x84c   :  { %v4641_v52 = vpop.f32.mrb[35].mxu0 }
 0x84d   :  { %v4642_v57 = vadd.f32 %v4641_v52, %v4640_v27 }
 0x84f   :  { %v4643_v63 = vpop.f32.mrb[36].mxu0  ;;  %4975 = vmatprep.mubr.msk.f32.mxu0 %vm78_vm0, %v4642_v57 }
 0x850   :  { %v4644_v5 = vpop.f32.mrb[37].mxu0 }
 0x851   :  { %v4645_v19 = vadd.f32 %v4644_v5, %v4643_v63 }
 0x853   :  { %v4972_v3 = vpop.f32.mrb[38].mxu0  ;;  %4976 = vmatmul.mubr.msk.f32.vlgmr.msra.gmra.mrb[40].mxu0 %vm78_vm0, %v4645_v19 }
 0x854   :  { %v2854_v10 = vadd.f32 %v4972_v3, %v8537_v6  ;;  %v2848_v11 = vpop.f32.mrb[39].mxu0 }
 0x855   :  { %v2849_v20 = vadd.f32 %v8537_v6, %v2848_v11 }
 0x856   :  { %2967 = vperm.xlu0 %5315, %v2854_v10  }
 0x857   :  { %2963 = vperm.xlu1 %5314, %v2849_v20  }
 0x85b   :  { %5316 = vset.pattern.permute.xlu1 %v8538_v23 }
 0x85c   :  { %2945 = vperm.xlu1 %5316, %v2854_v10  }
 0x860   :  { %2940 = vperm.xlu1 %5316, %v2849_v20  }
 0x864   :  { %5317 = vset.pattern.permute.xlu1 %v8539_v26 }
 0x865   :  { %2951 = vperm.xlu1 %5317, %v2849_v20  }
 0x869   :  { %2955 = vperm.xlu1 %5317, %v2854_v10  }
 0x8d5   :  { %v2968_v30 = vpop.permute.xlu0 %2967 }
 0x8d6   :  { %v2964_v45 = vpop.permute.xlu1 %2963 }
 0x8db   :  { %v2946_v16 = vpop.permute.xlu1 %2945 }
 0x8df   :  { %v2941_v12 = vpop.permute.xlu1 %2940 }
 0x8e4   :  { %v2952_v62 = vpop.permute.xlu1 %2951 }
 0x8e5   :  { %v2958_v51 = vmul.f32 %v4642_v57, %v2952_v62  ;;  %v6733_v57 = vld [vmem:[%s8371_s3 + $0x6] ss:$0 sm:$0xff] }
 0x8e8   :  { %v2956_v17 = vpop.permute.xlu1 %2955 }
 0x8e9   :  { %v2959_v27 = vmul.f32 %v4645_v19, %v2956_v17 }
 0x926   :  { %v4977_v37 = vpop.f32.mrb[40].mxu0 }
 0x927   :  { %v2929_v61 = vpop.f32.mrb[41].mxu0  ;;  %v2971_v36 = vmul.f32 %v4977_v37, %v2968_v30  ;;  %v2949_v0 = vmul.f32 %v4977_v37, %v2946_v16 }
 0x928   :  { %v2970_v9 = vmul.f32 %v2964_v45, %v2929_v61  ;;  %v2948_v60 = vmul.f32 %v2941_v12, %v2929_v61  ;;  %v1107_v61 = vmul.f32 %v6733_v57, %v6421_v58 }
 0x929   :  { %v2961_v5 = vadd.f32 %v2959_v27, %v2949_v0 }
 0x92a   :  { %2974 = vrot.lane.b32.xlu1 %v2970_v9, %s5531_s7  ;;  %v2960_v52 = vadd.f32 %v2958_v51, %v2948_v60  ;;  %v1109_v30 = vsel %vm78_vm0, %v1107_v61, 0.0 }
 0x92e   :  { %2976 = vrot.lane.b32.xlu1 %v2971_v36, %s5531_s7  ;;  %v5540_v36 = vmov 8  }
 0x92f   :  { %5318 = vset.pattern.permute.xlu1 %v5540_v36  ;;  %5319 = vset.pattern.permute.xlu0 %v5540_v36 }
 0x932   :  { %2984 = vrot.lane.b32.xlu1 %v2849_v20, %s5539_s29 }
 0x936   :  { %2986 = vrot.lane.b32.xlu1 %v2854_v10, %s5539_s29 }
 0x99c   :  { %v2975_v33 = vpop.permute.xlu1 %2974 }
 0x99d   :  { %v2980_v63 = vadd.f32 %v2975_v33, %v2960_v52 }
 0x99f   :  { %v2982_v11 = vmax.f32 %v2980_v63, 0.0 }
 0x9a0   :  { %v2977_v3 = vpop.permute.xlu1 %2976 }
 0x9a1   :  { %v2981_v6 = vadd.f32 %v2977_v3, %v2961_v5  ;;  %v1108_v3 = vmul.f32 %v6733_v57, %v6424_v22 }
 0x9a3   :  { %v2983_v23 = vmax.f32 %v2981_v6, 0.0  ;;  %v1112_v6 = vsel %vm78_vm0, %v1108_v3, 0.0 }
 0x9a4   :  { %v2985_v26 = vpop.permute.xlu1 %2984 }
 0x9a5   :  { %4982 = vmatprep.mubr.msk.f32.mxu0 %vm984_vm3, %v2985_v26  ;;  %v5285_v10 = vpack.c.bf16 %v2983_v23, %v2982_v11 }
 0x9a7   :  { %5286 = vmatprep.subr.bf16.mxu0 %v5285_v10 }
 0x9a8   :  { %5288 = vmatpush3.bf16.msra.mxu0 %v5285_v10  ;;  %v2987_v20 = vpop.permute.xlu1 %2986 }
 0x9ab   :  { %4983 = vmatmul.mubr.msk.f32.vlgmr.msra.gmra.mrb[42].mxu0 %vm984_vm3, %v2987_v20 }
 0xa7e   :  { %v4984_v19 = vpop.f32.mrb[42].mxu0 }
 0xa7f   :  { %v3058_v37 = vpop.f32.mrb[43].mxu0  ;;  %v3070_v45 = vsel %vm78_vm0, %v4984_v19, 0.0 }
 0xa80   :  { %3071 = vadd.xlane.f32.xlu1 %v3070_v45  ;;  %v3067_v9 = vsel %vm78_vm0, %v3058_v37, 0.0 }
 0xa81   :  { %3068 = vadd.xlane.f32.xlu0 %v3067_v9 }
 0xa84   :  { %1110 = vadd.xlane.f32.xlu1 %v1109_v30 }
 0xb0d   :  { %v3072_v16 = vpop.xlane.xlu1 %3071 }
 0xb0e   :  { %v3074_v12 = vmul.f32 0.125, %v3072_v16  ;;  %v3069_v62 = vpop.xlane.xlu0 %3068 }
 0xb0f   :  { %v3073_v17 = vmul.f32 0.125, %v3069_v62 }
 0xb10   :  { %v3076_v60 = vsub.f32 %v4984_v19, %v3074_v12 }
 0xb11   :  { %v3075_v51 = vsub.f32 %v3058_v37, %v3073_v17  ;;  %v1111_v0 = vpop.xlane.xlu1 %1110 }
 0xb12   :  { %v1115_v33 = vadd.f32 %v6733_v57, %v1111_v0  ;;  %v3078_v63 = vmul.f32 %v3076_v60, %v3076_v60 }
 0xb13   :  { %v3077_v27 = vmul.f32 %v3075_v51, %v3075_v51 }
 0xb14   :  { %1119 = vperm.xlu1 %5318, %v1115_v33   ;;  %v3082_v5 = vsel %vm78_vm0, %v3078_v63, 0.0 }
 0xb15   :  { %v3079_v52 = vsel %vm78_vm0, %v3077_v27, 0.0 }
 0xb16   :  { %3080 = vadd.xlane.f32.xlu0 %v3079_v52  ;;  %v4922_v52 = vpop.f32.mrb[56].mxu1 }
 0xb17   :  { %v2617_v63 = vpop.f32.mrb[57].mxu1 }
 0xb18   :  { %v2618_v3 = vadd.f32 %v6398_v13, %v2617_v63 }
 0xb1a   :  { %3083 = vadd.xlane.f32.xlu0 %v3082_v5  ;;  %4989 = vmatprep.mubr.msk.f32.mxu0 %vm984_vm3, %v2618_v3 }
 0xb1e   :  { %1113 = vadd.xlane.f32.xlu0 %v1112_v6  ;;  %v4925_v6 = vpop.f32.mrb[58].mxu1 }
 0xb93   :  { %v1120_v33 = vpop.permute.xlu1 %1119 }
 0xba3   :  { %v3081_v11 = vpop.xlane.xlu0 %3080 }
 0xba4   :  { %v3085_v23 = vmul.f32 0.125, %v3081_v11 }
 0xba6   :  { %v3087_v26 = vadd.f32 1e-05, %v3085_v23  ;;  %v2627_v23 = vpop.f32.mrb[59].mxu1 }
 0xba7   :  { %v3084_v10 = vpop.xlane.xlu0 %3083 }
 0xba8   :  { %5324 = vrsqrt.f32 %v3087_v26  ;;  %v3086_v20 = vmul.f32 0.125, %v3084_v10  ;;  %v4928_v26 = vpop.f32.mrb[60].mxu1 }
 0xbaa   :  { %v3088_v19 = vadd.f32 1e-05, %v3086_v20  ;;  %v2637_v20 = vpop.f32.mrb[61].mxu1 }
 0xbab   :  { %v1114_v37 = vpop.xlane.xlu0 %1113 }
 0xbac   :  { %5326 = vrsqrt.f32 %v3088_v19  ;;  %v1116_v45 = vadd.f32 %v6733_v57, %v1114_v37  ;;  %v2638_v19 = vadd.f32 %v6398_v13, %v2637_v20  ;;  %v4931_v37 = vpop.f32.mrb[62].mxu1 }
 0xbae   :  { %1124 = vperm.xlu0 %5319, %v1116_v45  }
 0xbb2   :  { %v5325_v61 = vpop.eup %5324 }
 0xbb3   :  { %v3091_v9 = vmul.f32 %v5325_v61, %v3075_v51  ;;  %v1127_v51 = vmul.f32 %v1120_v33, %v6421_v58  ;;  %v2628_v58 = vadd.f32 %v6398_v13, %v2627_v23  ;;  %v2647_v61 = vpop.f32.mrb[63].mxu1 }
 0xbb5   :  { %v3093_v16 = vmul.f32 %v6411_v15, %v3091_v9  ;;  %v1129_v5 = vsel %vm78_vm0, %v1127_v51, 0.0  ;;  %v4934_v9 = vpop.f32.mrb[64].mxu1 }
 0xbb6   :  { %v5327_v30 = vpop.eup %5326  ;;  %v2663_v23 = vadd.f32 %v4934_v9, %v6398_v13 }
 0xbb7   :  { %v3092_v36 = vmul.f32 %v5327_v30, %v3076_v60  ;;  %v6750_v62 = vadd.f32 %v6417_v1, %v3093_v16  ;;  %v2657_v16 = vpop.f32.mrb[65].mxu1 }
 0xbb8   :  { %v2658_v63 = vadd.f32 %v6398_v13, %v2657_v16 }
 0xbb9   :  { %v3094_v12 = vmul.f32 %v6411_v15, %v3092_v36  ;;  %v2623_v15 = vadd.f32 %v4922_v52, %v6398_v13  ;;  %v2643_v36 = vadd.f32 %v4928_v26, %v6398_v13  ;;  %v2653_v52 = vadd.f32 %v4931_v37, %v6398_v13 }
 0xbbb   :  { %v6753_v17 = vadd.f32 %v6417_v1, %v3094_v12  ;;  %v2648_v12 = vadd.f32 %v6398_v13, %v2647_v61 }
 0xbbd   :  { %v5289_v0 = vpack.c.bf16 %v6753_v17, %v6750_v62 }
 0xbbf   :  { %5290 = vmatprep.subr.bf16.mxu0 %v5289_v0 }
 0xbc0   :  { %5292 = vmatpush3.bf16.msra.mxu0 %v5289_v0  ;;  %v4937_v0 = vpop.f32.mrb[66].mxu1 }
 0xbc1   :  { %v2667_v51 = vpop.f32.mrb[67].mxu1 }
 0xbc2   :  { %v2668_v26 = vadd.f32 %v6398_v13, %v2667_v51 }
 0xbc3   :  { %4990 = vmatmul.mubr.msk.f32.vlgmr.msra.gmra.mrb[44].mxu0 %vm984_vm3, %v2623_v15 }
 0xbc4   :  { %4992 = vmatprep.mubr.msk.f32.mxu0 %vm984_vm3, %v2628_v58 }
 0xc2d   :  { %v1125_v27 = vpop.permute.xlu0 %1124 }
 0xc2e   :  { %v1128_v60 = vmul.f32 %v1125_v27, %v6424_v22  ;;  %v2633_v22 = vadd.f32 %v4925_v6, %v6398_v13  ;;  %v4940_v27 = vpop.f32.mrb[68].mxu1 }
 0xc2f   :  { %v2677_v15 = vpop.f32.mrb[69].mxu1 }
 0xc30   :  { %v1130_v1 = vsel %vm78_vm0, %v1128_v60, 0.0  ;;  %4993 = vmatmul.mubr.msk.f32.gmra.mrb[46].mxu0 %vm984_vm3, %v2633_v22 }
 0xc31   :  { %v1131_v11 = vadd.f32 %v1130_v1, %v1129_v5  ;;  %4995 = vmatprep.mubr.msk.f32.mxu0 %vm984_vm3, %v2638_v19  ;;  %v4943_v5 = vpop.f32.mrb[70].mxu1  ;;  %v2673_v19 = vadd.f32 %v4937_v0, %v6398_v13 }
 0xc32   :  { %v2687_v3 = vpop.f32.mrb[71].mxu1  ;;  %v2693_v51 = vadd.f32 %v4943_v5, %v6398_v13 }
 0xc33   :  { %v1132_v10 = vrot.slane %v1131_v11, 4  ;;  %v4946_v6 = vpop.f32.mrb[72].mxu1 }
 0xc34   :  { %4996 = vmatmul.mubr.msk.f32.gmra.mrb[48].mxu0 %vm984_vm3, %v2643_v36  ;;  %v2697_v58 = vpop.f32.mrb[73].mxu1  ;;  %v2683_v36 = vadd.f32 %v4940_v27, %v6398_v13  ;;  %v2703_v27 = vadd.f32 %v4946_v6, %v6398_v13 }
 0xc35   :  { %v1133_v45 = vadd.f32 %v1132_v10, %v1131_v11  ;;  %4998 = vmatprep.mubr.msk.f32.mxu0 %vm984_vm3, %v2648_v12  ;;  %v4949_v10 = vpop.f32.mrb[74].mxu1  ;;  %v2688_v12 = vadd.f32 %v6398_v13, %v2687_v3 }
 0xc36   :  { %v2707_v22 = vpop.f32.mrb[75].mxu1 }
 0xc37   :  { %v1134_v30 = vrot.slane %v1133_v45, 2  ;;  %v4952_v20 = vpop.f32.mrb[76].mxu1 }
 0xc38   :  { %4999 = vmatmul.mubr.msk.f32.gmra.mrb[50].mxu0 %vm984_vm3, %v2653_v52  ;;  %v2717_v37 = vpop.f32.mrb[77].mxu1  ;;  %v2698_v52 = vadd.f32 %v6398_v13, %v2697_v58 }
 0xc39   :  { %v1135_v33 = vadd.f32 %v1134_v30, %v1133_v45  ;;  %5001 = vmatprep.mubr.msk.f32.mxu0 %vm984_vm3, %v2658_v63  ;;  %v2678_v45 = vadd.f32 %v6398_v13, %v2677_v15  ;;  %v4955_v61 = vpop.f32.mrb[78].mxu1  ;;  %v2708_v15 = vadd.f32 %v6398_v13, %v2707_v22  ;;  %v2713_v63 = vadd.f32 %v4949_v10, %v6398_v13 }
 0xc3a   :  { %v2727_v9 = vpop.f32.mrb[79].mxu1  ;;  %v2718_v5 = vadd.f32 %v6398_v13, %v2717_v37 }
 0xc3b   :  { %v1136_v60 = vrot.slane %v1135_v33, 1  ;;  %v4958_v30 = vpop.f32.mrb[80].mxu1  ;;  %v2728_v3 = vadd.f32 %v6398_v13, %v2727_v9 }
 0xc3c   :  { %5002 = vmatmul.mubr.msk.f32.gmra.mrb[52].mxu0 %vm984_vm3, %v2663_v23  ;;  %v2737_v16 = vpop.f32.mrb[81].mxu1 }
 0xc3d   :  { %v1137_v1 = vadd.f32 %v1136_v60, %v1135_v33  ;;  %5004 = vmatprep.mubr.msk.f32.mxu0 %vm984_vm3, %v2668_v26  ;;  %v6789_v0 = vpop.f32.mrb[82].mxu1  ;;  %v2738_v23 = vadd.f32 %v6398_v13, %v2737_v16 }
 0xc3f   :  { %v4157_v11 = vmul.f32 -1.442695, %v1137_v1  ;;  %v2723_v1 = vadd.f32 %v4952_v20, %v6398_v13 }
 0xc40   :  { %5005 = vmatmul.mubr.msk.f32.gmra.mrb[54].mxu0 %vm984_vm3, %v2673_v19  ;;  %v2743_v19 = vadd.f32 %v4958_v30, %v6398_v13 }
 0xc41   :  { %5328 = vpow2.f32 %v4157_v11  ;;  %5007 = vmatprep.mubr.msk.f32.mxu0 %vm984_vm3, %v2678_v45  ;;  %v2733_v11 = vadd.f32 %v4955_v61, %v6398_v13 }
 0xc44   :  { %5008 = vmatmul.mubr.msk.f32.gmra.mrb[56].mxu0 %vm984_vm3, %v2683_v36 }
 0xc45   :  { %5010 = vmatprep.mubr.msk.f32.mxu0 %vm984_vm3, %v2688_v12  ;;  %v2747_v12 = vpop.f32.mrb[83].mxu1 }
 0xc48   :  { %5011 = vmatmul.mubr.msk.f32.gmra.mrb[58].mxu0 %vm984_vm3, %v2693_v51  ;;  %v2748_v51 = vadd.f32 %v6398_v13, %v2747_v12 }
 0xc49   :  { %5013 = vmatprep.mubr.msk.f32.mxu0 %vm984_vm3, %v2698_v52 }
 0xc4b   :  { %v5329_v33 = vpop.eup %5328 }
 0xc4c   :  { %v1141_v60 = vadd.f32 1.0, %v5329_v33  ;;  %5014 = vmatmul.mubr.msk.f32.gmra.mrb[60].mxu0 %vm984_vm3, %v2703_v27  ;;  %v2753_v33 = vadd.f32 %v6789_v0, %v6398_v13 }
 0xc4d   :  { %5016 = vmatprep.mubr.msk.f32.mxu0 %vm984_vm3, %v2708_v15 }
 0xc4e   :  { %5330 = vrcp.f32 %v1141_v60 }
 0xc50   :  { %5017 = vmatmul.mubr.msk.f32.gmra.mrb[62].mxu0 %vm984_vm3, %v2713_v63 }
 0xc51   :  { %5019 = vmatprep.mubr.msk.f32.mxu0 %vm984_vm3, %v2718_v5 }
 0xc54   :  { %5020 = vmatmul.mubr.msk.f32.gmra.mrb[64].mxu0 %vm984_vm3, %v2723_v1 }
 0xc55   :  { %5022 = vmatprep.mubr.msk.f32.mxu0 %vm984_vm3, %v2728_v3 }
 0xc58   :  { %v6807_v6 = vpop.eup %5330  ;;  %5023 = vmatmul.mubr.msk.f32.gmra.mrb[66].mxu0 %vm984_vm3, %v2733_v11 }
 0xc59   :  { %v6815_v58 = vmul.f32 %v6807_v6, %v6645_v32  ;;  %v6819_v26 = vmul.f32 %v6807_v6, %v6643_v29  ;;  %v6823_v10 = vmul.f32 %v6807_v6, %v6683_v55  ;;  %v6827_v22 = vmul.f32 %v6807_v6, %v6687_v21  ;;  %5025 = vmatprep.mubr.msk.f32.mxu0 %vm984_vm3, %v2738_v23 }
 0xc5a   :  { %v6831_v20 = vmul.f32 %v6807_v6, %v6691_v31  ;;  %v6835_v32 = vmul.f32 %v6807_v6, %v6695_v4  ;;  %v6841_v29 = vmul.f32 %v6807_v6, %v6699_v28  ;;  %v6845_v55 = vmul.f32 %v6807_v6, %v6703_v39 }
 0xc5b   :  { %v6850_v21 = vmul.f32 %v6807_v6, %v6649_v24  ;;  %v6854_v31 = vmul.f32 %v6807_v6, %v6657_v40  ;;  %v1500_v4 = vsel %vm78_vm0, %v6819_v26, 0.0  ;;  %v1497_v28 = vsel %vm78_vm0, %v6815_v58, 0.0 }
 0xc5c   :  { %8540 = vst [vmem:[#allocation9_spill] sm:$0xff] %v6831_v20  ;;  %8541 = vst [vmem:[#allocation8_spill] sm:$0xff] %v6835_v32  ;;  %1501 = vadd.xlane.f32.xlu0 %v1500_v4  ;;  %1498 = vadd.xlane.f32.xlu1 %v1497_v28  ;;  %v6863_v39 = vmul.f32 %v6807_v6, %v6647_v35  ;;  %v6867_v24 = vmul.f32 %v6807_v6, %v6665_v8 }
 0xc5d   :  { %8542 = vst [vmem:[#allocation44_spill] sm:$0xff] %v6841_v29  ;;  %8543 = vst [vmem:[#allocation11_spill] sm:$0xff] %v6845_v55  ;;  %5026 = vmatmul.mubr.msk.f32.gmra.mrb[68].mxu0 %vm984_vm3, %v2743_v19  ;;  %v1515_v40 = vsel %vm78_vm0, %v6854_v31, 0.0  ;;  %v1503_v37 = vsel %vm78_vm0, %v6850_v21, 0.0  ;;  %v6875_v45 = vmul.f32 %v6807_v6, %v6653_v38  ;;  %v6879_v35 = vmul.f32 %v6807_v6, %v6669_v47 }
 0xc5e   :  { %v1527_v8 = vsel %vm78_vm0, %v6867_v24, 0.0  ;;  %v1506_v61 = vsel %vm78_vm0, %v6863_v39, 0.0  ;;  %v6887_v9 = vmul.f32 %v6807_v6, %v6651_v18  ;;  %v6891_v38 = vmul.f32 %v6807_v6, %v6673_v59  ;;  %5028 = vmatprep.mubr.msk.f32.mxu0 %vm984_vm3, %v2748_v51 }
 0xc5f   :  { %v1533_v47 = vsel %vm78_vm0, %v6879_v35, 0.0  ;;  %v1509_v30 = vsel %vm78_vm0, %v6875_v45, 0.0  ;;  %v6899_v36 = vmul.f32 %v6807_v6, %v6655_v41  ;;  %v6903_v18 = vmul.f32 %v6807_v6, %v6677_v48  ;;  %v4964_v41 = vpop.f32.mrb[84].mxu1 }
 0xc60   :  { %1516 = vadd.xlane.f32.xlu0 %v1515_v40  ;;  %1504 = vadd.xlane.f32.xlu1 %v1503_v37  ;;  %v1539_v59 = vsel %vm78_vm0, %v6891_v38, 0.0  ;;  %v1512_v16 = vsel %vm78_vm0, %v6887_v9, 0.0  ;;  %v6914_v60 = vmul.f32 %v6807_v6, %v6661_v43  ;;  %v6918_v48 = vmul.f32 %v6807_v6, %v6681_v50  ;;  %v2757_v0 = vpop.f32.mrb[85].mxu1 }
 0xc61   :  { %v1545_v52 = vsel %vm78_vm0, %v6903_v18, 0.0  ;;  %v1518_v27 = vsel %vm78_vm0, %v6899_v36, 0.0  ;;  %v2763_v15 = vadd.f32 %v4964_v41, %v6398_v13  ;;  %v2758_v43 = vadd.f32 %v6398_v13, %v2757_v0  ;;  %5029 = vmatmul.mubr.msk.f32.gmra.mrb[70].mxu0 %vm984_vm3, %v2753_v33  ;;  %v4967_v63 = vpop.f32.mrb[86].mxu1 }
 0xc62   :  { %v6930_v50 = vmul.f32 %v6807_v6, %v6659_v42  ;;  %v6934_v5 = vmul.f32 %v6807_v6, %v6685_v56  ;;  %v1551_v1 = vsel %vm78_vm0, %v6918_v48, 0.0  ;;  %v1521_v3 = vsel %vm78_vm0, %v6914_v60, 0.0  ;;  %v2767_v11 = vpop.f32.mrb[87].mxu1 }
 0xc63   :  { %5031 = vmatprep.mubr.msk.f32.mxu0 %vm984_vm3, %v2758_v43  ;;  %v2773_v23 = vadd.f32 %v4967_v63, %v6398_v13  ;;  %v2768_v42 = vadd.f32 %v6398_v13, %v2767_v11  ;;  %v6946_v56 = vmul.f32 %v6807_v6, %v6663_v44  ;;  %v3098_v28 = vmul.f32 %v6733_v57, %v6753_v17 }
 0xc64   :  { %1528 = vadd.xlane.f32.xlu0 %v1527_v8  ;;  %1507 = vadd.xlane.f32.xlu1 %v1506_v61  ;;  %v1557_v19 = vsel %vm78_vm0, %v6934_v5, 0.0  ;;  %v1524_v4 = vsel %vm78_vm0, %v6930_v50, 0.0  ;;  %v6958_v13 = vmul.f32 %v6807_v6, %v6667_v54  ;;  %v6962_v44 = vmul.f32 %v6807_v6, %v6689_v34 }
 0xc65   :  { %5032 = vmatmul.mubr.msk.f32.gmra.mrb[72].mxu0 %vm984_vm3, %v2763_v15  ;;  %v3102_v40 = vsel %vm78_vm0, %v3098_v28, 0.0  ;;  %v1530_v37 = vsel %vm78_vm0, %v6946_v56, 0.0  ;;  %v6969_v8 = vmul.f32 %v6807_v6, %v6671_v53  ;;  %v6973_v61 = vmul.f32 %v6807_v6, %v6693_v46 }
 0xc66   :  { %5034 = vmatprep.mubr.msk.f32.mxu0 %vm984_vm3, %v2768_v42  ;;  %v1563_v54 = vsel %vm78_vm0, %v6962_v44, 0.0  ;;  %v1536_v34 = vsel %vm78_vm0, %v6958_v13, 0.0  ;;  %v6985_v53 = vmul.f32 %v6807_v6, %v6697_v7  ;;  %v7005_v12 = vmul.f32 %v6807_v6, %v6705_v25 }
 0xc67   :  { %8544 = vst [vmem:[#allocation45_spill] sm:$0xff] %v6973_v61  ;;  %v1569_v46 = vsel %vm78_vm0, %v6973_v61, 0.0  ;;  %v1560_v25 = vsel %vm78_vm0, %v6823_v10, 0.0  ;;  %v1584_v0 = vsel %vm78_vm0, %v6841_v29, 0.0  ;;  %v1590_v15 = vsel %vm78_vm0, %v6845_v55, 0.0 }
 0xc68   :  { %1534 = vadd.xlane.f32.xlu0 %v1533_v47  ;;  %1510 = vadd.xlane.f32.xlu1 %v1509_v30  ;;  %v6981_v47 = vmul.f32 %v6807_v6, %v6675_v14  ;;  %8545 = vst [vmem:[#allocation10_spill] sm:$0xff] %v6985_v53  ;;  %v1542_v30 = vsel %vm78_vm0, %v6969_v8, 0.0  ;;  %v6997_v14 = vmul.f32 %v6807_v6, %v6701_v2  ;;  %v1575_v7 = vsel %vm78_vm0, %v6985_v53, 0.0 }
 0xc69   :  { %5035 = vmatmul.mubr.msk.f32.gmra.mrb[74].mxu0 %vm984_vm3, %v2773_v23  ;;  %8547 = vst [vmem:[#allocation48_spill] sm:$0xff] %v7005_v12  ;;  %v3097_v2 = vmul.f32 %v6733_v57, %v6750_v62  ;;  %v1587_v51 = vsel %vm78_vm0, %v7005_v12, 0.0 }
 0xc6a   :  { %8546 = vst [vmem:[#allocation2_spill] sm:$0xff] %v6997_v14 }
 0xc6b   :  { %v3099_v41 = vsel %vm78_vm0, %v3097_v2, 0.0 }
 0xc6c   :  { %1540 = vadd.xlane.f32.xlu0 %v1539_v59  ;;  %1513 = vadd.xlane.f32.xlu1 %v1512_v16  ;;  %v6993_v59 = vmul.f32 %v6807_v6, %v6679_v49  ;;  %v1548_v16 = vsel %vm78_vm0, %v6981_v47, 0.0  ;;  %v1581_v49 = vsel %vm78_vm0, %v6997_v14, 0.0  ;;  %v1566_v6 = vsel %vm78_vm0, %v6827_v22, 0.0 }
 0xc6e   :  { %v1554_v33 = vsel %vm78_vm0, %v6993_v59, 0.0 }
 0xc70   :  { %1546 = vadd.xlane.f32.xlu0 %v1545_v52  ;;  %1519 = vadd.xlane.f32.xlu1 %v1518_v27  ;;  %v1572_v52 = vsel %vm78_vm0, %v6831_v20, 0.0  ;;  %v1578_v27 = vsel %vm78_vm0, %v6835_v32, 0.0 }
 0xc74   :  { %1552 = vadd.xlane.f32.xlu0 %v1551_v1  ;;  %1522 = vadd.xlane.f32.xlu1 %v1521_v3 }
 0xc78   :  { %1558 = vadd.xlane.f32.xlu0 %v1557_v19  ;;  %1525 = vadd.xlane.f32.xlu1 %v1524_v4 }
 0xc7c   :  { %3103 = vadd.xlane.f32.xlu0 %v3102_v40  ;;  %1531 = vadd.xlane.f32.xlu1 %v1530_v37 }
 0xc80   :  { %1564 = vadd.xlane.f32.xlu0 %v1563_v54  ;;  %1537 = vadd.xlane.f32.xlu1 %v1536_v34 }
 0xc84   :  { %1570 = vadd.xlane.f32.xlu0 %v1569_v46  ;;  %1543 = vadd.xlane.f32.xlu1 %v1542_v30 }
 0xc88   :  { %1576 = vadd.xlane.f32.xlu0 %v1575_v7  ;;  %1549 = vadd.xlane.f32.xlu1 %v1548_v16 }
 0xc8c   :  { %1582 = vadd.xlane.f32.xlu0 %v1581_v49  ;;  %1555 = vadd.xlane.f32.xlu1 %v1554_v33 }
 0xc90   :  { %1588 = vadd.xlane.f32.xlu0 %v1587_v51  ;;  %3100 = vadd.xlane.f32.xlu1 %v3099_v41 }
 0xc94   :  { %1561 = vadd.xlane.f32.xlu1 %v1560_v25 }
 0xc98   :  { %1567 = vadd.xlane.f32.xlu1 %v1566_v6 }
 0xc9c   :  { %1573 = vadd.xlane.f32.xlu1 %v1572_v52 }
 0xca0   :  { %1579 = vadd.xlane.f32.xlu1 %v1578_v27 }
 0xca4   :  { %1585 = vadd.xlane.f32.xlu1 %v1584_v0 }
 0xca8   :  { %1591 = vadd.xlane.f32.xlu1 %v1590_v15 }
 0xce9   :  { %v1502_v43 = vpop.xlane.xlu0 %1501  ;;  %v1499_v63 = vpop.xlane.xlu1 %1498 }
 0xcea   :  { %v1594_v1 = vmul.f32 0.125, %v1502_v43  ;;  %v1593_v3 = vmul.f32 0.125, %v1499_v63 }
 0xcec   :  { %v7029_v11 = vsub.f32 %v6819_v26, %v1594_v1  ;;  %v7032_v23 = vsub.f32 %v6815_v58, %v1593_v3 }
 0xced   :  { %v1517_v42 = vpop.xlane.xlu0 %1516  ;;  %v1505_v19 = vpop.xlane.xlu1 %1504 }
 0xcee   :  { %v1595_v4 = vmul.f32 0.125, %v1505_v19  ;;  %v1658_v28 = vmul.f32 %v7029_v11, %v7029_v11  ;;  %v1657_v40 = vmul.f32 %v7032_v23, %v7032_v23  ;;  %v1599_v7 = vmul.f32 0.125, %v1517_v42 }
 0xcf0   :  { %v7039_v37 = vsub.f32 %v6850_v21, %v1595_v4  ;;  %v1692_v54 = vsel %vm78_vm0, %v1658_v28, 0.0  ;;  %v1689_v26 = vsel %vm78_vm0, %v1657_v40, 0.0  ;;  %v7052_v41 = vsub.f32 %v6854_v31, %v1599_v7 }
 0xcf1   :  { %v1529_v34 = vpop.xlane.xlu0 %1528  ;;  %1693 = vadd.xlane.f32.xlu1 %v1692_v54  ;;  %1690 = vadd.xlane.f32.xlu0 %v1689_v26  ;;  %v1508_v58 = vpop.xlane.xlu1 %1507 }
 0xcf2   :  { %v1596_v46 = vmul.f32 0.125, %v1508_v58  ;;  %v1659_v30 = vmul.f32 %v7039_v37, %v7039_v37  ;;  %v1663_v31 = vmul.f32 %v7052_v41, %v7052_v41 }
 0xcf4   :  { %v7046_v16 = vsub.f32 %v6863_v39, %v1596_v46  ;;  %v1695_v49 = vsel %vm78_vm0, %v1659_v30, 0.0  ;;  %v1707_v3 = vsel %vm78_vm0, %v1663_v31, 0.0 }
 0xcf5   :  { %v1535_v21 = vpop.xlane.xlu0 %1534  ;;  %1696 = vadd.xlane.f32.xlu0 %v1695_v49  ;;  %v1511_v33 = vpop.xlane.xlu1 %1510 }
 0xcf6   :  { %v1597_v2 = vmul.f32 0.125, %v1511_v33  ;;  %v1660_v51 = vmul.f32 %v7046_v16, %v7046_v16 }
 0xcf8   :  { %v7055_v25 = vsub.f32 %v6875_v45, %v1597_v2  ;;  %v1698_v6 = vsel %vm78_vm0, %v1660_v51, 0.0  ;;  %v1603_v51 = vmul.f32 0.125, %v1529_v34 }
 0xcf9   :  { %1699 = vadd.xlane.f32.xlu1 %v1698_v6  ;;  %v1514_v39 = vpop.xlane.xlu1 %1513  ;;  %v1541_v52 = vpop.xlane.xlu0 %1540 }
 0xcfa   :  { %v1598_v27 = vmul.f32 0.125, %v1514_v39  ;;  %v1661_v0 = vmul.f32 %v7055_v25, %v7055_v25  ;;  %v7082_v39 = vsub.f32 %v6867_v24, %v1603_v51  ;;  %v1607_v34 = vmul.f32 0.125, %v1541_v52 }
 0xcfc   :  { %v7061_v15 = vsub.f32 %v6887_v9, %v1598_v27  ;;  %v1701_v43 = vsel %vm78_vm0, %v1661_v0, 0.0  ;;  %v1605_v27 = vmul.f32 0.125, %v1535_v21  ;;  %v1667_v24 = vmul.f32 %v7082_v39, %v7082_v39 }
 0xcfd   :  { %1702 = vadd.xlane.f32.xlu0 %v1701_v43  ;;  %v1520_v45 = vpop.xlane.xlu1 %1519  ;;  %v1547_v1 = vpop.xlane.xlu0 %1546 }
 0xcfe   :  { %v1662_v63 = vmul.f32 %v7061_v15, %v7061_v15  ;;  %v7086_v43 = vpop.f32.mrb[44].mxu0  ;;  %v1719_v52 = vsel %vm78_vm0, %v1667_v24, 0.0 }
 0xcff   :  { %v7088_v31 = vpop.f32.mrb[45].mxu0 }
 0xd00   :  { %v1704_v42 = vsel %vm78_vm0, %v1662_v63, 0.0 }
 0xd01   :  { %1708 = vadd.xlane.f32.xlu0 %v1707_v3  ;;  %1705 = vadd.xlane.f32.xlu1 %v1704_v42  ;;  %v1523_v19 = vpop.xlane.xlu1 %1522  ;;  %v1553_v4 = vpop.xlane.xlu0 %1552  ;;  %v1600_v42 = vmul.f32 0.125, %v1520_v45 }
 0xd02   :  { %v1601_v2 = vmul.f32 0.125, %v1523_v19 }
 0xd03   :  { %v7090_v63 = vpop.f32.mrb[46].mxu0  ;;  %v7117_v45 = vsub.f32 %v6899_v36, %v1600_v42 }
 0xd04   :  { %v7079_v6 = vsub.f32 %v6914_v60, %v1601_v2  ;;  %v7098_v3 = vpop.f32.mrb[47].mxu0 }
 0xd05   :  { %v1526_v9 = vpop.xlane.xlu1 %1525  ;;  %v1559_v40 = vpop.xlane.xlu0 %1558  ;;  %v1664_v42 = vmul.f32 %v7117_v45, %v7117_v45 }
 0xd06   :  { %v1665_v0 = vmul.f32 %v7079_v6, %v7079_v6  ;;  %v1602_v51 = vmul.f32 0.125, %v1526_v9 }
 0xd07   :  { %v7100_v21 = vpop.f32.mrb[48].mxu0  ;;  %v1710_v29 = vsel %vm78_vm0, %v1664_v42, 0.0 }
 0xd08   :  { %v1713_v60 = vsel %vm78_vm0, %v1665_v0, 0.0  ;;  %v7102_v19 = vpop.f32.mrb[49].mxu0  ;;  %v7134_v36 = vsub.f32 %v6930_v50, %v1602_v51 }
 0xd09   :  { %v1532_v28 = vpop.xlane.xlu1 %1531  ;;  %v3104_v58 = vpop.xlane.xlu0 %3103 }
 0xd0a   :  { %v3106_v46 = vadd.f32 %v6733_v57, %v3104_v58  ;;  %v1604_v9 = vmul.f32 0.125, %v1532_v28 }
 0xd0b   :  { %v7104_v58 = vpop.f32.mrb[50].mxu0 }
 0xd0c   :  { %v7153_v51 = vsub.f32 %v6946_v56, %v1604_v9 }
 0xd0d   :  { %v1538_v54 = vpop.xlane.xlu1 %1537  ;;  %v1565_v50 = vpop.xlane.xlu0 %1564 }
 0xd0e   :  { %v1606_v14 = vmul.f32 0.125, %v1538_v54 }
 0xd10   :  { %v7173_v42 = vsub.f32 %v6958_v13, %v1606_v14 }
 0xd11   :  { %v7070_v26 = vpop.xlane.xlu1 %1543 }
 0xd15   :  { %v7073_v30 = vpop.xlane.xlu1 %1549 }
 0xd17   :  { %3114 = vperm.xlu0 %5319, %v3106_v46   ;;  %v7107_v46 = vsub.f32 %v6891_v38, %v1607_v34 }
 0xd19   :  { %v7075_v7 = vpop.xlane.xlu1 %1555 }
 0xd1d   :  { %v3101_v49 = vpop.xlane.xlu1 %3100 }
 0xd1e   :  { %v3105_v33 = vadd.f32 %v6733_v57, %v3101_v49  ;;  %v7093_v57 = vsub.f32 %v6879_v35, %v1605_v27  ;;  %v1609_v35 = vmul.f32 0.125, %v1547_v1  ;;  %v1611_v1 = vmul.f32 0.125, %v1553_v4 }
 0xd20   :  { %3109 = vperm.xlu1 %5318, %v3105_v33   ;;  %v1669_v49 = vmul.f32 %v7093_v57, %v7093_v57  ;;  %v7112_v33 = vpop.f32.mrb[51].mxu0  ;;  %v7124_v38 = vsub.f32 %v6903_v18, %v1609_v35  ;;  %v7143_v35 = vsub.f32 %v6918_v48, %v1611_v1  ;;  %v1666_v48 = vmul.f32 %v7134_v36, %v7134_v36 }
 0xd21   :  { %v7114_v2 = vpop.f32.mrb[52].mxu0 }
 0xd22   :  { %v7119_v27 = vpop.f32.mrb[53].mxu0  ;;  %v1725_v34 = vsel %vm78_vm0, %v1669_v49, 0.0  ;;  %v1613_v49 = vmul.f32 0.125, %v1559_v40  ;;  %v1675_v56 = vmul.f32 %v7143_v35, %v7143_v35  ;;  %v1716_v32 = vsel %vm78_vm0, %v1666_v48, 0.0 }
 0xd23   :  { %v7121_v0 = vpop.f32.mrb[54].mxu0 }
 0xd24   :  { %v7129_v24 = vpop.f32.mrb[55].mxu0 }
 0xd36   :  { %1714 = vadd.xlane.f32.xlu0 %v1713_v60  ;;  %v1671_v60 = vmul.f32 %v7107_v46, %v7107_v46 }
 0xd38   :  { %v1731_v12 = vsel %vm78_vm0, %v1671_v60, 0.0  ;;  %v7163_v60 = vsub.f32 %v6934_v5, %v1613_v49  ;;  %v1668_v5 = vmul.f32 %v7153_v51, %v7153_v51 }
 0xd3a   :  { %1720 = vadd.xlane.f32.xlu0 %v1719_v52  ;;  %v7131_v52 = vpop.f32.mrb[56].mxu0  ;;  %v1677_v13 = vmul.f32 %v7163_v60, %v7163_v60  ;;  %v1722_v61 = vsel %vm78_vm0, %v1668_v5, 0.0  ;;  %v1612_v5 = vmul.f32 0.125, %v7075_v7 }
 0xd3b   :  { %v7138_v18 = vpop.f32.mrb[57].mxu0 }
 0xd3c   :  { %v7140_v4 = vpop.f32.mrb[58].mxu0  ;;  %v1749_v20 = vsel %vm78_vm0, %v1677_v13, 0.0 }
 0xd3d   :  { %v7148_v55 = vpop.f32.mrb[59].mxu0 }
 0xd3e   :  { %1726 = vadd.xlane.f32.xlu0 %v1725_v34  ;;  %v1673_v34 = vmul.f32 %v7124_v38, %v7124_v38  ;;  %v7150_v28 = vpop.f32.mrb[60].mxu0 }
 0xd3f   :  { %v7158_v40 = vpop.f32.mrb[61].mxu0 }
 0xd40   :  { %v7160_v1 = vpop.f32.mrb[62].mxu0  ;;  %v1737_v53 = vsel %vm78_vm0, %v1673_v34, 0.0 }
 0xd41   :  { %v7168_v54 = vpop.f32.mrb[63].mxu0 }
 0xd42   :  { %1732 = vadd.xlane.f32.xlu0 %v1731_v12  ;;  %v1615_v12 = vmul.f32 0.125, %v1565_v50  ;;  %v7170_v9 = vpop.f32.mrb[64].mxu0 }
 0xd43   :  { %8548 = vst [vmem:[#allocation6_spill] sm:$0xff] %v7170_v9  ;;  %v7179_v49 = vpop.f32.mrb[65].mxu0 }
 0xd44   :  { %1711 = vadd.xlane.f32.xlu1 %v1710_v29  ;;  %v1608_v29 = vmul.f32 0.125, %v7070_v26  ;;  %8549 = vst [vmem:[#allocation3_spill] sm:$0xff] %v7179_v49  ;;  %v7181_v34 = vpop.f32.mrb[66].mxu0  ;;  %v7184_v50 = vsub.f32 %v6962_v44, %v1615_v12  ;;  %v1670_v44 = vmul.f32 %v7173_v42, %v7173_v42 }
 0xd45   :  { %8550 = vst [vmem:[#allocation16_spill] sm:$0xff] %v7181_v34  ;;  %v7189_v14 = vpop.f32.mrb[67].mxu0 }
 0xd46   :  { %1738 = vadd.xlane.f32.xlu0 %v1737_v53  ;;  %v1743_v53 = vsel %vm78_vm0, %v1675_v56, 0.0  ;;  %8551 = vst [vmem:[#allocation17_spill] sm:$0xff] %v7189_v14  ;;  %v7191_v26 = vpop.f32.mrb[68].mxu0  ;;  %v7194_v48 = vsub.f32 %v6969_v8, %v1608_v29  ;;  %v1562_v8 = vpop.xlane.xlu1 %1561 }
 0xd47   :  { %8552 = vst [vmem:[#allocation20_spill] sm:$0xff] %v7191_v26  ;;  %v7200_v12 = vpop.f32.mrb[69].mxu0 }
 0xd48   :  { %1717 = vadd.xlane.f32.xlu1 %v1716_v32  ;;  %v1610_v32 = vmul.f32 0.125, %v7073_v30  ;;  %8553 = vst [vmem:[#allocation21_spill] sm:$0xff] %v7200_v12  ;;  %v7202_v56 = vpop.f32.mrb[70].mxu0 }
 0xd49   :  { %8554 = vst [vmem:[#allocation24_spill] sm:$0xff] %v7202_v56  ;;  %v7207_v26 = vpop.f32.mrb[71].mxu0  ;;  %v1672_v56 = vmul.f32 %v7194_v48, %v7194_v48 }
 0xd4a   :  { %1744 = vadd.xlane.f32.xlu0 %v1743_v53  ;;  %v1679_v53 = vmul.f32 %v7184_v50, %v7184_v50  ;;  %8555 = vst [vmem:[#allocation25_spill] sm:$0xff] %v7207_v26  ;;  %v7209_v30 = vpop.f32.mrb[72].mxu0  ;;  %v7212_v29 = vsub.f32 %v6981_v47, %v1610_v32  ;;  %v7226_v47 = vsub.f32 %v6993_v59, %v1612_v5  ;;  %v1614_v32 = vmul.f32 0.125, %v1562_v8  ;;  %v1568_v14 = vpop.xlane.xlu1 %1567 }
 0xd4b   :  { %v7218_v13 = vpop.f32.mrb[73].mxu0  ;;  %v1734_v7 = vsel %vm78_vm0, %v1672_v56, 0.0  ;;  %v1616_v34 = vmul.f32 0.125, %v1568_v14 }
 0xd4c   :  { %1723 = vadd.xlane.f32.xlu1 %v1722_v61  ;;  %8556 = vst [vmem:[#allocation28_spill] sm:$0xff] %v7212_v29  ;;  %v1728_v61 = vsel %vm78_vm0, %v1670_v44, 0.0  ;;  %v7220_v12 = vpop.f32.mrb[74].mxu0  ;;  %v1755_v26 = vsel %vm78_vm0, %v1679_v53, 0.0  ;;  %8557 = vst [vmem:[#allocation29_spill] sm:$0xff] %v7226_v47  ;;  %v1674_v44 = vmul.f32 %v7212_v29, %v7212_v29 }
 0xd4d   :  { %v7238_v59 = vsub.f32 %v6827_v22, %v1616_v34 }
 0xd4e   :  { %1750 = vadd.xlane.f32.xlu0 %v1749_v20  ;;  %v7223_v20 = vpop.f32.mrb[75].mxu0  ;;  %v1740_v53 = vsel %vm78_vm0, %v1674_v44, 0.0 }
 0xd4f   :  { %8559 = vst [vmem:[#allocation33_spill] sm:$0xff] %v7238_v59 }
 0xd50   :  { %1729 = vadd.xlane.f32.xlu1 %v1728_v61  ;;  %v7232_v61 = vsub.f32 %v6823_v10, %v1614_v32  ;;  %v1680_v10 = vmul.f32 %v7238_v59, %v7238_v59  ;;  %v7247_v32 = vpop.xlane.xlu0 %1570 }
 0xd51   :  { %8560 = vst [vmem:[#allocation36_spill] sm:$0xff] %v7247_v32 }
 0xd52   :  { %1756 = vadd.xlane.f32.xlu0 %v1755_v26  ;;  %8558 = vst [vmem:[#allocation32_spill] sm:$0xff] %v7232_v61  ;;  %v1676_v26 = vmul.f32 %v7226_v47, %v7226_v47  ;;  %v1678_v8 = vmul.f32 %v7232_v61, %v7232_v61  ;;  %v1758_v14 = vsel %vm78_vm0, %v1680_v10, 0.0 }
 0xd54   :  { %1735 = vadd.xlane.f32.xlu1 %v1734_v7  ;;  %v1746_v56 = vsel %vm78_vm0, %v1676_v26, 0.0  ;;  %v1752_v5 = vsel %vm78_vm0, %v1678_v8, 0.0  ;;  %v7249_v7 = vpop.xlane.xlu1 %1573  ;;  %v7251_v22 = vpop.xlane.xlu0 %1576 }
 0xd55   :  { %8561 = vst [vmem:[#allocation37_spill] sm:$0xff] %v7249_v7  ;;  %8562 = vst [vmem:[#allocation40_spill] sm:$0xff] %v7251_v22 }
 0xd58   :  { %1741 = vadd.xlane.f32.xlu1 %v1740_v53  ;;  %v7253_v34 = vpop.xlane.xlu1 %1579  ;;  %v7255_v44 = vpop.xlane.xlu0 %1582 }
 0xd59   :  { %8563 = vst [vmem:[#allocation41_spill] sm:$0xff] %v7253_v34  ;;  %8564 = vst [vmem:[#allocation46_spill] sm:$0xff] %v7255_v44 }
 0xd5c   :  { %1747 = vadd.xlane.f32.xlu1 %v1746_v56  ;;  %v7257_v53 = vpop.xlane.xlu1 %1585  ;;  %v7259_v26 = vpop.xlane.xlu0 %1588 }
 0xd5d   :  { %8565 = vst [vmem:[#allocation47_spill] sm:$0xff] %v7257_v53  ;;  %8566 = vst [vmem:[#allocation13_spill] sm:$0xff] %v7259_v26 }
 0xd60   :  { %1753 = vadd.xlane.f32.xlu1 %v1752_v5  ;;  %v7261_v56 = vpop.xlane.xlu1 %1591 }
 0xd61   :  { %8567 = vst [vmem:[#allocation14_spill] sm:$0xff] %v7261_v56 }
 0xd64   :  { %1759 = vadd.xlane.f32.xlu1 %v1758_v14 }
 0xd7e   :  { %v1691_v8 = vpop.xlane.xlu0 %1690  ;;  %v1694_v5 = vpop.xlane.xlu1 %1693 }
 0xd7f   :  { %v1785_v10 = vmul.f32 0.125, %v1691_v8  ;;  %v1786_v14 = vmul.f32 0.125, %v1694_v5  ;;  %v7266_v8 = vld [vmem:[%s8371_s3 + $0x4] ss:$0 sm:$0xff] }
 0xd81   :  { %v1817_v59 = vadd.f32 1e-05, %v1785_v10  ;;  %v1818_v32 = vadd.f32 1e-05, %v1786_v14 }
 0xd82   :  { %v1697_v61 = vpop.xlane.xlu0 %1696 }
 0xd83   :  { %5332 = vrsqrt.f32 %v1817_v59  ;;  %v1787_v7 = vmul.f32 0.125, %v1697_v61 }
 0xd84   :  { %5334 = vrsqrt.f32 %v1818_v32 }
 0xd85   :  { %v1819_v22 = vadd.f32 1e-05, %v1787_v7  ;;  %v7272_v7 = vld [vmem:[%s8371_s3 + $0x5] ss:$0 sm:$0xff] }
 0xd86   :  { %v1700_v34 = vpop.xlane.xlu1 %1699 }
 0xd87   :  { %5336 = vrsqrt.f32 %v1819_v22  ;;  %v1788_v44 = vmul.f32 0.125, %v1700_v34 }
 0xd89   :  { %v1820_v47 = vadd.f32 1e-05, %v1788_v44 }
 0xd8a   :  { %v1703_v53 = vpop.xlane.xlu0 %1702 }
 0xd8b   :  { %5338 = vrsqrt.f32 %v1820_v47  ;;  %v1789_v26 = vmul.f32 0.125, %v1703_v53 }
 0xd8d   :  { %v5333_v49 = vpop.eup %5332  ;;  %v1821_v5 = vadd.f32 1e-05, %v1789_v26 }
 0xd8e   :  { %v5335_v10 = vpop.eup %5334  ;;  %v1881_v59 = vmul.f32 %v5333_v49, %v7032_v23  ;;  %v1709_v61 = vpop.xlane.xlu0 %1708 }
 0xd8f   :  { %v1706_v32 = vpop.xlane.xlu1 %1705  ;;  %v1882_v47 = vmul.f32 %v5335_v10, %v7029_v11  ;;  %5340 = vrsqrt.f32 %v1821_v5  ;;  %v1791_v22 = vmul.f32 0.125, %v1709_v61 }
 0xd90   :  { %v1790_v34 = vmul.f32 0.125, %v1706_v32  ;;  %v1917_v44 = vmul.f32 %v7266_v8, %v1881_v59  ;;  %v5464_v59 = vld [vmem:[%s8372_s0] sm:$0xff] }
 0xd91   :  { %v5337_v53 = vpop.eup %5336  ;;  %v1918_v26 = vmul.f32 %v7266_v8, %v1882_v47  ;;  %v1823_v14 = vadd.f32 1e-05, %v1791_v22 }
 0xd92   :  { %v1822_v56 = vadd.f32 1e-05, %v1790_v34  ;;  %v1953_v23 = vadd.f32 %v7272_v7, %v1917_v44  ;;  %v1883_v49 = vmul.f32 %v5337_v53, %v7039_v37  ;;  %v5465_v37 = vld [vmem:[%s8372_s0 + $0x8] sm:$0xff] }
 0xd93   :  { %v1954_v29 = vadd.f32 %v7272_v7, %v1918_v26  ;;  %5342 = vrsqrt.f32 %v1823_v14 }
 0xd94   :  { %v1985_v9 = vmax.f32 %v1953_v23, 0.0  ;;  %v1919_v11 = vmul.f32 %v7266_v8, %v1883_v49  ;;  %5344 = vrsqrt.f32 %v1822_v56 }
 0xd95   :  { %v5339_v5 = vpop.eup %5338  ;;  %v1986_v10 = vmax.f32 %v1954_v29, 0.0 }
 0xd96   :  { %v2017_v61 = vadd.f32 %v5464_v59, %v1985_v9  ;;  %v1955_v32 = vadd.f32 %v7272_v7, %v1919_v11  ;;  %v1884_v47 = vmul.f32 %v5339_v5, %v7046_v16  ;;  %v5466_v16 = vld [vmem:[%s8372_s0 + $0x10] sm:$0xff]  ;;  %v3115_v26 = vpop.permute.xlu0 %3114  ;;  %v5467_v5 = vld [vmem:[%s8372_s0 + $0x18] sm:$0xff] }
 0xd97   :  { %v2018_v22 = vadd.f32 %v5465_v37, %v1986_v10 }
 0xd98   :  { %2049 = vst.msk [vmem:[%s8373_s4] sm:$0xff] %vm78_vm0, %v2017_v61  ;;  %v1987_v29 = vmax.f32 %v1955_v32, 0.0  ;;  %v1920_v56 = vmul.f32 %v7266_v8, %v1884_v47  ;;  %v3118_v61 = vmul.f32 %v3115_v26, %v6753_v17 }
 0xd99   :  { %v5341_v34 = vpop.eup %5340  ;;  %2050 = vst.msk [vmem:[%s8373_s4 + $0x8] sm:$0xff] %vm78_vm0, %v2018_v22 }
 0xd9a   :  { %v2019_v9 = vadd.f32 %v5466_v16, %v1987_v29  ;;  %v1956_v44 = vadd.f32 %v7272_v7, %v1920_v56  ;;  %v1885_v53 = vmul.f32 %v5341_v34, %v7055_v25  ;;  %v3120_v34 = vsel %vm78_vm0, %v3118_v61, 0.0 }
 0xd9c   :  { %2051 = vst.msk [vmem:[%s8373_s4 + $0x10] sm:$0xff] %vm78_vm0, %v2019_v9  ;;  %v1988_v14 = vmax.f32 %v1956_v44, 0.0  ;;  %v1921_v23 = vmul.f32 %v7266_v8, %v1885_v53 }
 0xd9d   :  { %v5343_v49 = vpop.eup %5342 }
 0xd9e   :  { %v5345_v11 = vpop.eup %5344  ;;  %v2020_v10 = vadd.f32 %v5467_v5, %v1988_v14  ;;  %v1957_v59 = vadd.f32 %v7272_v7, %v1921_v23  ;;  %v1887_v25 = vmul.f32 %v5343_v49, %v7052_v41  ;;  %v5468_v41 = vld [vmem:[%s8372_s0 + $0x20] sm:$0xff]  ;;  %v5469_v14 = vld [vmem:[%s8372_s0 + $0x30] sm:$0xff]  ;;  %v5470_v49 = vld [vmem:[%s8372_s0 + $0x28] sm:$0xff] }
 0xd9f   :  { %v1886_v32 = vmul.f32 %v5345_v11, %v7061_v15  ;;  %v3110_v47 = vpop.permute.xlu1 %3109 }
 0xda0   :  { %2052 = vst.msk [vmem:[%s8373_s4 + $0x18] sm:$0xff] %vm78_vm0, %v2020_v10  ;;  %v1989_v37 = vmax.f32 %v1957_v59, 0.0  ;;  %v1923_v22 = vmul.f32 %v7266_v8, %v1887_v25  ;;  %v3117_v29 = vmul.f32 %v3110_v47, %v6750_v62 }
 0xda1   :  { %v1922_v56 = vmul.f32 %v7266_v8, %v1886_v32 }
 0xda2   :  { %v2021_v17 = vadd.f32 %v5468_v41, %v1989_v37  ;;  %v1959_v15 = vadd.f32 %v7272_v7, %v1923_v22  ;;  %v3119_v16 = vsel %vm78_vm0, %v3117_v29, 0.0 }
 0xda3   :  { %v1958_v9 = vadd.f32 %v7272_v7, %v1922_v56  ;;  %v3121_v44 = vadd.f32 %v3120_v34, %v3119_v16 }
 0xda4   :  { %2053 = vst.msk [vmem:[%s8373_s4 + $0x20] sm:$0xff] %vm78_vm0, %v2021_v17  ;;  %v1991_v62 = vmax.f32 %v1959_v15, 0.0 }
 0xda5   :  { %v1990_v53 = vmax.f32 %v1958_v9, 0.0  ;;  %v3122_v26 = vrot.slane %v3121_v44, 4 }
 0xda6   :  { %v2023_v23 = vadd.f32 %v5469_v14, %v1991_v62 }
 0xda7   :  { %v2022_v11 = vadd.f32 %v5470_v49, %v1990_v53  ;;  %v3123_v5 = vadd.f32 %v3122_v26, %v3121_v44 }
 0xda8   :  { %2055 = vst.msk [vmem:[%s8373_s4 + $0x30] sm:$0xff] %vm78_vm0, %v2023_v23 }
 0xda9   :  { %2054 = vst.msk [vmem:[%s8373_s4 + $0x28] sm:$0xff] %vm78_vm0, %v2022_v11  ;;  %v3124_v10 = vrot.slane %v3123_v5, 2 }
 0xdab   :  { %v3125_v59 = vadd.f32 %v3124_v10, %v3123_v5 }
 0xdad   :  { %v3126_v25 = vrot.slane %v3125_v59, 1 }
 0xdaf   :  { %v3127_v61 = vadd.f32 %v3126_v25, %v3125_v59 }
 0xdb1   :  { %v4316_v32 = vmul.f32 -1.442695, %v3127_v61 }
 0xdb3   :  { %5346 = vpow2.f32 %v4316_v32 }
 0xdbd   :  { %v5347_v47 = vpop.eup %5346 }
 0xdbe   :  { %v3131_v37 = vadd.f32 1.0, %v5347_v47 }
 0xdc0   :  { %5348 = vrcp.f32 %v3131_v37 }
 0xdc3   :  { %v1715_v22 = vpop.xlane.xlu0 %1714 }
 0xdc4   :  { %v1793_v29 = vmul.f32 0.125, %v1715_v22 }
 0xdc6   :  { %v1825_v56 = vadd.f32 1e-05, %v1793_v29 }
 0xdc7   :  { %v1721_v41 = vpop.xlane.xlu0 %1720 }
 0xdc8   :  { %5350 = vrsqrt.f32 %v1825_v56  ;;  %v1795_v17 = vmul.f32 0.125, %v1721_v41 }
 0xdca   :  { %v7347_v34 = vpop.eup %5348  ;;  %v1827_v16 = vadd.f32 1e-05, %v1795_v17 }
 0xdcb   :  { %v1727_v15 = vpop.xlane.xlu0 %1726  ;;  %v7351_v9 = vmul.f32 %v7347_v34, %v7086_v43  ;;  %v7355_v62 = vmul.f32 %v7347_v34, %v7088_v31  ;;  %v7359_v53 = vmul.f32 %v7347_v34, %v7090_v63  ;;  %v7363_v26 = vmul.f32 %v7347_v34, %v7098_v3 }
 0xdcc   :  { %v7367_v14 = vmul.f32 %v7347_v34, %v7100_v21  ;;  %v7371_v43 = vmul.f32 %v7347_v34, %v7102_v19  ;;  %v7375_v31 = vmul.f32 %v7347_v34, %v7209_v30  ;;  %5352 = vrsqrt.f32 %v1827_v16 }
 0xdcd   :  { %v7379_v63 = vmul.f32 %v7347_v34, %v7218_v13  ;;  %v7383_v3 = vmul.f32 %v7347_v34, %v7220_v12  ;;  %v7388_v19 = vmul.f32 %v7347_v34, %v7223_v20  ;;  %v1797_v11 = vmul.f32 0.125, %v1727_v15 }
 0xdce   :  { %v3490_v30 = vsel %vm78_vm0, %v7351_v9, 0.0  ;;  %v7394_v10 = vmul.f32 %v7347_v34, %v7104_v58  ;;  %v3487_v12 = vsel %vm78_vm0, %v7355_v62, 0.0  ;;  %v7405_v58 = vmul.f32 %v7347_v34, %v7114_v2 }
 0xdcf   :  { %v1733_v44 = vpop.xlane.xlu0 %1732  ;;  %3491 = vadd.xlane.f32.xlu1 %v3490_v30  ;;  %v1829_v25 = vadd.f32 1e-05, %v1797_v11  ;;  %3488 = vadd.xlane.f32.xlu0 %v3487_v12  ;;  %v3493_v17 = vsel %vm78_vm0, %v7363_v26, 0.0  ;;  %v7414_v2 = vmul.f32 %v7347_v34, %v7119_v27  ;;  %v5471_v27 = vld [vmem:[%s8372_s0 + $0x40] sm:$0xff]  ;;  %v3502_v12 = vsel %vm78_vm0, %v7367_v14, 0.0 }
 0xdd0   :  { %v1799_v13 = vmul.f32 0.125, %v1733_v44  ;;  %v7418_v44 = vmul.f32 %v7347_v34, %v7121_v0 }
 0xdd1   :  { %v1712_v23 = vpop.xlane.xlu1 %1711  ;;  %5354 = vrsqrt.f32 %v1829_v25 }
 0xdd2   :  { %v5351_v49 = vpop.eup %5350  ;;  %v1792_v59 = vmul.f32 0.125, %v1712_v23  ;;  %v1831_v47 = vadd.f32 1e-05, %v1799_v13 }
 0xdd3   :  { %v1889_v21 = vmul.f32 %v5351_v49, %v7079_v6  ;;  %v1739_v5 = vpop.xlane.xlu0 %1738  ;;  %v7400_v6 = vmul.f32 %v7347_v34, %v7112_v33  ;;  %v3496_v33 = vsel %vm78_vm0, %v7359_v53, 0.0  ;;  %3494 = vadd.xlane.f32.xlu0 %v3493_v17 }
 0xdd4   :  { %v1801_v61 = vmul.f32 0.125, %v1739_v5  ;;  %v1824_v37 = vadd.f32 1e-05, %v1792_v59  ;;  %5356 = vrsqrt.f32 %v1831_v47  ;;  %3497 = vadd.xlane.f32.xlu1 %v3496_v33  ;;  %v7426_v5 = vmul.f32 %v7347_v34, %v7131_v52 }
 0xdd5   :  { %v1925_v20 = vmul.f32 %v7266_v8, %v1889_v21  ;;  %v1718_v32 = vpop.xlane.xlu1 %1717  ;;  %v7422_v21 = vmul.f32 %v7347_v34, %v7129_v24  ;;  %v3499_v24 = vsel %vm78_vm0, %v7371_v43, 0.0  ;;  %v7437_v52 = vmul.f32 %v7347_v34, %v7138_v18 }
 0xdd6   :  { %v1794_v22 = vmul.f32 0.125, %v1718_v32  ;;  %v1833_v56 = vadd.f32 1e-05, %v1801_v61  ;;  %5358 = vrsqrt.f32 %v1824_v37  ;;  %v5353_v59 = vpop.eup %5352  ;;  %v7441_v61 = vmul.f32 %v7347_v34, %v7140_v4 }
 0xdd7   :  { %v1961_v29 = vadd.f32 %v7272_v7, %v1925_v20  ;;  %v1745_v41 = vpop.xlane.xlu0 %1744  ;;  %v7445_v32 = vmul.f32 %v7347_v34, %v7148_v55  ;;  %v1891_v47 = vmul.f32 %v5353_v59, %v7082_v39  ;;  %3500 = vadd.xlane.f32.xlu0 %v3499_v24  ;;  %v7454_v18 = vmul.f32 %v7347_v34, %v7150_v28 }
 0xdd8   :  { %v1826_v15 = vadd.f32 1e-05, %v1794_v22  ;;  %v1803_v16 = vmul.f32 0.125, %v1745_v41  ;;  %5360 = vrsqrt.f32 %v1833_v56  ;;  %3503 = vadd.xlane.f32.xlu1 %v3502_v12  ;;  %v7458_v55 = vmul.f32 %v7347_v34, %v7158_v40 }
 0xdd9   :  { %v1993_v23 = vmax.f32 %v1961_v29, 0.0  ;;  %v1724_v49 = vpop.xlane.xlu1 %1723  ;;  %v7462_v29 = vmul.f32 %v7347_v34, %v7160_v1  ;;  %v1927_v33 = vmul.f32 %v7266_v8, %v1891_v47  ;;  %v3508_v39 = vsel %vm78_vm0, %v7394_v10, 0.0 }
 0xdda   :  { %v1835_v11 = vadd.f32 1e-05, %v1803_v16  ;;  %v1796_v30 = vmul.f32 0.125, %v1724_v49  ;;  %5362 = vrsqrt.f32 %v1826_v15  ;;  %v3505_v28 = vsel %vm78_vm0, %v7400_v6, 0.0 }
 0xddb   :  { %v2025_v0 = vadd.f32 %v5471_v27, %v1993_v23  ;;  %v1751_v13 = vpop.xlane.xlu0 %1750  ;;  %v5355_v15 = vpop.eup %5354  ;;  %v1963_v40 = vadd.f32 %v7272_v7, %v1927_v33  ;;  %3506 = vadd.xlane.f32.xlu0 %v3505_v28  ;;  %v3514_v1 = vsel %vm78_vm0, %v7405_v58, 0.0  ;;  %v3511_v16 = vsel %vm78_vm0, %v7414_v2, 0.0 }
 0xddc   :  { %5364 = vrsqrt.f32 %v1835_v11  ;;  %v1828_v20 = vadd.f32 1e-05, %v1796_v30  ;;  %v1805_v25 = vmul.f32 0.125, %v1751_v13  ;;  %3509 = vadd.xlane.f32.xlu1 %v3508_v39  ;;  %v3520_v49 = vsel %vm78_vm0, %v7418_v44, 0.0 }
 0xddd   :  { %2057 = vst.msk [vmem:[%s8373_s4 + $0x40] sm:$0xff] %vm78_vm0, %v2025_v0  ;;  %v1730_v37 = vpop.xlane.xlu1 %1729  ;;  %v1893_v30 = vmul.f32 %v5355_v15, %v7093_v57  ;;  %v1995_v13 = vmax.f32 %v1963_v40, 0.0  ;;  %v3517_v24 = vsel %vm78_vm0, %v7422_v21, 0.0  ;;  %v3523_v28 = vsel %vm78_vm0, %v7437_v52, 0.0 }
 0xdde   :  { %5366 = vrsqrt.f32 %v1828_v20  ;;  %v1837_v4 = vadd.f32 1e-05, %v1805_v25  ;;  %v1798_v22 = vmul.f32 0.125, %v1730_v37  ;;  %v5357_v11 = vpop.eup %5356  ;;  %v3526_v20 = vsel %vm78_vm0, %v7426_v5, 0.0 }
 0xddf   :  { %v1757_v56 = vpop.xlane.xlu0 %1756  ;;  %v1895_v59 = vmul.f32 %v5357_v11, %v7107_v46  ;;  %v1929_v47 = vmul.f32 %v7266_v8, %v1893_v30  ;;  %3512 = vadd.xlane.f32.xlu0 %v3511_v16 }
 0xde0   :  { %5368 = vrsqrt.f32 %v1837_v4  ;;  %v1830_v41 = vadd.f32 1e-05, %v1798_v22  ;;  %v1807_v17 = vmul.f32 0.125, %v1757_v56  ;;  %v5359_v12 = vpop.eup %5358  ;;  %3515 = vadd.xlane.f32.xlu1 %v3514_v1  ;;  %v5472_v22 = vld [vmem:[%s8372_s0 + $0x50] sm:$0xff] }
 0xde1   :  { %v1736_v23 = vpop.xlane.xlu1 %1735  ;;  %v1888_v37 = vmul.f32 %v5359_v12, %v7117_v45  ;;  %v2027_v46 = vadd.f32 %v5472_v22, %v1995_v13  ;;  %v1931_v33 = vmul.f32 %v7266_v8, %v1895_v59  ;;  %v1965_v45 = vadd.f32 %v7272_v7, %v1929_v47  ;;  %v5473_v47 = vld [vmem:[%s8372_s0 + $0x60] sm:$0xff]  ;;  %v5474_v22 = vld [vmem:[%s8372_s0 + $0x70] sm:$0xff] }
 0xde2   :  { %5370 = vrsqrt.f32 %v1830_v41  ;;  %v1839_v27 = vadd.f32 1e-05, %v1807_v17  ;;  %v1800_v0 = vmul.f32 0.125, %v1736_v23  ;;  %v5361_v25 = vpop.eup %5360 }
 0xde3   :  { %v1897_v39 = vmul.f32 %v5361_v25, %v7124_v38  ;;  %v1924_v17 = vmul.f32 %v7266_v8, %v1888_v37  ;;  %2059 = vst.msk [vmem:[%s8373_s4 + $0x50] sm:$0xff] %vm78_vm0, %v2027_v46  ;;  %v1967_v38 = vadd.f32 %v7272_v7, %v1931_v33  ;;  %v1997_v11 = vmax.f32 %v1965_v45, 0.0  ;;  %3518 = vadd.xlane.f32.xlu0 %v3517_v24 }
 0xde4   :  { %5372 = vrsqrt.f32 %v1839_v27  ;;  %v1832_v57 = vadd.f32 1e-05, %v1800_v0  ;;  %v5363_v4 = vpop.eup %5362  ;;  %3521 = vadd.xlane.f32.xlu1 %v3520_v49 }
 0xde5   :  { %v1742_v56 = vpop.xlane.xlu1 %1741  ;;  %v1890_v15 = vmul.f32 %v5363_v4, %v7134_v36  ;;  %v1933_v40 = vmul.f32 %v7266_v8, %v1897_v39  ;;  %v1960_v30 = vadd.f32 %v7272_v7, %v1924_v17  ;;  %v3532_v36 = vsel %vm78_vm0, %v7441_v61, 0.0 }
 0xde6   :  { %v5365_v41 = vpop.eup %5364  ;;  %5374 = vrsqrt.f32 %v1832_v57  ;;  %v1802_v16 = vmul.f32 0.125, %v1742_v56  ;;  %v1999_v0 = vmax.f32 %v1967_v38, 0.0  ;;  %v2029_v37 = vadd.f32 %v5473_v47, %v1997_v11  ;;  %v5475_v56 = vld [vmem:[%s8372_s0 + $0x38] sm:$0xff] }
 0xde7   :  { %v1899_v1 = vmul.f32 %v5365_v41, %v7143_v35  ;;  %v1926_v27 = vmul.f32 %v7266_v8, %v1890_v15  ;;  %v1969_v12 = vadd.f32 %v7272_v7, %v1933_v40  ;;  %v1992_v57 = vmax.f32 %v1960_v30, 0.0  ;;  %v5476_v15 = vld [vmem:[%s8372_s0 + $0x80] sm:$0xff]  ;;  %3524 = vadd.xlane.f32.xlu0 %v3523_v28 }
 0xde8   :  { %v5367_v23 = vpop.eup %5366  ;;  %v1834_v4 = vadd.f32 1e-05, %v1802_v16  ;;  %v2031_v46 = vadd.f32 %v5474_v22, %v1999_v0  ;;  %2061 = vst.msk [vmem:[%s8373_s4 + $0x60] sm:$0xff] %vm78_vm0, %v2029_v37  ;;  %3527 = vadd.xlane.f32.xlu1 %v3526_v20  ;;  %v5477_v20 = vld [vmem:[%s8372_s0 + $0x48] sm:$0xff]  ;;  %v3529_v37 = vsel %vm78_vm0, %v7445_v32, 0.0 }
 0xde9   :  { %v1935_v13 = vmul.f32 %v7266_v8, %v1899_v1  ;;  %v1892_v59 = vmul.f32 %v5367_v23, %v7153_v51  ;;  %v1748_v35 = vpop.xlane.xlu1 %1747  ;;  %v1962_v49 = vadd.f32 %v7272_v7, %v1926_v27  ;;  %v2001_v33 = vmax.f32 %v1969_v12, 0.0 }
 0xdea   :  { %v5369_v25 = vpop.eup %5368  ;;  %v2024_v41 = vadd.f32 %v5475_v56, %v1992_v57  ;;  %5376 = vrsqrt.f32 %v1834_v4  ;;  %2063 = vst.msk [vmem:[%s8373_s4 + $0x70] sm:$0xff] %vm78_vm0, %v2031_v46  ;;  %v1804_v27 = vmul.f32 0.125, %v1748_v35 }
 0xdeb   :  { %v1971_v51 = vadd.f32 %v7272_v7, %v1935_v13  ;;  %v1928_v24 = vmul.f32 %v7266_v8, %v1892_v59  ;;  %v1994_v45 = vmax.f32 %v1962_v49, 0.0  ;;  %v1901_v17 = vmul.f32 %v5369_v25, %v7163_v60  ;;  %3530 = vadd.xlane.f32.xlu0 %v3529_v37  ;;  %v8571_v37 = vld [vmem:[#allocation16_spill] sm:$0xff] }
 0xdec   :  { %v5371_v39 = vpop.eup %5370  ;;  %v2033_v38 = vadd.f32 %v5476_v15, %v2001_v33  ;;  %2056 = vst.msk [vmem:[%s8373_s4 + $0x38] sm:$0xff] %vm78_vm0, %v2024_v41  ;;  %v1836_v47 = vadd.f32 1e-05, %v1804_v27  ;;  %3533 = vadd.xlane.f32.xlu1 %v3532_v36  ;;  %v3535_v15 = vsel %vm78_vm0, %v7458_v55, 0.0 }
 0xded   :  { %v2003_v40 = vmax.f32 %v1971_v51, 0.0  ;;  %v1964_v1 = vadd.f32 %v7272_v7, %v1928_v24  ;;  %v1894_v16 = vmul.f32 %v5371_v39, %v7173_v42  ;;  %v1754_v23 = vpop.xlane.xlu1 %1753  ;;  %v2026_v11 = vadd.f32 %v5477_v20, %v1994_v45  ;;  %v5478_v42 = vld [vmem:[%s8372_s0 + $0x90] sm:$0xff]  ;;  %v5480_v45 = vld [vmem:[%s8372_s0 + $0xa0] sm:$0xff] }
 0xdee   :  { %v5373_v60 = vpop.eup %5372  ;;  %v1937_v30 = vmul.f32 %v7266_v8, %v1901_v17  ;;  %v1806_v0 = vmul.f32 0.125, %v1754_v23  ;;  %2065 = vst.msk [vmem:[%s8373_s4 + $0x80] sm:$0xff] %vm78_vm0, %v2033_v38  ;;  %5378 = vrsqrt.f32 %v1836_v47  ;;  %v3538_v51 = vsel %vm78_vm0, %v7454_v18, 0.0 }
 0xdef   :  { %v2035_v28 = vadd.f32 %v5478_v42, %v2003_v40  ;;  %v1996_v12 = vmax.f32 %v1964_v1, 0.0  ;;  %v1930_v13 = vmul.f32 %v7266_v8, %v1894_v16  ;;  %v1903_v59 = vmul.f32 %v5373_v60, %v7184_v50  ;;  %2058 = vst.msk [vmem:[%s8373_s4 + $0x48] sm:$0xff] %vm78_vm0, %v2026_v11  ;;  %v5479_v50 = vld [vmem:[%s8372_s0 + $0x58] sm:$0xff]  ;;  %v5481_v40 = vld [vmem:[%s8372_s0 + $0x68] sm:$0xff]  ;;  %3536 = vadd.xlane.f32.xlu0 %v3535_v15  ;;  %v8568_v60 = vld [vmem:[#allocation6_spill] sm:$0xff] }
 0xdf0   :  { %v5375_v25 = vpop.eup %5374  ;;  %v1973_v35 = vadd.f32 %v7272_v7, %v1937_v30  ;;  %v1838_v57 = vadd.f32 1e-05, %v1806_v0  ;;  %3539 = vadd.xlane.f32.xlu1 %v3538_v51  ;;  %v7591_v20 = vmul.f32 %v7347_v34, %v8568_v60  ;;  %v5482_v11 = vld [vmem:[%s8372_s0 + $0xb0] sm:$0xff]  ;;  %v5484_v15 = vld [vmem:[%s8372_s0 + $0x88] sm:$0xff] }
 0xdf1   :  { %2067 = vst.msk [vmem:[%s8373_s4 + $0x90] sm:$0xff] %vm78_vm0, %v2035_v28  ;;  %v2028_v49 = vadd.f32 %v5479_v50, %v1996_v12  ;;  %v1966_v4 = vadd.f32 %v7272_v7, %v1930_v13  ;;  %v1939_v22 = vmul.f32 %v7266_v8, %v1903_v59  ;;  %v1896_v36 = vmul.f32 %v5375_v25, %v7194_v48  ;;  %v1760_v46 = vpop.xlane.xlu1 %1759  ;;  %v8569_v0 = vld [vmem:[#allocation28_spill] sm:$0xff]  ;;  %v8570_v12 = vld [vmem:[#allocation3_spill] sm:$0xff]  ;;  %v5483_v25 = vld [vmem:[%s8372_s0 + $0x78] sm:$0xff] }
 0xdf2   :  { %v2005_v33 = vmax.f32 %v1973_v35, 0.0  ;;  %v1808_v24 = vmul.f32 0.125, %v1760_v46  ;;  %5380 = vrsqrt.f32 %v1838_v57  ;;  %v7578_v48 = vmul.f32 %v7347_v34, %v7168_v54 }
 0xdf3   :  { %2060 = vst.msk [vmem:[%s8373_s4 + $0x58] sm:$0xff] %vm78_vm0, %v2028_v49  ;;  %v1998_v39 = vmax.f32 %v1966_v4, 0.0  ;;  %v1975_v56 = vadd.f32 %v7272_v7, %v1939_v22  ;;  %v1932_v41 = vmul.f32 %v7266_v8, %v1896_v36  ;;  %v3544_v28 = vsel %vm78_vm0, %v7462_v29, 0.0  ;;  %v8572_v22 = vld [vmem:[#allocation17_spill] sm:$0xff] }
 0xdf4   :  { %v2037_v17 = vadd.f32 %v5480_v45, %v2005_v33  ;;  %v1840_v38 = vadd.f32 1e-05, %v1808_v24  ;;  %v5377_v54 = vpop.eup %5376  ;;  %v7609_v13 = vmul.f32 %v7347_v34, %v8570_v12  ;;  %3545 = vadd.xlane.f32.xlu1 %v3544_v28  ;;  %v3541_v59 = vsel %vm78_vm0, %v7578_v48, 0.0  ;;  %v8573_v24 = vld [vmem:[#allocation29_spill] sm:$0xff]  ;;  %v8575_v45 = vld [vmem:[#allocation20_spill] sm:$0xff] }
 0xdf5   :  { %v2030_v1 = vadd.f32 %v5481_v40, %v1998_v39  ;;  %v2007_v16 = vmax.f32 %v1975_v56, 0.0  ;;  %v1968_v23 = vadd.f32 %v7272_v7, %v1932_v41  ;;  %v1898_v42 = vmul.f32 %v5377_v54, %v8569_v0  ;;  %3542 = vadd.xlane.f32.xlu0 %v3541_v59  ;;  %v8574_v56 = vld [vmem:[#allocation32_spill] sm:$0xff] }
 0xdf6   :  { %2069 = vst.msk [vmem:[%s8373_s4 + $0xa0] sm:$0xff] %vm78_vm0, %v2037_v17  ;;  %5382 = vrsqrt.f32 %v1840_v38  ;;  %v7623_v57 = vmul.f32 %v7347_v34, %v8571_v37  ;;  %v3550_v49 = vsel %vm78_vm0, %v7591_v20, 0.0  ;;  %v7634_v36 = vmul.f32 %v7347_v34, %v8572_v22  ;;  %v8578_v28 = vld [vmem:[#allocation24_spill] sm:$0xff] }
 0xdf7   :  { %2062 = vst.msk [vmem:[%s8373_s4 + $0x68] sm:$0xff] %vm78_vm0, %v2030_v1  ;;  %v2039_v30 = vadd.f32 %v5482_v11, %v2007_v16  ;;  %v2000_v27 = vmax.f32 %v1968_v23, 0.0  ;;  %v1934_v47 = vmul.f32 %v7266_v8, %v1898_v42  ;;  %v3547_v46 = vsel %vm78_vm0, %v7609_v13, 0.0  ;;  %v8576_v23 = vld [vmem:[#allocation21_spill] sm:$0xff] }
 0xdf8   :  { %v5379_v4 = vpop.eup %5378  ;;  %3551 = vadd.xlane.f32.xlu1 %v3550_v49  ;;  %v7642_v17 = vmul.f32 %v7347_v34, %v8575_v45  ;;  %v3556_v1 = vsel %vm78_vm0, %v7623_v57, 0.0  ;;  %v7652_v54 = vmul.f32 %v7347_v34, %v8576_v23  ;;  %v3553_v11 = vsel %vm78_vm0, %v7634_v36, 0.0  ;;  %v5487_v45 = vld [vmem:[%s8372_s0 + $0xb8] sm:$0xff] }
 0xdf9   :  { %2071 = vst.msk [vmem:[%s8373_s4 + $0xb0] sm:$0xff] %vm78_vm0, %v2039_v30  ;;  %v2032_v35 = vadd.f32 %v5483_v25, %v2000_v27  ;;  %v1970_v50 = vadd.f32 %v7272_v7, %v1934_v47  ;;  %v1900_v39 = vmul.f32 %v5379_v4, %v8573_v24  ;;  %3548 = vadd.xlane.f32.xlu0 %v3547_v46  ;;  %v8577_v27 = vld [vmem:[#allocation33_spill] sm:$0xff]  ;;  %v3574_v23 = vsel %vm78_vm0, %v7375_v31, 0.0 }
 0xdfa   :  { %v7666_v12 = vmul.f32 %v7347_v34, %v8578_v28  ;;  %v8579_v47 = vld [vmem:[#allocation25_spill] sm:$0xff]  ;;  %v3559_v49 = vsel %vm78_vm0, %v7652_v54, 0.0 }
 0xdfb   :  { %2064 = vst.msk [vmem:[%s8373_s4 + $0x78] sm:$0xff] %vm78_vm0, %v2032_v35  ;;  %v2002_v51 = vmax.f32 %v1970_v50, 0.0  ;;  %v1936_v40 = vmul.f32 %v7266_v8, %v1900_v39  ;;  %v3562_v35 = vsel %vm78_vm0, %v7642_v17, 0.0  ;;  %v7673_v37 = vmul.f32 %v7347_v34, %v8579_v47  ;;  %v5485_v4 = vld [vmem:[%s8372_s0 + $0x98] sm:$0xff] }
 0xdfc   :  { %v5381_v33 = vpop.eup %5380  ;;  %3557 = vadd.xlane.f32.xlu1 %v3556_v1  ;;  %v8580_v34 = vld [vmem:[#allocation37_spill] sm:$0xff]  ;;  %v3568_v39 = vsel %vm78_vm0, %v7666_v12, 0.0 }
 0xdfd   :  { %v1902_v41 = vmul.f32 %v5381_v33, %v8574_v56  ;;  %v2034_v38 = vadd.f32 %v5484_v15, %v2002_v51  ;;  %v1972_v30 = vadd.f32 %v7272_v7, %v1936_v40  ;;  %3554 = vadd.xlane.f32.xlu0 %v3553_v11  ;;  %v1618_v51 = vmul.f32 0.125, %v8580_v34  ;;  %v8581_v56 = vld [vmem:[#allocation36_spill] sm:$0xff]  ;;  %v8583_v1 = vld [vmem:[#allocation41_spill] sm:$0xff] }
 0xdff   :  { %v1938_v60 = vmul.f32 %v7266_v8, %v1902_v41  ;;  %2066 = vst.msk [vmem:[%s8373_s4 + $0x88] sm:$0xff] %vm78_vm0, %v2034_v38  ;;  %v2004_v59 = vmax.f32 %v1972_v30, 0.0  ;;  %v1617_v41 = vmul.f32 0.125, %v8581_v56  ;;  %v8582_v38 = vld [vmem:[#allocation9_spill] sm:$0xff]  ;;  %v8585_v30 = vld [vmem:[#allocation40_spill] sm:$0xff] }
 0xe00   :  { %v5383_v16 = vpop.eup %5382  ;;  %3563 = vadd.xlane.f32.xlu1 %v3562_v35  ;;  %v7702_v40 = vsub.f32 %v8582_v38, %v1618_v51  ;;  %v3580_v35 = vsel %vm78_vm0, %v7383_v3, 0.0  ;;  %v8591_v51 = vld [vmem:[#allocation14_spill] sm:$0xff] }
 0xe01   :  { %v1904_v0 = vmul.f32 %v5383_v16, %v8577_v27  ;;  %v1974_v42 = vadd.f32 %v7272_v7, %v1938_v60  ;;  %v2036_v22 = vadd.f32 %v5485_v4, %v2004_v59  ;;  %3560 = vadd.xlane.f32.xlu0 %v3559_v49  ;;  %v1620_v16 = vmul.f32 0.125, %v8583_v1  ;;  %v8584_v60 = vld [vmem:[#allocation45_spill] sm:$0xff]  ;;  %v8587_v59 = vld [vmem:[#allocation47_spill] sm:$0xff]  ;;  %v8589_v4 = vld [vmem:[#allocation46_spill] sm:$0xff] }
 0xe02   :  { %v7712_v11 = vsub.f32 %v8584_v60, %v1617_v41  ;;  %v1619_v27 = vmul.f32 0.125, %v8585_v30  ;;  %v1682_v47 = vmul.f32 %v7702_v40, %v7702_v40  ;;  %v8592_v41 = vld [vmem:[#allocation2_spill] sm:$0xff] }
 0xe03   :  { %v1940_v25 = vmul.f32 %v7266_v8, %v1904_v0  ;;  %v2006_v50 = vmax.f32 %v1974_v42, 0.0  ;;  %v5486_v8 = vld [vmem:[%s8372_s0 + $0xa8] sm:$0xff]  ;;  %2068 = vst.msk [vmem:[%s8373_s4 + $0x98] sm:$0xff] %vm78_vm0, %v2036_v22  ;;  %v3571_v0 = vsel %vm78_vm0, %v7379_v63, 0.0  ;;  %v8586_v42 = vld [vmem:[#allocation8_spill] sm:$0xff]  ;;  %v1621_v22 = vmul.f32 0.125, %v8589_v4 }
 0xe04   :  { %3569 = vadd.xlane.f32.xlu1 %v3568_v39  ;;  %v7718_v28 = vsub.f32 %v8586_v42, %v1620_v16  ;;  %v1764_v39 = vsel %vm78_vm0, %v1682_v47, 0.0  ;;  %v8594_v16 = vld [vmem:[#allocation11_spill] sm:$0xff] }
 0xe05   :  { %v1976_v46 = vadd.f32 %v7272_v7, %v1940_v25  ;;  %v2038_v33 = vadd.f32 %v5486_v8, %v2006_v50  ;;  %v3565_v7 = vsel %vm78_vm0, %v7673_v37, 0.0  ;;  %v1622_v25 = vmul.f32 0.125, %v8587_v59  ;;  %v8588_v50 = vld [vmem:[#allocation10_spill] sm:$0xff] }
 0xe06   :  { %3566 = vadd.xlane.f32.xlu0 %v3565_v7  ;;  %v7726_v49 = vsub.f32 %v8588_v50, %v1619_v27  ;;  %v1681_v8 = vmul.f32 %v7712_v11, %v7712_v11  ;;  %v1684_v56 = vmul.f32 %v7718_v28, %v7718_v28  ;;  %v7741_v7 = vsub.f32 %v8592_v41, %v1621_v22  ;;  %v8595_v27 = vld [vmem:[#allocation48_spill] sm:$0xff] }
 0xe07   :  { %v2008_v24 = vmax.f32 %v1976_v46, 0.0  ;;  %2070 = vst.msk [vmem:[%s8373_s4 + $0xa8] sm:$0xff] %vm78_vm0, %v2038_v33  ;;  %v3577_v46 = vsel %vm78_vm0, %v7388_v19, 0.0  ;;  %v8590_v33 = vld [vmem:[#allocation44_spill] sm:$0xff] }
 0xe08   :  { %3575 = vadd.xlane.f32.xlu1 %v3574_v23  ;;  %v7734_v34 = vsub.f32 %v8590_v33, %v1622_v25  ;;  %v1761_v38 = vsel %vm78_vm0, %v1681_v8, 0.0  ;;  %v1683_v1 = vmul.f32 %v7726_v49, %v7726_v49  ;;  %v1770_v60 = vsel %vm78_vm0, %v1684_v56, 0.0 }
 0xe09   :  { %v2040_v15 = vadd.f32 %v5487_v45, %v2008_v24  ;;  %v1624_v24 = vmul.f32 0.125, %v8591_v51  ;;  %v8593_v45 = vld [vmem:[#allocation13_spill] sm:$0xff]  ;;  %v1685_v59 = vmul.f32 %v7741_v7, %v7741_v7 }
 0xe0a   :  { %3572 = vadd.xlane.f32.xlu0 %v3571_v0  ;;  %v1686_v30 = vmul.f32 %v7734_v34, %v7734_v34  ;;  %v1767_v42 = vsel %vm78_vm0, %v1683_v1, 0.0 }
 0xe0b   :  { %2072 = vst.msk [vmem:[%s8373_s4 + $0xb8] sm:$0xff] %vm78_vm0, %v2040_v15  ;;  %v1623_v15 = vmul.f32 0.125, %v8593_v45  ;;  %v7748_v23 = vsub.f32 %v8594_v16, %v1624_v24  ;;  %v1773_v47 = vsel %vm78_vm0, %v1685_v59, 0.0 }
 0xe0c   :  { %3581 = vadd.xlane.f32.xlu1 %v3580_v35  ;;  %v1776_v25 = vsel %vm78_vm0, %v1686_v30, 0.0 }
 0xe0d   :  { %v7754_v0 = vsub.f32 %v8595_v27, %v1623_v15  ;;  %v1688_v35 = vmul.f32 %v7748_v23, %v7748_v23 }
 0xe0e   :  { %3578 = vadd.xlane.f32.xlu0 %v3577_v46 }
 0xe0f   :  { %v1687_v50 = vmul.f32 %v7754_v0, %v7754_v0  ;;  %v1782_v4 = vsel %vm78_vm0, %v1688_v35, 0.0 }
 0xe10   :  { %1765 = vadd.xlane.f32.xlu1 %v1764_v39 }
 0xe11   :  { %v1779_v22 = vsel %vm78_vm0, %v1687_v50, 0.0 }
 0xe12   :  { %1762 = vadd.xlane.f32.xlu0 %v1761_v38 }
 0xe14   :  { %1771 = vadd.xlane.f32.xlu1 %v1770_v60 }
 0xe16   :  { %1768 = vadd.xlane.f32.xlu0 %v1767_v42 }
 0xe18   :  { %1777 = vadd.xlane.f32.xlu1 %v1776_v25 }
 0xe1a   :  { %1774 = vadd.xlane.f32.xlu0 %v1773_v47 }
 0xe1c   :  { %1783 = vadd.xlane.f32.xlu1 %v1782_v4 }
 0xe1e   :  { %1780 = vadd.xlane.f32.xlu0 %v1779_v22 }
 0xe5c   :  { %v3492_v46 = vpop.xlane.xlu1 %3491  ;;  %v3489_v8 = vpop.xlane.xlu0 %3488 }
 0xe5d   :  { %v3584_v33 = vmul.f32 0.125, %v3492_v46  ;;  %v3583_v51 = vmul.f32 0.125, %v3489_v8 }
 0xe5f   :  { %v7768_v24 = vsub.f32 %v7351_v9, %v3584_v33  ;;  %v7771_v39 = vsub.f32 %v7355_v62, %v3583_v51 }
 0xe60   :  { %v3495_v41 = vpop.xlane.xlu0 %3494 }
 0xe61   :  { %v3498_v56 = vpop.xlane.xlu1 %3497  ;;  %v3648_v15 = vmul.f32 %v7768_v24, %v7768_v24  ;;  %v3585_v38 = vmul.f32 0.125, %v3495_v41  ;;  %v3647_v1 = vmul.f32 %v7771_v39, %v7771_v39 }
 0xe62   :  { %v3586_v45 = vmul.f32 0.125, %v3498_v56 }
 0xe63   :  { %v3682_v60 = vsel %vm78_vm0, %v3648_v15, 0.0  ;;  %v7782_v9 = vsub.f32 %v7363_v26, %v3585_v38  ;;  %v3679_v62 = vsel %vm78_vm0, %v3647_v1, 0.0 }
 0xe64   :  { %v7778_v16 = vsub.f32 %v7359_v53, %v3586_v45  ;;  %3683 = vadd.xlane.f32.xlu1 %v3682_v60  ;;  %3680 = vadd.xlane.f32.xlu0 %v3679_v62  ;;  %v3501_v27 = vpop.xlane.xlu0 %3500 }
 0xe65   :  { %v3504_v30 = vpop.xlane.xlu1 %3503  ;;  %v3587_v25 = vmul.f32 0.125, %v3501_v27  ;;  %v3649_v53 = vmul.f32 %v7782_v9, %v7782_v9 }
 0xe66   :  { %v3588_v42 = vmul.f32 0.125, %v3504_v30  ;;  %v3650_v59 = vmul.f32 %v7778_v16, %v7778_v16 }
 0xe67   :  { %v7794_v47 = vsub.f32 %v7371_v43, %v3587_v25  ;;  %v3685_v50 = vsel %vm78_vm0, %v3649_v53, 0.0 }
 0xe68   :  { %v7790_v35 = vsub.f32 %v7367_v14, %v3588_v42  ;;  %v3688_v26 = vsel %vm78_vm0, %v3650_v59, 0.0  ;;  %3686 = vadd.xlane.f32.xlu0 %v3685_v50  ;;  %v3507_v22 = vpop.xlane.xlu0 %3506 }
 0xe69   :  { %3689 = vadd.xlane.f32.xlu1 %v3688_v26  ;;  %v3510_v4 = vpop.xlane.xlu1 %3509  ;;  %v3589_v33 = vmul.f32 0.125, %v3507_v22  ;;  %v3651_v14 = vmul.f32 %v7794_v47, %v7794_v47 }
 0xe6a   :  { %v3590_v46 = vmul.f32 0.125, %v3510_v4  ;;  %v3652_v8 = vmul.f32 %v7790_v35, %v7790_v35 }
 0xe6b   :  { %v7806_v56 = vsub.f32 %v7400_v6, %v3589_v33  ;;  %v3691_v41 = vsel %vm78_vm0, %v3651_v14, 0.0 }
 0xe6c   :  { %v7802_v51 = vsub.f32 %v7394_v10, %v3590_v46  ;;  %v3694_v43 = vsel %vm78_vm0, %v3652_v8, 0.0  ;;  %3692 = vadd.xlane.f32.xlu0 %v3691_v41  ;;  %v3513_v15 = vpop.xlane.xlu0 %3512 }
 0xe6d   :  { %3695 = vadd.xlane.f32.xlu1 %v3694_v43  ;;  %v3516_v45 = vpop.xlane.xlu1 %3515  ;;  %v3591_v60 = vmul.f32 0.125, %v3513_v15  ;;  %v3653_v10 = vmul.f32 %v7806_v56, %v7806_v56 }
 0xe6e   :  { %v3592_v38 = vmul.f32 0.125, %v3516_v45  ;;  %v3654_v1 = vmul.f32 %v7802_v51, %v7802_v51 }
 0xe6f   :  { %v7818_v30 = vsub.f32 %v7414_v2, %v3591_v60  ;;  %v3697_v27 = vsel %vm78_vm0, %v3653_v10, 0.0 }
 0xe70   :  { %v7814_v62 = vsub.f32 %v7405_v58, %v3592_v38  ;;  %v3700_v6 = vsel %vm78_vm0, %v3654_v1, 0.0  ;;  %3698 = vadd.xlane.f32.xlu0 %v3697_v27  ;;  %v3519_v59 = vpop.xlane.xlu0 %3518 }
 0xe71   :  { %3701 = vadd.xlane.f32.xlu1 %v3700_v6  ;;  %v3522_v42 = vpop.xlane.xlu1 %3521  ;;  %v3593_v26 = vmul.f32 0.125, %v3519_v59  ;;  %v3655_v58 = vmul.f32 %v7818_v30, %v7818_v30 }
 0xe72   :  { %v3594_v25 = vmul.f32 0.125, %v3522_v42  ;;  %v3656_v53 = vmul.f32 %v7814_v62, %v7814_v62 }
 0xe73   :  { %v7830_v4 = vsub.f32 %v7422_v21, %v3593_v26  ;;  %v3703_v22 = vsel %vm78_vm0, %v3655_v58, 0.0 }
 0xe74   :  { %v7826_v50 = vsub.f32 %v7418_v44, %v3594_v25  ;;  %v3706_v2 = vsel %vm78_vm0, %v3656_v53, 0.0  ;;  %3704 = vadd.xlane.f32.xlu0 %v3703_v22  ;;  %v3525_v8 = vpop.xlane.xlu0 %3524 }
 0xe75   :  { %3707 = vadd.xlane.f32.xlu1 %v3706_v2  ;;  %v3528_v46 = vpop.xlane.xlu1 %3527  ;;  %v3595_v43 = vmul.f32 0.125, %v3525_v8  ;;  %v3657_v44 = vmul.f32 %v7830_v4, %v7830_v4 }
 0xe76   :  { %v3596_v33 = vmul.f32 0.125, %v3528_v46  ;;  %v3658_v14 = vmul.f32 %v7826_v50, %v7826_v50 }
 0xe77   :  { %v7842_v45 = vsub.f32 %v7437_v52, %v3595_v43  ;;  %v3709_v15 = vsel %vm78_vm0, %v3657_v44, 0.0 }
 0xe78   :  { %v7838_v41 = vsub.f32 %v7426_v5, %v3596_v33  ;;  %v3712_v21 = vsel %vm78_vm0, %v3658_v14, 0.0  ;;  %3710 = vadd.xlane.f32.xlu0 %v3709_v15  ;;  %v3531_v1 = vpop.xlane.xlu0 %3530 }
 0xe79   :  { %3713 = vadd.xlane.f32.xlu1 %v3712_v21  ;;  %v3534_v38 = vpop.xlane.xlu1 %3533  ;;  %v3597_v6 = vmul.f32 0.125, %v3531_v1  ;;  %v3659_v5 = vmul.f32 %v7842_v45, %v7842_v45 }
 0xe7a   :  { %v3598_v60 = vmul.f32 0.125, %v3534_v38  ;;  %v3660_v10 = vmul.f32 %v7838_v41, %v7838_v41 }
 0xe7b   :  { %v7854_v42 = vsub.f32 %v7445_v32, %v3597_v6  ;;  %v3715_v59 = vsel %vm78_vm0, %v3659_v5, 0.0 }
 0xe7c   :  { %v7850_v27 = vsub.f32 %v7441_v61, %v3598_v60  ;;  %v3718_v52 = vsel %vm78_vm0, %v3660_v10, 0.0  ;;  %3716 = vadd.xlane.f32.xlu0 %v3715_v59  ;;  %v3537_v53 = vpop.xlane.xlu0 %3536 }
 0xe7d   :  { %3719 = vadd.xlane.f32.xlu1 %v3718_v52  ;;  %v3540_v25 = vpop.xlane.xlu1 %3539  ;;  %v3599_v2 = vmul.f32 0.125, %v3537_v53  ;;  %v3661_v61 = vmul.f32 %v7854_v42, %v7854_v42 }
 0xe7e   :  { %v3600_v26 = vmul.f32 0.125, %v3540_v25  ;;  %v3662_v58 = vmul.f32 %v7850_v27, %v7850_v27 }
 0xe7f   :  { %v7866_v46 = vsub.f32 %v7458_v55, %v3599_v2  ;;  %v3721_v8 = vsel %vm78_vm0, %v3661_v61, 0.0 }
 0xe80   :  { %v7862_v22 = vsub.f32 %v7454_v18, %v3600_v26  ;;  %v3724_v32 = vsel %vm78_vm0, %v3662_v58, 0.0  ;;  %3722 = vadd.xlane.f32.xlu0 %v3721_v8 }
 0xe81   :  { %3725 = vadd.xlane.f32.xlu1 %v3724_v32  ;;  %v3546_v33 = vpop.xlane.xlu1 %3545  ;;  %v3663_v18 = vmul.f32 %v7866_v46, %v7866_v46 }
 0xe82   :  { %v3543_v14 = vpop.xlane.xlu0 %3542  ;;  %v3602_v43 = vmul.f32 0.125, %v3546_v33  ;;  %v3664_v44 = vmul.f32 %v7862_v22, %v7862_v22 }
 0xe83   :  { %v3601_v21 = vmul.f32 0.125, %v3543_v14  ;;  %v3727_v1 = vsel %vm78_vm0, %v3663_v18, 0.0 }
 0xe84   :  { %v7874_v15 = vsub.f32 %v7462_v29, %v3602_v43  ;;  %v3730_v55 = vsel %vm78_vm0, %v3664_v44, 0.0  ;;  %3728 = vadd.xlane.f32.xlu0 %v3727_v1 }
 0xe85   :  { %v7878_v38 = vsub.f32 %v7578_v48, %v3601_v21  ;;  %3731 = vadd.xlane.f32.xlu1 %v3730_v55  ;;  %v3552_v60 = vpop.xlane.xlu1 %3551 }
 0xe86   :  { %v3549_v10 = vpop.xlane.xlu0 %3548  ;;  %v3604_v6 = vmul.f32 0.125, %v3552_v60  ;;  %v3666_v5 = vmul.f32 %v7874_v15, %v7874_v15 }
 0xe87   :  { %v3603_v52 = vmul.f32 0.125, %v3549_v10  ;;  %v3665_v29 = vmul.f32 %v7878_v38, %v7878_v38 }
 0xe88   :  { %v7886_v59 = vsub.f32 %v7591_v20, %v3604_v6  ;;  %v3736_v48 = vsel %vm78_vm0, %v3666_v5, 0.0 }
 0xe89   :  { %v7890_v25 = vsub.f32 %v7609_v13, %v3603_v52  ;;  %v3733_v53 = vsel %vm78_vm0, %v3665_v29, 0.0  ;;  %3737 = vadd.xlane.f32.xlu1 %v3736_v48  ;;  %v3558_v26 = vpop.xlane.xlu1 %3557 }
 0xe8a   :  { %3734 = vadd.xlane.f32.xlu0 %v3733_v53  ;;  %v3555_v58 = vpop.xlane.xlu0 %3554  ;;  %v3606_v2 = vmul.f32 0.125, %v3558_v26  ;;  %v3668_v61 = vmul.f32 %v7886_v59, %v7886_v59 }
 0xe8b   :  { %v3605_v32 = vmul.f32 0.125, %v3555_v58  ;;  %v3667_v20 = vmul.f32 %v7890_v25, %v7890_v25 }
 0xe8c   :  { %v7898_v8 = vsub.f32 %v7623_v57, %v3606_v2  ;;  %v3742_v13 = vsel %vm78_vm0, %v3668_v61, 0.0 }
 0xe8d   :  { %v7902_v33 = vsub.f32 %v7634_v36, %v3605_v32  ;;  %v3739_v14 = vsel %vm78_vm0, %v3667_v20, 0.0  ;;  %3743 = vadd.xlane.f32.xlu1 %v3742_v13  ;;  %v3564_v43 = vpop.xlane.xlu1 %3563 }
 0xe8e   :  { %3740 = vadd.xlane.f32.xlu0 %v3739_v14  ;;  %v3561_v44 = vpop.xlane.xlu0 %3560  ;;  %v3608_v21 = vmul.f32 0.125, %v3564_v43  ;;  %v3670_v18 = vmul.f32 %v7898_v8, %v7898_v8 }
 0xe8f   :  { %v3607_v55 = vmul.f32 0.125, %v3561_v44  ;;  %v3669_v57 = vmul.f32 %v7902_v33, %v7902_v33 }
 0xe90   :  { %v7910_v1 = vsub.f32 %v7642_v17, %v3608_v21  ;;  %v3748_v36 = vsel %vm78_vm0, %v3670_v18, 0.0 }
 0xe91   :  { %v7914_v60 = vsub.f32 %v7652_v54, %v3607_v55  ;;  %v3745_v10 = vsel %vm78_vm0, %v3669_v57, 0.0  ;;  %3749 = vadd.xlane.f32.xlu1 %v3748_v36  ;;  %v3570_v6 = vpop.xlane.xlu1 %3569 }
 0xe92   :  { %3746 = vadd.xlane.f32.xlu0 %v3745_v10  ;;  %v3610_v52 = vmul.f32 0.125, %v3570_v6  ;;  %v3672_v29 = vmul.f32 %v7910_v1, %v7910_v1 }
 0xe93   :  { %v3567_v5 = vpop.xlane.xlu0 %3566  ;;  %v3671_v17 = vmul.f32 %v7914_v60, %v7914_v60 }
 0xe94   :  { %v3609_v48 = vmul.f32 0.125, %v3567_v5  ;;  %v7922_v53 = vsub.f32 %v7666_v12, %v3610_v52  ;;  %v3754_v54 = vsel %vm78_vm0, %v3672_v29, 0.0 }
 0xe95   :  { %v3751_v58 = vsel %vm78_vm0, %v3671_v17, 0.0  ;;  %3755 = vadd.xlane.f32.xlu1 %v3754_v54  ;;  %v3576_v2 = vpop.xlane.xlu1 %3575 }
 0xe96   :  { %v7926_v26 = vsub.f32 %v7673_v37, %v3609_v48  ;;  %3752 = vadd.xlane.f32.xlu0 %v3751_v58  ;;  %v3612_v32 = vmul.f32 0.125, %v3576_v2  ;;  %v3674_v20 = vmul.f32 %v7922_v53, %v7922_v53 }
 0xe97   :  { %v3573_v61 = vpop.xlane.xlu0 %3572 }
 0xe98   :  { %v3611_v13 = vmul.f32 0.125, %v3573_v61  ;;  %v3673_v12 = vmul.f32 %v7926_v26, %v7926_v26  ;;  %v7934_v14 = vsub.f32 %v7375_v31, %v3612_v32  ;;  %v3760_v37 = vsel %vm78_vm0, %v3674_v20, 0.0 }
 0xe99   :  { %3761 = vadd.xlane.f32.xlu1 %v3760_v37  ;;  %v3582_v21 = vpop.xlane.xlu1 %3581 }
 0xe9a   :  { %v7938_v43 = vsub.f32 %v7379_v63, %v3611_v13  ;;  %v3757_v44 = vsel %vm78_vm0, %v3673_v12, 0.0  ;;  %v3614_v55 = vmul.f32 0.125, %v3582_v21  ;;  %v3676_v57 = vmul.f32 %v7934_v14, %v7934_v14 }
 0xe9b   :  { %3758 = vadd.xlane.f32.xlu0 %v3757_v44  ;;  %v3579_v18 = vpop.xlane.xlu0 %3578 }
 0xe9c   :  { %v3613_v36 = vmul.f32 0.125, %v3579_v18  ;;  %v3675_v31 = vmul.f32 %v7938_v43, %v7938_v43  ;;  %v7946_v10 = vsub.f32 %v7383_v3, %v3614_v55  ;;  %v3766_v63 = vsel %vm78_vm0, %v3676_v57, 0.0 }
 0xe9d   :  { %3767 = vadd.xlane.f32.xlu1 %v3766_v63  ;;  %v1766_v52 = vpop.xlane.xlu1 %1765 }
 0xe9e   :  { %v7950_v6 = vsub.f32 %v7388_v19, %v3613_v36  ;;  %v3763_v5 = vsel %vm78_vm0, %v3675_v31, 0.0  ;;  %v1810_v48 = vmul.f32 0.125, %v1766_v52  ;;  %v3678_v17 = vmul.f32 %v7946_v10, %v7946_v10 }
 0xe9f   :  { %3764 = vadd.xlane.f32.xlu0 %v3763_v5  ;;  %v1763_v29 = vpop.xlane.xlu0 %1762 }
 0xea0   :  { %v1809_v54 = vmul.f32 0.125, %v1763_v29  ;;  %v3677_v3 = vmul.f32 %v7950_v6, %v7950_v6  ;;  %v1842_v58 = vadd.f32 1e-05, %v1810_v48  ;;  %v3772_v2 = vsel %vm78_vm0, %v3678_v17, 0.0 }
 0xea1   :  { %3773 = vadd.xlane.f32.xlu1 %v3772_v2  ;;  %v1772_v32 = vpop.xlane.xlu1 %1771 }
 0xea2   :  { %v1841_v61 = vadd.f32 1e-05, %v1809_v54  ;;  %v3769_v19 = vsel %vm78_vm0, %v3677_v3, 0.0  ;;  %5384 = vrsqrt.f32 %v1842_v58  ;;  %v1812_v13 = vmul.f32 0.125, %v1772_v32 }
 0xea3   :  { %3770 = vadd.xlane.f32.xlu0 %v3769_v19  ;;  %v1769_v20 = vpop.xlane.xlu0 %1768 }
 0xea4   :  { %5386 = vrsqrt.f32 %v1841_v61  ;;  %v1811_v12 = vmul.f32 0.125, %v1769_v20  ;;  %v1844_v37 = vadd.f32 1e-05, %v1812_v13  ;;  %v7964_v61 = vld [vmem:[%s8371_s3 + $0x4] ss:$0 sm:$0xff] }
 0xea5   :  { %v1778_v21 = vpop.xlane.xlu1 %1777 }
 0xea6   :  { %v1843_v44 = vadd.f32 1e-05, %v1811_v12  ;;  %5388 = vrsqrt.f32 %v1844_v37  ;;  %v1814_v55 = vmul.f32 0.125, %v1778_v21 }
 0xea7   :  { %v1775_v18 = vpop.xlane.xlu0 %1774 }
 0xea8   :  { %5390 = vrsqrt.f32 %v1843_v44  ;;  %v1813_v57 = vmul.f32 0.125, %v1775_v18  ;;  %v1846_v36 = vadd.f32 1e-05, %v1814_v55 }
 0xea9   :  { %v1784_v63 = vpop.xlane.xlu1 %1783 }
 0xeaa   :  { %v1845_v31 = vadd.f32 1e-05, %v1813_v57  ;;  %5392 = vrsqrt.f32 %v1846_v36  ;;  %v1816_v52 = vmul.f32 0.125, %v1784_v63  ;;  %v5490_v63 = vld [vmem:[%s8372_s0 + $0xc8] sm:$0xff] }
 0xeab   :  { %v1781_v5 = vpop.xlane.xlu0 %1780 }
 0xeac   :  { %5394 = vrsqrt.f32 %v1845_v31  ;;  %v1815_v29 = vmul.f32 0.125, %v1781_v5  ;;  %v5385_v48 = vpop.eup %5384  ;;  %v1848_v17 = vadd.f32 1e-05, %v1816_v52 }
 0xead   :  { %v1906_v3 = vmul.f32 %v5385_v48, %v7702_v40  ;;  %v7971_v40 = vld [vmem:[%s8371_s3 + $0x5] ss:$0 sm:$0xff] }
 0xeae   :  { %v5387_v54 = vpop.eup %5386  ;;  %v1847_v58 = vadd.f32 1e-05, %v1815_v29  ;;  %5396 = vrsqrt.f32 %v1848_v17 }
 0xeaf   :  { %v1905_v2 = vmul.f32 %v5387_v54, %v7712_v11  ;;  %v1942_v19 = vmul.f32 %v7964_v61, %v1906_v3 }
 0xeb0   :  { %5398 = vrsqrt.f32 %v1847_v58  ;;  %v5389_v32 = vpop.eup %5388 }
 0xeb1   :  { %v1941_v20 = vmul.f32 %v7964_v61, %v1905_v2  ;;  %v1978_v11 = vadd.f32 %v7971_v40, %v1942_v19  ;;  %v1908_v12 = vmul.f32 %v5389_v32, %v7718_v28 }
 0xeb2   :  { %v5391_v13 = vpop.eup %5390 }
 0xeb3   :  { %v1977_v37 = vadd.f32 %v7971_v40, %v1941_v20  ;;  %v1907_v44 = vmul.f32 %v5391_v13, %v7726_v49  ;;  %v2010_v21 = vmax.f32 %v1978_v11, 0.0  ;;  %v1944_v18 = vmul.f32 %v7964_v61, %v1908_v12  ;;  %v5491_v49 = vld [vmem:[%s8372_s0 + $0xc0] sm:$0xff]  ;;  %v5493_v11 = vld [vmem:[%s8372_s0 + $0xd0] sm:$0xff] }
 0xeb4   :  { %v5393_v55 = vpop.eup %5392 }
 0xeb5   :  { %v2009_v57 = vmax.f32 %v1977_v37, 0.0  ;;  %v1943_v36 = vmul.f32 %v7964_v61, %v1907_v44  ;;  %v2042_v5 = vadd.f32 %v5490_v63, %v2010_v21  ;;  %v1980_v52 = vadd.f32 %v7971_v40, %v1944_v18 }
 0xeb6   :  { %v5395_v31 = vpop.eup %5394  ;;  %v1910_v28 = vmul.f32 %v5393_v55, %v7734_v34 }
 0xeb7   :  { %v2041_v29 = vadd.f32 %v5491_v49, %v2009_v57  ;;  %v1979_v48 = vadd.f32 %v7971_v40, %v1943_v36  ;;  %v1909_v17 = vmul.f32 %v5395_v31, %v7741_v7  ;;  %2074 = vst.msk [vmem:[%s8373_s4 + $0xc8] sm:$0xff] %vm78_vm0, %v2042_v5  ;;  %v2012_v54 = vmax.f32 %v1980_v52, 0.0  ;;  %v5492_v7 = vld [vmem:[%s8372_s0 + $0xd8] sm:$0xff]  ;;  %v5495_v31 = vld [vmem:[%s8372_s0 + $0xe0] sm:$0xff] }
 0xeb8   :  { %v1946_v3 = vmul.f32 %v7964_v61, %v1910_v28  ;;  %v5397_v58 = vpop.eup %5396  ;;  %v5496_v49 = vld [vmem:[%s8372_s0 + $0xf8] sm:$0xff] }
 0xeb9   :  { %2073 = vst.msk [vmem:[%s8373_s4 + $0xc0] sm:$0xff] %vm78_vm0, %v2041_v29  ;;  %v2011_v34 = vmax.f32 %v1979_v48, 0.0  ;;  %v1945_v2 = vmul.f32 %v7964_v61, %v1909_v17  ;;  %v2044_v32 = vadd.f32 %v5492_v7, %v2012_v54  ;;  %v1912_v13 = vmul.f32 %v5397_v58, %v7748_v23  ;;  %v5497_v48 = vld [vmem:[%s8372_s0 + $0xf0] sm:$0xff] }
 0xeba   :  { %v5399_v19 = vpop.eup %5398  ;;  %v1982_v20 = vadd.f32 %v7971_v40, %v1946_v3 }
 0xebb   :  { %v2043_v12 = vadd.f32 %v5493_v11, %v2011_v34  ;;  %v1981_v37 = vadd.f32 %v7971_v40, %v1945_v2  ;;  %v1911_v44 = vmul.f32 %v5399_v19, %v7754_v0  ;;  %2076 = vst.msk [vmem:[%s8373_s4 + $0xd8] sm:$0xff] %vm78_vm0, %v2044_v32  ;;  %v1948_v18 = vmul.f32 %v7964_v61, %v1912_v13  ;;  %v5494_v0 = vld [vmem:[%s8372_s0 + $0xe8] sm:$0xff] }
 0xebc   :  { %v2014_v21 = vmax.f32 %v1982_v20, 0.0 }
 0xebd   :  { %2075 = vst.msk [vmem:[%s8373_s4 + $0xd0] sm:$0xff] %vm78_vm0, %v2043_v12  ;;  %v2013_v23 = vmax.f32 %v1981_v37, 0.0  ;;  %v1947_v55 = vmul.f32 %v7964_v61, %v1911_v44  ;;  %v1984_v36 = vadd.f32 %v7971_v40, %v1948_v18 }
 0xebe   :  { %v2046_v57 = vadd.f32 %v5494_v0, %v2014_v21 }
 0xebf   :  { %v2045_v63 = vadd.f32 %v5495_v31, %v2013_v23  ;;  %v1983_v5 = vadd.f32 %v7971_v40, %v1947_v55  ;;  %v2016_v52 = vmax.f32 %v1984_v36, 0.0 }
 0xec0   :  { %2078 = vst.msk [vmem:[%s8373_s4 + $0xe8] sm:$0xff] %vm78_vm0, %v2046_v57 }
 0xec1   :  { %2077 = vst.msk [vmem:[%s8373_s4 + $0xe0] sm:$0xff] %vm78_vm0, %v2045_v63  ;;  %v2015_v28 = vmax.f32 %v1983_v5, 0.0  ;;  %v2048_v29 = vadd.f32 %v5496_v49, %v2016_v52 }
 0xec3   :  { %v2047_v17 = vadd.f32 %v5497_v48, %v2015_v28  ;;  %2080 = vst.msk [vmem:[%s8373_s4 + $0xf8] sm:$0xff] %vm78_vm0, %v2048_v29 }
 0xec5   :  { %2079 = vst.msk [vmem:[%s8373_s4 + $0xf0] sm:$0xff] %vm78_vm0, %v2047_v17 }
 0xef1   :  { %v3684_v54 = vpop.xlane.xlu1 %3683  ;;  %v3681_v3 = vpop.xlane.xlu0 %3680 }
 0xef2   :  { %v3776_v58 = vmul.f32 0.125, %v3684_v54  ;;  %v3775_v34 = vmul.f32 0.125, %v3681_v3 }
 0xef4   :  { %v3808_v2 = vadd.f32 1e-05, %v3776_v58  ;;  %v3807_v19 = vadd.f32 1e-05, %v3775_v34 }
 0xef5   :  { %v3687_v32 = vpop.xlane.xlu0 %3686 }
 0xef6   :  { %v3690_v7 = vpop.xlane.xlu1 %3689  ;;  %5400 = vrsqrt.f32 %v3808_v2  ;;  %v3777_v13 = vmul.f32 0.125, %v3687_v32 }
 0xef7   :  { %v3778_v20 = vmul.f32 0.125, %v3690_v7  ;;  %5402 = vrsqrt.f32 %v3807_v19 }
 0xef8   :  { %v3809_v12 = vadd.f32 1e-05, %v3777_v13 }
 0xef9   :  { %v3810_v11 = vadd.f32 1e-05, %v3778_v20  ;;  %v3693_v44 = vpop.xlane.xlu0 %3692 }
 0xefa   :  { %v3696_v37 = vpop.xlane.xlu1 %3695  ;;  %v3779_v18 = vmul.f32 0.125, %v3693_v44 }
 0xefb   :  { %5404 = vrsqrt.f32 %v3810_v11  ;;  %v3780_v21 = vmul.f32 0.125, %v3696_v37 }
 0xefc   :  { %5406 = vrsqrt.f32 %v3809_v12  ;;  %v3811_v55 = vadd.f32 1e-05, %v3779_v18 }
 0xefd   :  { %v3812_v23 = vadd.f32 1e-05, %v3780_v21  ;;  %v3699_v57 = vpop.xlane.xlu0 %3698 }
 0xefe   :  { %v3702_v0 = vpop.xlane.xlu1 %3701  ;;  %v3781_v31 = vmul.f32 0.125, %v3699_v57 }
 0xeff   :  { %5408 = vrsqrt.f32 %v3812_v23  ;;  %v3782_v36 = vmul.f32 0.125, %v3702_v0 }
 0xf00   :  { %5410 = vrsqrt.f32 %v3811_v55  ;;  %v5401_v63 = vpop.eup %5400  ;;  %v3813_v49 = vadd.f32 1e-05, %v3781_v31 }
 0xf01   :  { %v3814_v5 = vadd.f32 1e-05, %v3782_v36  ;;  %v5403_v52 = vpop.eup %5402  ;;  %v3872_v28 = vmul.f32 %v5401_v63, %v7768_v24  ;;  %v3705_v17 = vpop.xlane.xlu0 %3704  ;;  %v5498_v36 = vld [vmem:[%s8372_s0 + $0x108] sm:$0xff] }
 0xf02   :  { %v3708_v29 = vpop.xlane.xlu1 %3707  ;;  %v3871_v48 = vmul.f32 %v5403_v52, %v7771_v39  ;;  %v3783_v58 = vmul.f32 0.125, %v3705_v17 }
 0xf03   :  { %5412 = vrsqrt.f32 %v3814_v5  ;;  %v3784_v54 = vmul.f32 0.125, %v3708_v29  ;;  %v3904_v3 = vmul.f32 %v7964_v61, %v3872_v28  ;;  %v5499_v28 = vld [vmem:[%s8372_s0 + $0x100] sm:$0xff] }
 0xf04   :  { %5414 = vrsqrt.f32 %v3813_v49  ;;  %v3903_v2 = vmul.f32 %v7964_v61, %v3871_v48  ;;  %v3815_v20 = vadd.f32 1e-05, %v3783_v58 }
 0xf05   :  { %v5405_v34 = vpop.eup %5404  ;;  %v3816_v19 = vadd.f32 1e-05, %v3784_v54  ;;  %v3936_v32 = vadd.f32 %v7971_v40, %v3904_v3  ;;  %v3711_v12 = vpop.xlane.xlu0 %3710 }
 0xf06   :  { %v5407_v7 = vpop.eup %5406  ;;  %v3874_v24 = vmul.f32 %v5405_v34, %v7778_v16  ;;  %v3714_v13 = vpop.xlane.xlu1 %3713  ;;  %v3935_v39 = vadd.f32 %v7971_v40, %v3903_v2  ;;  %v3785_v18 = vmul.f32 0.125, %v3711_v12 }
 0xf07   :  { %v3873_v11 = vmul.f32 %v5407_v7, %v7782_v9  ;;  %5416 = vrsqrt.f32 %v3816_v19  ;;  %v3786_v37 = vmul.f32 0.125, %v3714_v13  ;;  %v3968_v44 = vmax.f32 %v3936_v32, 0.0  ;;  %v5500_v7 = vld [vmem:[%s8372_s0 + $0x118] sm:$0xff] }
 0xf08   :  { %v3906_v21 = vmul.f32 %v7964_v61, %v3874_v24  ;;  %5418 = vrsqrt.f32 %v3815_v20  ;;  %v3967_v55 = vmax.f32 %v3935_v39, 0.0  ;;  %v3817_v5 = vadd.f32 1e-05, %v3785_v18 }
 0xf09   :  { %v5409_v23 = vpop.eup %5408  ;;  %v3905_v0 = vmul.f32 %v7964_v61, %v3873_v11  ;;  %v3818_v57 = vadd.f32 1e-05, %v3786_v37  ;;  %v4000_v31 = vadd.f32 %v5498_v36, %v3968_v44  ;;  %v3717_v17 = vpop.xlane.xlu0 %3716  ;;  %v5501_v11 = vld [vmem:[%s8372_s0 + $0x110] sm:$0xff] }
 0xf0a   :  { %v5411_v16 = vpop.eup %5410  ;;  %v3938_v9 = vadd.f32 %v7971_v40, %v3906_v21  ;;  %v3876_v63 = vmul.f32 %v5409_v23, %v7790_v35  ;;  %v3720_v52 = vpop.xlane.xlu1 %3719  ;;  %v3999_v49 = vadd.f32 %v5499_v28, %v3967_v55  ;;  %v3787_v3 = vmul.f32 0.125, %v3717_v17 }
 0xf0b   :  { %v3937_v29 = vadd.f32 %v7971_v40, %v3905_v0  ;;  %v3875_v48 = vmul.f32 %v5411_v16, %v7794_v47  ;;  %5420 = vrsqrt.f32 %v3818_v57  ;;  %4350 = vst.msk [vmem:[%s8373_s4 + $0x108] sm:$0xff] %vm78_vm0, %v4000_v31  ;;  %v3788_v2 = vmul.f32 0.125, %v3720_v52  ;;  %v5502_v31 = vld [vmem:[%s8372_s0 + $0x128] sm:$0xff] }
 0xf0c   :  { %v3970_v54 = vmax.f32 %v3938_v9, 0.0  ;;  %v3908_v35 = vmul.f32 %v7964_v61, %v3876_v63  ;;  %5422 = vrsqrt.f32 %v3817_v5  ;;  %4349 = vst.msk [vmem:[%s8373_s4 + $0x100] sm:$0xff] %vm78_vm0, %v3999_v49  ;;  %v3819_v13 = vadd.f32 1e-05, %v3787_v3  ;;  %v5503_v49 = vld [vmem:[%s8372_s0 + $0x120] sm:$0xff] }
 0xf0d   :  { %v5413_v58 = vpop.eup %5412  ;;  %v3969_v34 = vmax.f32 %v3937_v29, 0.0  ;;  %v3907_v47 = vmul.f32 %v7964_v61, %v3875_v48  ;;  %v3820_v21 = vadd.f32 1e-05, %v3788_v2  ;;  %v3723_v18 = vpop.xlane.xlu0 %3722 }
 0xf0e   :  { %v5415_v19 = vpop.eup %5414  ;;  %v4002_v32 = vadd.f32 %v5500_v7, %v3970_v54  ;;  %v3940_v24 = vadd.f32 %v7971_v40, %v3908_v35  ;;  %v3878_v20 = vmul.f32 %v5413_v58, %v7802_v51  ;;  %v3726_v39 = vpop.xlane.xlu1 %3725  ;;  %5424 = vrsqrt.f32 %v3819_v13  ;;  %v5504_v7 = vld [vmem:[%s8372_s0 + $0x138] sm:$0xff] }
 0xf0f   :  { %v4001_v12 = vadd.f32 %v5501_v11, %v3969_v34  ;;  %v3939_v37 = vadd.f32 %v7971_v40, %v3907_v47  ;;  %v3877_v44 = vmul.f32 %v5415_v19, %v7806_v56  ;;  %v3789_v55 = vmul.f32 0.125, %v3723_v18  ;;  %v5505_v11 = vld [vmem:[%s8372_s0 + $0x130] sm:$0xff] }
 0xf10   :  { %4352 = vst.msk [vmem:[%s8373_s4 + $0x118] sm:$0xff] %vm78_vm0, %v4002_v32  ;;  %v3972_v23 = vmax.f32 %v3940_v24, 0.0  ;;  %v3910_v51 = vmul.f32 %v7964_v61, %v3878_v20  ;;  %5426 = vrsqrt.f32 %v3820_v21  ;;  %v3790_v16 = vmul.f32 0.125, %v3726_v39 }
 0xf11   :  { %v5417_v0 = vpop.eup %5416  ;;  %4351 = vst.msk [vmem:[%s8373_s4 + $0x110] sm:$0xff] %vm78_vm0, %v4001_v12  ;;  %v3971_v57 = vmax.f32 %v3939_v37, 0.0  ;;  %v3909_v56 = vmul.f32 %v7964_v61, %v3877_v44  ;;  %v3821_v52 = vadd.f32 1e-05, %v3789_v55  ;;  %v3729_v35 = vpop.xlane.xlu0 %3728 }
 0xf12   :  { %v5419_v36 = vpop.eup %5418  ;;  %v4004_v9 = vadd.f32 %v5502_v31, %v3972_v23  ;;  %v3942_v63 = vadd.f32 %v7971_v40, %v3910_v51  ;;  %v3880_v5 = vmul.f32 %v5417_v0, %v7814_v62  ;;  %v3732_v28 = vpop.xlane.xlu1 %3731  ;;  %v3822_v54 = vadd.f32 1e-05, %v3790_v16 }
 0xf13   :  { %v4003_v29 = vadd.f32 %v5503_v49, %v3971_v57  ;;  %v3941_v48 = vadd.f32 %v7971_v40, %v3909_v56  ;;  %v3879_v17 = vmul.f32 %v5419_v36, %v7818_v30  ;;  %5428 = vrsqrt.f32 %v3821_v52  ;;  %v5506_v56 = vld [vmem:[%s8372_s0 + $0x148] sm:$0xff] }
 0xf14   :  { %4354 = vst.msk [vmem:[%s8373_s4 + $0x128] sm:$0xff] %vm78_vm0, %v4004_v9  ;;  %v3974_v3 = vmax.f32 %v3942_v63, 0.0  ;;  %v3912_v62 = vmul.f32 %v7964_v61, %v3880_v5  ;;  %v3791_v58 = vmul.f32 0.125, %v3729_v35  ;;  %5430 = vrsqrt.f32 %v3822_v54  ;;  %v5507_v5 = vld [vmem:[%s8372_s0 + $0x140] sm:$0xff] }
 0xf15   :  { %v5421_v34 = vpop.eup %5420  ;;  %4353 = vst.msk [vmem:[%s8373_s4 + $0x120] sm:$0xff] %vm78_vm0, %v4003_v29  ;;  %v3973_v47 = vmax.f32 %v3941_v48, 0.0  ;;  %v3911_v30 = vmul.f32 %v7964_v61, %v3879_v17  ;;  %v3792_v2 = vmul.f32 0.125, %v3732_v28 }
 0xf16   :  { %v5423_v19 = vpop.eup %5422  ;;  %v4006_v32 = vadd.f32 %v5504_v7, %v3974_v3  ;;  %v3944_v24 = vadd.f32 %v7971_v40, %v3912_v62  ;;  %v3882_v20 = vmul.f32 %v5421_v34, %v7826_v50  ;;  %v3823_v13 = vadd.f32 1e-05, %v3791_v58  ;;  %v3738_v39 = vpop.xlane.xlu1 %3737  ;;  %v5508_v34 = vld [vmem:[%s8372_s0 + $0x158] sm:$0xff]  ;;  %v5509_v7 = vld [vmem:[%s8372_s0 + $0x150] sm:$0xff] }
 0xf17   :  { %v4005_v12 = vadd.f32 %v5505_v11, %v3973_v47  ;;  %v3943_v37 = vadd.f32 %v7971_v40, %v3911_v30  ;;  %v3881_v44 = vmul.f32 %v5423_v19, %v7830_v4  ;;  %v3824_v21 = vadd.f32 1e-05, %v3792_v2  ;;  %v3735_v18 = vpop.xlane.xlu0 %3734 }
 0xf18   :  { %4356 = vst.msk [vmem:[%s8373_s4 + $0x138] sm:$0xff] %vm78_vm0, %v4006_v32  ;;  %v3976_v23 = vmax.f32 %v3944_v24, 0.0  ;;  %v3914_v50 = vmul.f32 %v7964_v61, %v3882_v20  ;;  %5432 = vrsqrt.f32 %v3823_v13  ;;  %v3793_v51 = vmul.f32 0.125, %v3735_v18  ;;  %v5425_v57 = vpop.eup %5424 }
 0xf19   :  { %4355 = vst.msk [vmem:[%s8373_s4 + $0x130] sm:$0xff] %vm78_vm0, %v4005_v12  ;;  %v3975_v55 = vmax.f32 %v3943_v37, 0.0  ;;  %v3913_v4 = vmul.f32 %v7964_v61, %v3881_v44  ;;  %5434 = vrsqrt.f32 %v3824_v21  ;;  %v3794_v0 = vmul.f32 0.125, %v3738_v39 }
 0xf1a   :  { %v4008_v16 = vadd.f32 %v5506_v56, %v3976_v23  ;;  %v3946_v36 = vadd.f32 %v7971_v40, %v3914_v50  ;;  %v3825_v31 = vadd.f32 1e-05, %v3793_v51  ;;  %v3744_v9 = vpop.xlane.xlu1 %3743  ;;  %v5427_v63 = vpop.eup %5426  ;;  %v3883_v49 = vmul.f32 %v5425_v57, %v7842_v45 }
 0xf1b   :  { %v4007_v52 = vadd.f32 %v5507_v5, %v3975_v55  ;;  %v3945_v28 = vadd.f32 %v7971_v40, %v3913_v4  ;;  %v3826_v29 = vadd.f32 1e-05, %v3794_v0  ;;  %v3741_v48 = vpop.xlane.xlu0 %3740  ;;  %v3884_v54 = vmul.f32 %v5427_v63, %v7838_v41 }
 0xf1c   :  { %4358 = vst.msk [vmem:[%s8373_s4 + $0x148] sm:$0xff] %vm78_vm0, %v4008_v16  ;;  %v3978_v17 = vmax.f32 %v3946_v36, 0.0  ;;  %5436 = vrsqrt.f32 %v3825_v31  ;;  %v3795_v35 = vmul.f32 0.125, %v3741_v48  ;;  %v3915_v45 = vmul.f32 %v7964_v61, %v3883_v49  ;;  %v5511_v31 = vld [vmem:[%s8372_s0 + $0x168] sm:$0xff] }
 0xf1d   :  { %4357 = vst.msk [vmem:[%s8373_s4 + $0x140] sm:$0xff] %vm78_vm0, %v4007_v52  ;;  %v3977_v3 = vmax.f32 %v3945_v28, 0.0  ;;  %5438 = vrsqrt.f32 %v3826_v29  ;;  %v3796_v62 = vmul.f32 0.125, %v3744_v9  ;;  %v5429_v58 = vpop.eup %5428  ;;  %v3916_v41 = vmul.f32 %v7964_v61, %v3884_v54 }
 0xf1e   :  { %v4010_v47 = vadd.f32 %v5508_v34, %v3978_v17  ;;  %v3827_v30 = vadd.f32 1e-05, %v3795_v35  ;;  %v3750_v2 = vpop.xlane.xlu1 %3749  ;;  %v5431_v19 = vpop.eup %5430  ;;  %v3947_v24 = vadd.f32 %v7971_v40, %v3915_v45  ;;  %v3885_v20 = vmul.f32 %v5429_v58, %v7854_v42  ;;  %v5512_v35 = vld [vmem:[%s8372_s0 + $0x170] sm:$0xff] }
 0xf1f   :  { %v4009_v32 = vadd.f32 %v5509_v7, %v3977_v3  ;;  %v3828_v13 = vadd.f32 1e-05, %v3796_v62  ;;  %v3747_v39 = vpop.xlane.xlu0 %3746  ;;  %v3948_v11 = vadd.f32 %v7971_v40, %v3916_v41  ;;  %v3886_v12 = vmul.f32 %v5431_v19, %v7850_v27  ;;  %v5510_v27 = vld [vmem:[%s8372_s0 + $0x160] sm:$0xff] }
 0xf20   :  { %4360 = vst.msk [vmem:[%s8373_s4 + $0x158] sm:$0xff] %vm78_vm0, %v4010_v47  ;;  %5440 = vrsqrt.f32 %v3827_v30  ;;  %v3797_v37 = vmul.f32 0.125, %v3747_v39  ;;  %v3979_v44 = vmax.f32 %v3947_v24, 0.0  ;;  %v3917_v42 = vmul.f32 %v7964_v61, %v3885_v20  ;;  %v5513_v47 = vld [vmem:[%s8372_s0 + $0x178] sm:$0xff] }
 0xf21   :  { %4359 = vst.msk [vmem:[%s8373_s4 + $0x150] sm:$0xff] %vm78_vm0, %v4009_v32  ;;  %5442 = vrsqrt.f32 %v3828_v13  ;;  %v3798_v21 = vmul.f32 0.125, %v3750_v2  ;;  %v3980_v23 = vmax.f32 %v3948_v11, 0.0  ;;  %v3918_v50 = vmul.f32 %v7964_v61, %v3886_v12  ;;  %v5514_v12 = vld [vmem:[%s8372_s0 + $0x180] sm:$0xff] }
 0xf22   :  { %v5433_v18 = vpop.eup %5432  ;;  %v3829_v51 = vadd.f32 1e-05, %v3797_v37  ;;  %v3756_v55 = vpop.xlane.xlu1 %3755  ;;  %v4011_v0 = vadd.f32 %v5510_v27, %v3979_v44  ;;  %v3949_v57 = vadd.f32 %v7971_v40, %v3917_v42 }
 0xf23   :  { %v5435_v4 = vpop.eup %5434  ;;  %v3887_v56 = vmul.f32 %v5433_v18, %v7866_v46  ;;  %v3830_v16 = vadd.f32 1e-05, %v3798_v21  ;;  %v3753_v36 = vpop.xlane.xlu0 %3752  ;;  %v4012_v9 = vadd.f32 %v5511_v31, %v3980_v23  ;;  %v3950_v63 = vadd.f32 %v7971_v40, %v3918_v50  ;;  %v5515_v23 = vld [vmem:[%s8372_s0 + $0x188] sm:$0xff]  ;;  %v5516_v31 = vld [vmem:[%s8372_s0 + $0x190] sm:$0xff] }
 0xf24   :  { %v3888_v5 = vmul.f32 %v5435_v4, %v7862_v22  ;;  %5444 = vrsqrt.f32 %v3829_v51  ;;  %4361 = vst.msk [vmem:[%s8373_s4 + $0x160] sm:$0xff] %vm78_vm0, %v4011_v0  ;;  %v3981_v52 = vmax.f32 %v3949_v57, 0.0  ;;  %v3799_v28 = vmul.f32 0.125, %v3753_v36 }
 0xf25   :  { %v3919_v46 = vmul.f32 %v7964_v61, %v3887_v56  ;;  %5446 = vrsqrt.f32 %v3830_v16  ;;  %4362 = vst.msk [vmem:[%s8373_s4 + $0x168] sm:$0xff] %vm78_vm0, %v4012_v9  ;;  %v3982_v29 = vmax.f32 %v3950_v63, 0.0  ;;  %v3800_v48 = vmul.f32 0.125, %v3756_v55 }
 0xf26   :  { %v5437_v49 = vpop.eup %5436  ;;  %v3920_v22 = vmul.f32 %v7964_v61, %v3888_v5  ;;  %v3762_v17 = vpop.xlane.xlu1 %3761  ;;  %v4013_v3 = vadd.f32 %v5512_v35, %v3981_v52  ;;  %v3831_v58 = vadd.f32 1e-05, %v3799_v28 }
 0xf27   :  { %v5439_v54 = vpop.eup %5438  ;;  %v3951_v45 = vadd.f32 %v7971_v40, %v3919_v46  ;;  %v3889_v62 = vmul.f32 %v5437_v49, %v7878_v38  ;;  %v4014_v41 = vadd.f32 %v5513_v47, %v3982_v29  ;;  %v3832_v19 = vadd.f32 1e-05, %v3800_v48  ;;  %v5517_v49 = vld [vmem:[%s8372_s0 + $0x198] sm:$0xff] }
 0xf28   :  { %v3759_v34 = vpop.xlane.xlu0 %3758  ;;  %v3952_v30 = vadd.f32 %v7971_v40, %v3920_v22  ;;  %v3890_v2 = vmul.f32 %v5439_v54, %v7874_v15  ;;  %4363 = vst.msk [vmem:[%s8373_s4 + $0x170] sm:$0xff] %vm78_vm0, %v4013_v3  ;;  %5448 = vrsqrt.f32 %v3831_v58  ;;  %v3802_v13 = vmul.f32 0.125, %v3762_v17  ;;  %v5518_v58 = vld [vmem:[%s8372_s0 + $0x1a0] sm:$0xff] }
 0xf29   :  { %v3983_v7 = vmax.f32 %v3951_v45, 0.0  ;;  %v3921_v38 = vmul.f32 %v7964_v61, %v3889_v62  ;;  %v3801_v32 = vmul.f32 0.125, %v3759_v34  ;;  %4364 = vst.msk [vmem:[%s8373_s4 + $0x178] sm:$0xff] %vm78_vm0, %v4014_v41  ;;  %5450 = vrsqrt.f32 %v3832_v19 }
 0xf2a   :  { %v5441_v24 = vpop.eup %5440  ;;  %v3984_v20 = vmax.f32 %v3952_v30, 0.0  ;;  %v3922_v15 = vmul.f32 %v7964_v61, %v3890_v2  ;;  %v3768_v39 = vpop.xlane.xlu1 %3767  ;;  %v3834_v4 = vadd.f32 1e-05, %v3802_v13  ;;  %v5519_v2 = vld [vmem:[%s8372_s0 + $0x1a8] sm:$0xff] }
 0xf2b   :  { %v5443_v11 = vpop.eup %5442  ;;  %v4015_v37 = vadd.f32 %v5514_v12, %v3983_v7  ;;  %v3953_v44 = vadd.f32 %v7971_v40, %v3921_v38  ;;  %v3891_v42 = vmul.f32 %v5441_v24, %v7890_v25  ;;  %v3833_v21 = vadd.f32 1e-05, %v3801_v32 }
 0xf2c   :  { %v3765_v18 = vpop.xlane.xlu0 %3764  ;;  %v4016_v50 = vadd.f32 %v5515_v23, %v3984_v20  ;;  %v3954_v51 = vadd.f32 %v7971_v40, %v3922_v15  ;;  %v3892_v55 = vmul.f32 %v5443_v11, %v7886_v59  ;;  %v3804_v16 = vmul.f32 0.125, %v3768_v39  ;;  %v5520_v39 = vld [vmem:[%s8372_s0 + $0x1b0] sm:$0xff] }
 0xf2d   :  { %4365 = vst.msk [vmem:[%s8373_s4 + $0x180] sm:$0xff] %vm78_vm0, %v4015_v37  ;;  %v3985_v27 = vmax.f32 %v3953_v44, 0.0  ;;  %v3923_v25 = vmul.f32 %v7964_v61, %v3891_v42  ;;  %5452 = vrsqrt.f32 %v3833_v21  ;;  %v3803_v0 = vmul.f32 0.125, %v3765_v18 }
 0xf2e   :  { %v5445_v57 = vpop.eup %5444  ;;  %4366 = vst.msk [vmem:[%s8373_s4 + $0x188] sm:$0xff] %vm78_vm0, %v4016_v50  ;;  %v3986_v56 = vmax.f32 %v3954_v51, 0.0  ;;  %v3924_v59 = vmul.f32 %v7964_v61, %v3892_v55  ;;  %5454 = vrsqrt.f32 %v3834_v4  ;;  %v3774_v28 = vpop.xlane.xlu1 %3773  ;;  %v3836_v17 = vadd.f32 1e-05, %v3804_v16 }
 0xf2f   :  { %v5447_v36 = vpop.eup %5446  ;;  %v4017_v9 = vadd.f32 %v5516_v31, %v3985_v27  ;;  %v3955_v63 = vadd.f32 %v7971_v40, %v3923_v25  ;;  %v3893_v5 = vmul.f32 %v5445_v57, %v7902_v33  ;;  %v3835_v52 = vadd.f32 1e-05, %v3803_v0  ;;  %v5522_v25 = vld [vmem:[%s8372_s0 + $0x1c0] sm:$0xff] }
 0xf30   :  { %v3771_v46 = vpop.xlane.xlu0 %3770  ;;  %v4018_v29 = vadd.f32 %v5517_v49, %v3986_v56  ;;  %v3956_v22 = vadd.f32 %v7971_v40, %v3924_v59  ;;  %v3894_v48 = vmul.f32 %v5447_v36, %v7898_v8  ;;  %v3806_v8 = vmul.f32 0.125, %v3774_v28  ;;  %v5523_v56 = vld [vmem:[%s8372_s0 + $0x1c8] sm:$0xff] }
 0xf31   :  { %4367 = vst.msk [vmem:[%s8373_s4 + $0x190] sm:$0xff] %vm78_vm0, %v4017_v9  ;;  %v3987_v54 = vmax.f32 %v3955_v63, 0.0  ;;  %v3925_v33 = vmul.f32 %v7964_v61, %v3893_v5  ;;  %5456 = vrsqrt.f32 %v3835_v52  ;;  %v3805_v35 = vmul.f32 0.125, %v3771_v46 }
 0xf32   :  { %4368 = vst.msk [vmem:[%s8373_s4 + $0x198] sm:$0xff] %vm78_vm0, %v4018_v29  ;;  %v3988_v3 = vmax.f32 %v3956_v22, 0.0  ;;  %v3926_v45 = vmul.f32 %v7964_v61, %v3894_v48  ;;  %5458 = vrsqrt.f32 %v3836_v17  ;;  %v5449_v62 = vpop.eup %5448  ;;  %v3838_v32 = vadd.f32 1e-05, %v3806_v8  ;;  %v5525_v29 = vld [vmem:[%s8372_s0 + $0x1d8] sm:$0xff]  ;;  %v5527_v8 = vld [vmem:[%s8372_s0 + $0x1e8] sm:$0xff] }
 0xf33   :  { %v4019_v34 = vadd.f32 %v5518_v58, %v3987_v54  ;;  %v3957_v47 = vadd.f32 %v7971_v40, %v3925_v33  ;;  %v3837_v41 = vadd.f32 1e-05, %v3805_v35  ;;  %v5451_v30 = vpop.eup %5450  ;;  %v3895_v38 = vmul.f32 %v5449_v62, %v7914_v60 }
 0xf34   :  { %v4020_v19 = vadd.f32 %v5519_v2, %v3988_v3  ;;  %v3958_v7 = vadd.f32 %v7971_v40, %v3926_v45  ;;  %v3896_v20 = vmul.f32 %v5451_v30, %v7910_v1  ;;  %v5521_v1 = vld [vmem:[%s8372_s0 + $0x1b8] sm:$0xff] }
 0xf35   :  { %4369 = vst.msk [vmem:[%s8373_s4 + $0x1a0] sm:$0xff] %vm78_vm0, %v4019_v34  ;;  %v3989_v24 = vmax.f32 %v3957_v47, 0.0  ;;  %5460 = vrsqrt.f32 %v3837_v41  ;;  %v3927_v13 = vmul.f32 %v7964_v61, %v3895_v38  ;;  %v5528_v47 = vld [vmem:[%s8372_s0 + $0x1f0] sm:$0xff] }
 0xf36   :  { %4370 = vst.msk [vmem:[%s8373_s4 + $0x1a8] sm:$0xff] %vm78_vm0, %v4020_v19  ;;  %v3990_v15 = vmax.f32 %v3958_v7, 0.0  ;;  %5462 = vrsqrt.f32 %v3838_v32  ;;  %v3928_v12 = vmul.f32 %v7964_v61, %v3896_v20 }
 0xf37   :  { %v5453_v60 = vpop.eup %5452  ;;  %v4021_v11 = vadd.f32 %v5520_v39, %v3989_v24  ;;  %v3959_v42 = vadd.f32 %v7971_v40, %v3927_v13 }
 0xf38   :  { %v5455_v37 = vpop.eup %5454  ;;  %v4022_v44 = vadd.f32 %v5521_v1, %v3990_v15  ;;  %v3897_v21 = vmul.f32 %v5453_v60, %v7926_v26  ;;  %v3960_v18 = vadd.f32 %v7971_v40, %v3928_v12 }
 0xf39   :  { %4371 = vst.msk [vmem:[%s8373_s4 + $0x1b0] sm:$0xff] %vm78_vm0, %v4021_v11  ;;  %v3898_v23 = vmul.f32 %v5455_v37, %v7922_v53  ;;  %v3991_v50 = vmax.f32 %v3959_v42, 0.0 }
 0xf3a   :  { %4372 = vst.msk [vmem:[%s8373_s4 + $0x1b8] sm:$0xff] %vm78_vm0, %v4022_v44  ;;  %v3929_v51 = vmul.f32 %v7964_v61, %v3897_v21  ;;  %v3992_v4 = vmax.f32 %v3960_v18, 0.0 }
 0xf3b   :  { %v5457_v55 = vpop.eup %5456  ;;  %v3930_v26 = vmul.f32 %v7964_v61, %v3898_v23  ;;  %v4023_v0 = vadd.f32 %v5522_v25, %v3991_v50 }
 0xf3c   :  { %v5459_v27 = vpop.eup %5458  ;;  %v3961_v53 = vadd.f32 %v7971_v40, %v3929_v51  ;;  %v3899_v57 = vmul.f32 %v5457_v55, %v7938_v43  ;;  %v4024_v59 = vadd.f32 %v5523_v56, %v3992_v4 }
 0xf3d   :  { %v3962_v16 = vadd.f32 %v7971_v40, %v3930_v26  ;;  %v3900_v36 = vmul.f32 %v5459_v27, %v7934_v14  ;;  %4373 = vst.msk [vmem:[%s8373_s4 + $0x1c0] sm:$0xff] %vm78_vm0, %v4023_v0  ;;  %v5524_v14 = vld [vmem:[%s8372_s0 + $0x1d0] sm:$0xff] }
 0xf3e   :  { %v3993_v31 = vmax.f32 %v3961_v53, 0.0  ;;  %v3931_v9 = vmul.f32 %v7964_v61, %v3899_v57  ;;  %4374 = vst.msk [vmem:[%s8373_s4 + $0x1c8] sm:$0xff] %vm78_vm0, %v4024_v59 }
 0xf3f   :  { %v5461_v63 = vpop.eup %5460  ;;  %v3994_v43 = vmax.f32 %v3962_v16, 0.0  ;;  %v3932_v5 = vmul.f32 %v7964_v61, %v3900_v36 }
 0xf40   :  { %v5463_v52 = vpop.eup %5462  ;;  %v4025_v46 = vadd.f32 %v5524_v14, %v3993_v31  ;;  %v3963_v28 = vadd.f32 %v7971_v40, %v3931_v9  ;;  %v3901_v49 = vmul.f32 %v5461_v63, %v7950_v6 }
 0xf41   :  { %v4026_v22 = vadd.f32 %v5525_v29, %v3994_v43  ;;  %v3964_v48 = vadd.f32 %v7971_v40, %v3932_v5  ;;  %v3902_v17 = vmul.f32 %v5463_v52, %v7946_v10  ;;  %v5526_v10 = vld [vmem:[%s8372_s0 + $0x1e0] sm:$0xff] }
 0xf42   :  { %4375 = vst.msk [vmem:[%s8373_s4 + $0x1d0] sm:$0xff] %vm78_vm0, %v4025_v46  ;;  %v3995_v54 = vmax.f32 %v3963_v28, 0.0  ;;  %v3933_v33 = vmul.f32 %v7964_v61, %v3901_v49 }
 0xf43   :  { %4376 = vst.msk [vmem:[%s8373_s4 + $0x1d8] sm:$0xff] %vm78_vm0, %v4026_v22  ;;  %v3996_v6 = vmax.f32 %v3964_v48, 0.0  ;;  %v3934_v35 = vmul.f32 %v7964_v61, %v3902_v17 }
 0xf44   :  { %v4027_v3 = vadd.f32 %v5526_v10, %v3995_v54  ;;  %v3965_v45 = vadd.f32 %v7971_v40, %v3933_v33 }
 0xf45   :  { %v4028_v62 = vadd.f32 %v5527_v8, %v3996_v6  ;;  %v3966_v58 = vadd.f32 %v7971_v40, %v3934_v35  ;;  %v5529_v40 = vld [vmem:[%s8372_s0 + $0x1f8] sm:$0xff] }
 0xf46   :  { %4377 = vst.msk [vmem:[%s8373_s4 + $0x1e0] sm:$0xff] %vm78_vm0, %v4027_v3  ;;  %v3997_v61 = vmax.f32 %v3965_v45, 0.0 }
 0xf47   :  { %4378 = vst.msk [vmem:[%s8373_s4 + $0x1e8] sm:$0xff] %vm78_vm0, %v4028_v62  ;;  %v3998_v34 = vmax.f32 %v3966_v58, 0.0 }
 0xf48   :  { %v4029_v41 = vadd.f32 %v5528_v47, %v3997_v61 }
 0xf49   :  { %v4030_v30 = vadd.f32 %v5529_v40, %v3998_v34 }
 0xf4a   :  { %4379 = vst.msk [vmem:[%s8373_s4 + $0x1f0] sm:$0xff] %vm78_vm0, %v4029_v41 }
 0xf4b   :  { %4380 = vst.msk [vmem:[%s8373_s4 + $0x1f8] sm:$0xff] %vm78_vm0, %v4030_v30 }

</bundles_post_ra>
